<compile_context>
chip_gen: v7x
topology: tpu7x:2x2x1
jax: 0.10.0
libtpu: 0.0.40
codegen_flags: <defaults>
</compile_context>

<pallas_src>
import functools
import math

import jax
import jax.numpy as jnp
from jax.experimental import pallas as pl
from jax.experimental.pallas import tpu as pltpu


# --------------------------------------------------------------------------
# Fused kernel: per (batch, H-tile) -> cumsums (MXU) + normalize + lane-packed
# single-sin epilogue, stored lane-dense into the (.., W, 2*NPF) output block.
# --------------------------------------------------------------------------
def _pos_embed_kernel(nm_full_ref, nm_tile_ref, tri_h_ref, tri_w_ref,
                      inv_ref, phase_ref, pos_ref,
                      *, num_pos_feats, normalize, scale, eps):
    nm_full = nm_full_ref[0]                                  # (H,  W) f32
    nm_tile = nm_tile_ref[0]                                  # (th, W) f32

    # Cumsums for this row-tile ride the otherwise-idle MXU:
    #   y[i, w] = sum_{i' <= row} nm[i', w]  = tri_h[rows, :] @ nm_full
    #   x[i, w] = sum_{w' <= w}   nm[i, w']  = nm[rows, :]    @ tri_w
    y = jnp.dot(tri_h_ref[...], nm_full, preferred_element_type=jnp.float32)
    x = jnp.dot(nm_tile, tri_w_ref[...], preferred_element_type=jnp.float32)

    if normalize:
        col_tot = jnp.sum(nm_full, axis=0, keepdims=True)     # == y_embed[-1, :]
        row_tot = jnp.sum(nm_tile, axis=1, keepdims=True)     # == x_embed[:, -1]
        y = y * (scale / (col_tot + eps))
        x = x * (scale / (row_tot + eps))

    c2 = 2 * num_pos_feats
    inv = inv_ref[...].reshape(1, 1, c2)                      # (1,1,c2) resident
    ph = phase_ref[...].reshape(1, 1, c2)                     # (1,1,c2) resident
    lane = jax.lax.broadcasted_iota(jnp.int32, (1, 1, c2), 2)
    # channels [0, NPF) come from y, [NPF, 2*NPF) from x; one full-width
    # lane-dense store and one sin per element (cos == sin(.+pi/2)).
    # TODO(synk): if the y/x lane-splat broadcast shows up hot in the bundle,
    # move it onto the MXU as an outer product (y_flat @ inv_row).
    arg = jnp.where(lane < num_pos_feats, y[:, :, None], x[:, :, None])
    pos_ref[0] = jnp.sin(arg * inv + ph)


# --------------------------------------------------------------------------
# Row-tile selection: biggest tile whose f32 output block fits the budget.
# 6 MiB * 2 (double buffer) + small inputs stays under v5e's 16 MiB scoped
# default and well under v6e/v7x's 32 MiB; th == H whenever the full map fits.
# --------------------------------------------------------------------------
def _pick_th(H, W, c2, budget_bytes=6 << 20):
    bytes_per_row = W * c2 * 4
    if H * bytes_per_row <= budget_bytes:
        return H
    max_rows = max(8, (budget_bytes // bytes_per_row))
    top = (min(max_rows, H) // 8) * 8
    if top <= 0:
        return H
    # prefer an exact divisor of H (no ragged tail) ...
    for t in range(top, 0, -8):
        if H % t == 0:
            return t
    # ... else a ragged cdiv grid (OOB rows of the last tile are dropped).
    return top


# --------------------------------------------------------------------------
# Wrapper
# --------------------------------------------------------------------------
def position_embedding_sine(mask, num_pos_feats=64, temperature=10000.0,
                            normalize=False, scale=None, channels_last=False):
    """mask: (B, H, W) bool -> (B, 2*num_pos_feats, H, W) f32 (NCHW, torch
    parity). channels_last=True returns NHWC and skips the final XLA permute."""
    if scale is not None and normalize is False:
        raise ValueError('normalize should be True if scale is passed')
    if scale is None:
        scale = 2.0 * math.pi

    B, H, W = mask.shape
    c2 = 2 * num_pos_feats
    not_mask = jnp.logical_not(mask).astype(jnp.float32)

    # Triangular cumsum operators, built once in the wrapper (hoisted).
    r = jax.lax.broadcasted_iota(jnp.int32, (H, H), 0)
    c = jax.lax.broadcasted_iota(jnp.int32, (H, H), 1)
    tri_h = (r >= c).astype(jnp.float32)                      # lower-tri: cumsum over H
    r = jax.lax.broadcasted_iota(jnp.int32, (W, W), 0)
    c = jax.lax.broadcasted_iota(jnp.int32, (W, W), 1)
    tri_w = (r <= c).astype(jnp.float32)                      # upper-tri: cumsum over W

    # Lane-packed (width c2) inv_dim_t and sin/cos phase offset.
    i = jnp.arange(num_pos_feats, dtype=jnp.float32)
    inv_half = (temperature ** (-2.0 * jnp.floor(i / 2.0) / num_pos_feats)
                ).astype(jnp.float32)
    phase_half = ((jnp.arange(num_pos_feats) % 2).astype(jnp.float32)
                  * (math.pi / 2.0))
    inv_c2 = jnp.concatenate([inv_half, inv_half]).reshape(1, c2)
    phase_c2 = jnp.concatenate([phase_half, phase_half]).reshape(1, c2)

    th = _pick_th(H, W, c2)
    nh = pl.cdiv(H, th)

    kernel = functools.partial(_pos_embed_kernel,
                               num_pos_feats=num_pos_feats,
                               normalize=normalize,
                               scale=float(scale), eps=1e-6)

    pos_nhwc = pl.pallas_call(
        kernel,
        out_shape=jax.ShapeDtypeStruct((B, H, W, c2), jnp.float32),
        grid=(B, nh),
        in_specs=[
            pl.BlockSpec((1, H, W), lambda b, h: (b, 0, 0)),   # nm full (resident per batch)
            pl.BlockSpec((1, th, W), lambda b, h: (b, h, 0)),  # nm row-tile
            pl.BlockSpec((th, H), lambda b, h: (h, 0)),        # tri_h rows for this tile
            pl.BlockSpec((W, W), lambda b, h: (0, 0)),         # tri_w (resident)
            pl.BlockSpec((1, c2), lambda b, h: (0, 0)),        # inv_dim_t packed (resident)
            pl.BlockSpec((1, c2), lambda b, h: (0, 0)),        # phase packed (resident)
        ],
        out_specs=pl.BlockSpec((1, th, W, c2), lambda b, h: (b, h, 0, 0)),
        compiler_params=pltpu.CompilerParams(
            dimension_semantics=("parallel", "parallel")),
    )(not_mask, not_mask, tri_h, tri_w, inv_c2, phase_c2)

    if channels_last:
        return pos_nhwc
    # Layout-only permute to NCHW (torch's .permute(0, 3, 1, 2)); skip it by
    # taking channels_last=True when the consumer accepts NHWC.
    return pos_nhwc.transpose(0, 3, 1, 2)


# --------------------------------------------------------------------------
# Pure-JAX reference mirroring the PyTorch module (correctness check).
# --------------------------------------------------------------------------
def _position_embedding_sine_ref(mask, num_pos_feats=64, temperature=10000.0,
                                 normalize=False, scale=None):
    if scale is None:
        scale = 2.0 * math.pi
    not_mask = jnp.logical_not(mask).astype(jnp.float32)
    y_embed = jnp.cumsum(not_mask, axis=1)
    x_embed = jnp.cumsum(not_mask, axis=2)
    if normalize:
        eps = 1e-6
        y_embed = y_embed / (y_embed[:, -1:, :] + eps) * scale
        x_embed = x_embed / (x_embed[:, :, -1:] + eps) * scale
    i = jnp.arange(num_pos_feats, dtype=jnp.float32)
    dim_t = temperature ** (2.0 * jnp.floor(i / 2.0) / num_pos_feats)
    pos_x = x_embed[..., None] / dim_t
    pos_y = y_embed[..., None] / dim_t
    B, H, W = mask.shape
    pos_x = jnp.stack([jnp.sin(pos_x[..., 0::2]), jnp.cos(pos_x[..., 1::2])],
                      axis=4).reshape(B, H, W, num_pos_feats)
    pos_y = jnp.stack([jnp.sin(pos_y[..., 0::2]), jnp.cos(pos_y[..., 1::2])],
                      axis=4).reshape(B, H, W, num_pos_feats)
    return jnp.concatenate([pos_y, pos_x], axis=3).transpose(0, 3, 1, 2)


# --------------------------------------------------------------------------
if __name__ == "__main__":
    key = jax.random.PRNGKey(0)
    B, H, W = 2, 16, 16
    NPF = 64                                            # module default num_pos_feats

    # Deterministic padding-style masks (True = padding), like DETR NestedTensor.
    kh, kw = jax.random.split(key)
    valid_h = jax.random.randint(kh, (B,), 8, H + 1)
    valid_w = jax.random.randint(kw, (B,), 8, W + 1)
    rows = jnp.arange(H)[None, :, None]
    cols = jnp.arange(W)[None, None, :]
    mask = ((rows >= valid_h[:, None, None]) |
            (cols >= valid_w[:, None, None]))          # (B, H, W) bool

    for normalize, scale in ((False, None), (True, 2.0 * math.pi)):
        pos = position_embedding_sine(mask, num_pos_feats=NPF,
                                      temperature=10000.0,
                                      normalize=normalize, scale=scale)
        jax.block_until_ready(pos)
        ref = _position_embedding_sine_ref(mask, num_pos_feats=NPF,
                                           temperature=10000.0,
                                           normalize=normalize, scale=scale)
        assert pos.shape == (B, 2 * NPF, H, W) and pos.dtype == jnp.float32
        err = float(jnp.max(jnp.abs(pos - ref)))
        assert err < 1e-4, f"max abs err {err} (normalize={normalize})"

    # Channels-last path: skips the NHWC->NCHW transpose for NHWC consumers.
    pos_nhwc = position_embedding_sine(mask, num_pos_feats=NPF,
                                       normalize=True, channels_last=True)
    jax.block_until_ready(pos_nhwc)
    assert pos_nhwc.shape == (B, H, W, 2 * NPF)

    print("KERNEL_OK")
</pallas_src>

<mosaic_0001>
module attributes {stable_mosaic.version = 11 : i64} {
  func.func @_pos_embed_kernel(%arg0: i32, %arg1: i32, %arg2: memref<1x16x16xf32, #tpu.memory_space<vmem>>, %arg3: memref<1x16x16xf32, #tpu.memory_space<vmem>>, %arg4: memref<16x16xf32, #tpu.memory_space<vmem>>, %arg5: memref<16x16xf32, #tpu.memory_space<vmem>>, %arg6: memref<1x128xf32, #tpu.memory_space<vmem>>, %arg7: memref<1x128xf32, #tpu.memory_space<vmem>>, %arg8: memref<1x16x16x128xf32, #tpu.memory_space<vmem>>) attributes {dimension_semantics = [#tpu.dimension_semantics<parallel>, #tpu.dimension_semantics<parallel>], iteration_bounds = array<i64: 2, 1>, scalar_prefetch = 0 : i64, scratch_operands = 0 : i64, tpu.core_type = #tpu.core_type<tc>, window_params = [{transform_indices = @transform_0, window_bounds = array<i64: 1, 16, 16>}, {transform_indices = @transform_1, window_bounds = array<i64: 1, 16, 16>}, {transform_indices = @transform_2, window_bounds = array<i64: 16, 16>}, {pipeline_mode = #tpu.pipeline_mode<synchronous>, transform_indices = @transform_3, window_bounds = array<i64: 16, 16>}, {pipeline_mode = #tpu.pipeline_mode<synchronous>, transform_indices = @transform_4, window_bounds = array<i64: 1, 128>}, {pipeline_mode = #tpu.pipeline_mode<synchronous>, transform_indices = @transform_5, window_bounds = array<i64: 1, 128>}, {transform_indices = @transform_6, window_bounds = array<i64: 1, 16, 16, 128>}]} {
    %c0 = arith.constant 0 : index
    %c0_0 = arith.constant 0 : index
    %c0_1 = arith.constant 0 : index
    %0 = vector.load %arg2[%c0, %c0_0, %c0_1] : memref<1x16x16xf32, #tpu.memory_space<vmem>>, vector<1x16x16xf32>
    %1 = vector.shape_cast %0 : vector<1x16x16xf32> to vector<16x16xf32>
    %c0_2 = arith.constant 0 : index
    %c0_3 = arith.constant 0 : index
    %c0_4 = arith.constant 0 : index
    %2 = vector.load %arg3[%c0_2, %c0_3, %c0_4] : memref<1x16x16xf32, #tpu.memory_space<vmem>>, vector<1x16x16xf32>
    %3 = vector.shape_cast %2 : vector<1x16x16xf32> to vector<16x16xf32>
    %c0_5 = arith.constant 0 : index
    %c0_6 = arith.constant 0 : index
    %4 = vector.load %arg4[%c0_5, %c0_6] : memref<16x16xf32, #tpu.memory_space<vmem>>, vector<16x16xf32>
    %cst = arith.constant dense<0.000000e+00> : vector<16x16xf32>
    %5 = tpu.matmul %4, %1, %cst {dimension_numbers = #tpu.dot_dimension_numbers<[1], [0], [0], [1], [0, 0, 1, 1], [], []>} : vector<16x16xf32>, vector<16x16xf32>, vector<16x16xf32> -> vector<16x16xf32>
    %c0_7 = arith.constant 0 : index
    %c0_8 = arith.constant 0 : index
    %6 = vector.load %arg5[%c0_7, %c0_8] : memref<16x16xf32, #tpu.memory_space<vmem>>, vector<16x16xf32>
    %cst_9 = arith.constant dense<0.000000e+00> : vector<16x16xf32>
    %7 = tpu.matmul %3, %6, %cst_9 {dimension_numbers = #tpu.dot_dimension_numbers<[1], [0], [0], [1], [0, 0, 1, 1], [], []>} : vector<16x16xf32>, vector<16x16xf32>, vector<16x16xf32> -> vector<16x16xf32>
    %c0_10 = arith.constant 0 : index
    %c0_11 = arith.constant 0 : index
    %8 = vector.load %arg6[%c0_10, %c0_11] : memref<1x128xf32, #tpu.memory_space<vmem>>, vector<1x128xf32>
    %9 = vector.shape_cast %8 : vector<1x128xf32> to vector<1x1x128xf32>
    %c0_12 = arith.constant 0 : index
    %c0_13 = arith.constant 0 : index
    %10 = vector.load %arg7[%c0_12, %c0_13] : memref<1x128xf32, #tpu.memory_space<vmem>>, vector<1x128xf32>
    %11 = vector.shape_cast %10 : vector<1x128xf32> to vector<1x1x128xf32>
    %12 = tpu.iota {dimensions = array<i32: 2>} : vector<1x1x128xi32>
    %c64_i32 = arith.constant 64 : i32
    %13 = vector.broadcast %c64_i32 : i32 to vector<1x1x128xi32>
    %14 = arith.cmpi slt, %12, %13 : vector<1x1x128xi32>
    %15 = vector.shape_cast %5 : vector<16x16xf32> to vector<16x16x1xf32>
    %16 = vector.shape_cast %7 : vector<16x16xf32> to vector<16x16x1xf32>
    %17 = vector.shape_cast %14 : vector<1x1x128xi1> to vector<1x1x128xi1>
    %18 = vector.broadcast %17 : vector<1x1x128xi1> to vector<16x16x128xi1>
    %19 = vector.shape_cast %15 : vector<16x16x1xf32> to vector<16x16x1xf32>
    %20 = vector.broadcast %19 : vector<16x16x1xf32> to vector<16x16x128xf32>
    %21 = vector.shape_cast %16 : vector<16x16x1xf32> to vector<16x16x1xf32>
    %22 = vector.broadcast %21 : vector<16x16x1xf32> to vector<16x16x128xf32>
    %23 = arith.select %18, %20, %22 : vector<16x16x128xi1>, vector<16x16x128xf32>
    %24 = vector.broadcast %9 : vector<1x1x128xf32> to vector<16x16x128xf32>
    %25 = arith.mulf %23, %24 : vector<16x16x128xf32>
    %26 = vector.broadcast %11 : vector<1x1x128xf32> to vector<16x16x128xf32>
    %27 = arith.addf %25, %26 : vector<16x16x128xf32>
    %28 = math.sin %27 : vector<16x16x128xf32>
    %c0_14 = arith.constant 0 : index
    %c0_15 = arith.constant 0 : index
    %c0_16 = arith.constant 0 : index
    %c0_17 = arith.constant 0 : index
    %29 = vector.load %arg8[%c0_14, %c0_15, %c0_16, %c0_17] : memref<1x16x16x128xf32, #tpu.memory_space<vmem>>, vector<1x16x16x128xf32>
    %30 = vector.shape_cast %29 : vector<1x16x16x128xf32> to vector<16x16x128xf32>
    %31 = vector.shape_cast %28 : vector<16x16x128xf32> to vector<1x16x16x128xf32>
    tpu.vector_store %arg8[%c0_14, %c0_15, %c0_16, %c0_17], %31 {strides = array<i32>} : memref<1x16x16x128xf32, #tpu.memory_space<vmem>>, vector<1x16x16x128xf32>,
    return
  }
  func.func @transform_0(%arg0: i32, %arg1: i32) -> (i32, i32, i32) {
    %c0_i32 = arith.constant 0 : i32
    %c0_i32_0 = arith.constant 0 : i32
    %c0_i32_1 = arith.constant 0 : i32
    return %arg0, %c0_i32, %c0_i32_0 : i32, i32, i32
  }
  func.func @transform_1(%arg0: i32, %arg1: i32) -> (i32, i32, i32) {
    %c0_i32 = arith.constant 0 : i32
    %c0_i32_0 = arith.constant 0 : i32
    return %arg0, %arg1, %c0_i32 : i32, i32, i32
  }
  func.func @transform_2(%arg0: i32, %arg1: i32) -> (i32, i32) {
    %c0_i32 = arith.constant 0 : i32
    %c0_i32_0 = arith.constant 0 : i32
    return %arg1, %c0_i32 : i32, i32
  }
  func.func @transform_3(%arg0: i32, %arg1: i32) -> (i32, i32) {
    %c0_i32 = arith.constant 0 : i32
    %c0_i32_0 = arith.constant 0 : i32
    %c0_i32_1 = arith.constant 0 : i32
    return %c0_i32, %c0_i32_0 : i32, i32
  }
  func.func @transform_4(%arg0: i32, %arg1: i32) -> (i32, i32) {
    %c0_i32 = arith.constant 0 : i32
    %c0_i32_0 = arith.constant 0 : i32
    %c0_i32_1 = arith.constant 0 : i32
    return %c0_i32, %c0_i32_0 : i32, i32
  }
  func.func @transform_5(%arg0: i32, %arg1: i32) -> (i32, i32) {
    %c0_i32 = arith.constant 0 : i32
    %c0_i32_0 = arith.constant 0 : i32
    %c0_i32_1 = arith.constant 0 : i32
    return %c0_i32, %c0_i32_0 : i32, i32
  }
  func.func @transform_6(%arg0: i32, %arg1: i32) -> (i32, i32, i32, i32) {
    %c0_i32 = arith.constant 0 : i32
    %c0_i32_0 = arith.constant 0 : i32
    %c0_i32_1 = arith.constant 0 : i32
    return %arg0, %arg1, %c0_i32, %c0_i32_0 : i32, i32, i32, i32
  }
}

</mosaic_0001>

<bundles_post_ra>
// kernel: tpu_custom_call.1
= control target key start
LH: loop header
LB: loop body
LE: loop exit
PB: predicated region body
PF: predicated region fallthrough
CT: control target
= control target key end

     0   :  { %s8543_s0 = inlined_call_operand.hbm [shape: f32[2,16,16], index: 0, kind: input, shape index: {}]   ;;  %s8544_s1 = inlined_call_operand.hbm [shape: f32[2,16,16], index: 1, kind: input, shape index: {}]   ;;  %s8545_s2 = inlined_call_operand.hbm [shape: f32[16,16], index: 2, kind: input, shape index: {}]   ;;  %s8546_s3 = inlined_call_operand.hbm [shape: f32[16,16], index: 3, kind: input, shape index: {}]   ;;  %s8547_s4 = inlined_call_operand.vmem [shape: f32[1,128], index: 4, kind: input, shape index: {}]   ;;  %s8548_s5 = inlined_call_operand.vmem [shape: f32[1,128], index: 5, kind: input, shape index: {}]   ;;  %s8549_s6 = inlined_call_operand.hbm [shape: f32[2,16,16,128], index: 6, kind: output, shape index: {}]  }
   0x1   :  { %8560 = sst [smem:[#allocation20_spill]] %s8543_s0 }
   0x2   :  { %8561 = sst [smem:[#allocation21_spill]] %s8545_s2 }
   0x3   :  { %8562 = sst [smem:[#allocation22_spill]] %s8546_s3 }
   0x4   :  { %11 = vsyncpa [#allocation3], 0 }
   0x5   :  { %13 = vsyncpa [#allocation3 + $0x1], 0 }
   0x6   :  { %14 = vsyncpa [#allocation6], 0 }
   0x7   :  { %16 = vsyncpa [#allocation6 + $0x1], 0 }
   0x8   :  { %17 = vsyncpa [#allocation9], 0 }
   0x9   :  { %18 = vsyncpa [#allocation4], 0 }
   0xa   :  { %20 = vsyncpa [#allocation4 + $0x1], 0  ;;  %s5330_s21 = smov 0   ;;  %s5332_s22 = smov 0  }
   0xb   :  { %s5334_s23 = smov 0   ;;  %s5336_s24 = smov 0  }
   0xc   :  { %s5338_s25 = smov 0   ;;  %s5340_s26 = smov 0  }
   0xd LB: > { %8563 = sst [smem:[#allocation16_spill]] %s5266_s23  ;;  %s5361_s27 = sadd.s32 4294967295, %s5278_s26   ;;  %s5278_s26 = sphi %s5340_s26, %s26_s26   ;;  %s5274_s25 = sphi %s5338_s25, %s8650_s25   ;;  %s5270_s24 = sphi %s5336_s24, %s8649_s24   ;;  %s5266_s23 = sphi %s5334_s23, %s8648_s23   ;;  %s5262_s22 = sphi %s5332_s22, %s8652_s22   ;;  %s5258_s21 = sphi %s5330_s21, %s8651_s21  }
   0xe   : > { %8564 = sst [smem:[#allocation17_spill]] %s5274_s25  ;;  %s4515_s28 = sadd.s32 4294967294, %s5278_s26  }
   0xf   : > { %p58_p0 = scmp.ne.s32.totalorder %s5262_s22, %s5258_s21  ;;  %p8550_p1 = scmp.eq.s32.totalorder %s5361_s27, 0 }
  0x10   : > { %p207_p3 = scmp.eq.s32.totalorder %s4515_s28, 1  ;;  %p4516_p5 = scmp.ge.s32.totalorder %s5278_s26, 1 }
  0x11   : > { %p5370_p4 = por %p8550_p1, %p58_p0  ;;  %p214_p7 = scmp.lt.s32.totalorder %s5278_s26, 3 }
  0x12   : > { %p5375_p6 = por %p207_p3, %p58_p0  ;;  %s5280_s8 = smov [#allocation7]  }
  0x13   : > { %s8565_s29 = scalar_select %p5370_p4, 1, 0 }
  0x14   : > { %s8566_s30 = scalar_select %p5375_p6, 1, 0 }
  0x15   : > { %p5380_p8 = pnand %p4516_p5, %p214_p7  ;;  %s229_s9 = sshll.u32 %s5280_s8, 4  ;;  %s5384_s9 = int_to_ptr.vmem [resolvable:$true] %s229_s9 }
  0x16   : > { %s5281_s11 = smov [#allocation8]   ;;  %s8569_s2 = sld [smem:[#allocation21_spill]] }
  0x17   : > { %p4846_p9 = pneg %p5380_p8  ;;  %s242_s12 = sshll.u32 %s5281_s11, 4  ;;  %s5395_s12 = int_to_ptr.vmem [resolvable:$true] %s242_s12 }
  0x19   : > { %p5391_p11 = pnand %p4846_p9, %p8550_p1 }
  0x1b   : > { %p5070_p13 = pneg %p5391_p11 }
  0x1c   : > { %s5068_s15 = scalar_lea.hbm %s8569_s2, 256 }
  0x1d   : > { %p5069_p12 = scmp.ne.s32.totalorder %s8569_s2, %s5068_s15  ;;  %p5075_p5 = scmp.lt.u32.totalorder %s5068_s15, %s8569_s2 }
  0x1f   : > { %p5071_p0 = pnand %p5070_p13, %p5069_p12 }
  0x21   : > { %p5072_p3 = pneg %p5071_p0 }
  0x23   : > { %p5077_p7 = pnand %p5075_p5, %p5072_p3 }
  0x25   : > { %5080 = shalt.err (!%p5077_p7)
}
  0x26   : > { %s5081_s20 = scalar_lea.vmem %s5384_s9, 256  ;;  %p5089_p2 = scmp.lt.s32.totalorder %s5384_s9, %s5384_s9 }
  0x27   : > { %p5082_p9 = scmp.ne.s32.totalorder %s5384_s9, %s5081_s20  ;;  %p5090_p12 = scmp.lt.s32.totalorder %s5081_s20, %s5081_s20 }
  0x29   : > { %p5084_p10 = pnand %p5082_p9, %p5070_p13  ;;  %p5091_p0 = por %p5090_p12, %p5089_p2 }
  0x2b   : > { %p5085_p1 = pneg %p5084_p10 }
  0x2d   : > { %p5092_p6 = pnand %p5091_p0, %p5085_p1 }
  0x2f   : > { %5095 = shalt.err (!%p5092_p6)
}
  0x30   : > { %s8551_s28 = smov 128   ;;  %s8553_s8 = smov 8  }
  0x31   : > { %4849 = dma.hbm_to_vmem [thread:$0]  (!%p5391_p11), %s8569_s2, 256, %s5384_s9, [#allocation6], %s8551_s28, %s8551_s28, %s8553_s8  }
  0x32   : > { %s8570_s3 = sld [smem:[#allocation22_spill]] }
  0x38   : > { %s5096_s16 = scalar_lea.hbm %s8570_s3, 256 }
  0x39   : > { %p5097_p1 = scmp.ne.s32.totalorder %s8570_s3, %s5096_s16  ;;  %p5103_p10 = scmp.lt.u32.totalorder %s5096_s16, %s8570_s3 }
  0x3b   : > { %p5099_p2 = pnand %p5097_p1, %p5070_p13 }
  0x3d   : > { %p5100_p6 = pneg %p5099_p2 }
  0x3f   : > { %p5105_p3 = pnand %p5103_p10, %p5100_p6 }
  0x41   : > { %5108 = shalt.err (!%p5105_p3)
}
  0x42   : > { %s5109_s9 = scalar_lea.vmem %s5395_s12, 256  ;;  %p5117_p12 = scmp.lt.s32.totalorder %s5395_s12, %s5395_s12 }
  0x43   : > { %p5110_p5 = scmp.ne.s32.totalorder %s5395_s12, %s5109_s9  ;;  %p5118_p0 = scmp.lt.s32.totalorder %s5109_s9, %s5109_s9 }
  0x45   : > { %p5112_p7 = pnand %p5110_p5, %p5070_p13  ;;  %p5119_p1 = por %p5118_p0, %p5117_p12 }
  0x47   : > { %p5113_p9 = pneg %p5112_p7 }
  0x49   : > { %p5120_p2 = pnand %p5119_p1, %p5113_p9 }
  0x4b   : > { %5123 = shalt.err (!%p5120_p2)
}
  0x4c   : > { %4852 = dma.hbm_to_vmem [thread:$0]  (!%p5391_p11), %s8570_s3, 256, %s5395_s12, [#allocation9], %s8551_s28, %s8551_s28, %s8553_s8  }
  0x4d   : > { %s38_s10 = sadd.s32 1, %s5274_s25  ;;  %s45_s14 = sadd.s32 1, %s5266_s23 }
  0x4e   : > { %p40_p13 = scmp.ge.s32.totalorder %s38_s10, 2  ;;  %p52_p6 = scmp.ne.s32.totalorder %s5266_s23, %s5262_s22 }
  0x4f   : > { %p53_p10 = scmp.eq.s32.totalorder %s5278_s26, 0  ;;  %p4866_p3 = scmp.lt.s32.totalorder %s5278_s26, 2 }
  0x50   : > { %s8654_s10 = smov (%p40_p13, %s38_s10), 0  ;;  %p8572_p7 = scmp.eq.s32.totalorder %s5361_s27, 1 }
  0x51   : > { %8571 = sst [smem:[#allocation18_spill]] %s8654_s10  ;;  %p54_p5 = por %p53_p10, %p52_p6 }
  0x52   : > { %p5465_p9 = por %p8572_p7, %p52_p6  ;;  %s42_s16 = ssub.s32 %s5274_s25, %s8654_s10 }
  0x53   : > { %s262_s17 = sand.u32 1, %s5266_s23   ;;  %p43_p12 = scmp.eq.s32.totalorder %s42_s16, 0 }
  0x54   : > { %s8573_s15 = scalar_select %p5465_p9, 1, 0 }
  0x55   : > { %s5472_s12 = sshll.u32 %s262_s17, 4  ;;  %s4671_s18 = sshll.u32 %s5274_s25, 8 }
  0x56   : > { %s5476_s19 = scalar_select %p43_p12, %s5266_s23, %s45_s14  }
  0x57   : > { %s8575_s0 = sld [smem:[#allocation20_spill]]  ;;  %s266_s13 = scalar_lea.vmem [#allocation2], %s5472_s12 }
  0x58   : > { %8574 = sst [smem:[#allocation19_spill]] %s5476_s19  ;;  %s273_s28 = sshll.u32 %s266_s13, 4  ;;  %s5490_s28 = int_to_ptr.vmem [resolvable:$true] %s273_s28 }
  0x59   : > { %p5486_p11 = pnand %p4866_p3, %p54_p5  ;;  %s5495_s20 = scalar_lea.hbm %s8544_s1, %s4671_s18 }
  0x5a   : > { %s5497_s9 = scalar_lea.sflag [#allocation3], %s262_s17 }
  0x5b   : > { %p5126_p1 = pneg %p5486_p11 }
  0x5d   : > { %s5481_s11 = scalar_lea.hbm %s8575_s0, %s4671_s18  ;;  %s5129_s10 = scalar_lea.hbm %s8575_s0, 512 }
  0x5e   : > { %s5124_s2 = scalar_lea.hbm %s5481_s11, 256  ;;  %p5130_p6 = scmp.lt.u32.totalorder %s5481_s11, %s8575_s0 }
  0x5f   : > { %p5125_p0 = scmp.ne.s32.totalorder %s5481_s11, %s5124_s2  ;;  %p5131_p10 = scmp.lt.u32.totalorder %s5129_s10, %s5124_s2 }
  0x60   : > { %p5133_p5 = scmp.lt.u32.totalorder %s5124_s2, %s5481_s11 }
  0x61   : > { %p5127_p2 = pnand %p5126_p1, %p5125_p0  ;;  %p5132_p3 = por %p5131_p10, %p5130_p6 }
  0x63   : > { %p5128_p13 = pneg %p5127_p2  ;;  %p5134_p7 = por %p5133_p5, %p5132_p3 }
  0x65   : > { %p5135_p12 = pnand %p5134_p7, %p5128_p13 }
  0x67   : > { %5138 = shalt.err (!%p5135_p12)
}
  0x68   : > { %s5139_s8 = scalar_lea.vmem %s5490_s28, 256  ;;  %s5284_s3 = smov [#allocation2]  }
  0x69   : > { %p5140_p0 = scmp.ne.s32.totalorder %s5490_s28, %s5139_s8  ;;  %s5144_s17 = sshll.u32 %s5284_s3, 4  ;;  %s5145_s17 = int_to_ptr.vmem [resolvable:$false] %s5144_s17 }
  0x6a   : > { %s5146_s25 = scalar_lea.vmem %s5145_s17, 512  ;;  %p5147_p4 = scmp.lt.s32.totalorder %s5490_s28, %s5145_s17 }
  0x6b   : > { %p5142_p2 = pnand %p5140_p0, %p5126_p1  ;;  %p5148_p6 = scmp.lt.s32.totalorder %s5146_s25, %s5139_s8 }
  0x6d   : > { %p5143_p9 = pneg %p5142_p2  ;;  %p5149_p10 = por %p5148_p6, %p5147_p4 }
  0x6f   : > { %p5150_p3 = pnand %p5149_p10, %p5143_p9 }
  0x71   : > { %5153 = shalt.err (!%p5150_p3)
}
  0x72   : > { %s8577_s2 = smov 8   ;;  %s8578_s10 = smov 128  }
  0x73   : > { %4856 = dma.hbm_to_vmem [thread:$0]  (!%p5486_p11), %s5481_s11, 256, %s5490_s28, %s5497_s9, %s8578_s10, %s8578_s10, %s8577_s2  }
  0x74   : > { %s287_s18 = scalar_lea.vmem [#allocation5], %s5472_s12  ;;  %s283_s14 = sand.u32 1, %s5278_s26  }
  0x75   : > { %s296_s19 = sshll.u32 %s287_s18, 4  ;;  %s5532_s13 = scalar_lea.sflag [#allocation6], %s283_s14  ;;  %s5530_s19 = int_to_ptr.vmem [resolvable:$true] %s296_s19 }
  0x76   : > { %s5154_s8 = scalar_lea.hbm %s5495_s20, 256  ;;  %s5159_s25 = scalar_lea.hbm %s8544_s1, 512 }
  0x77   : > { %p5155_p4 = scmp.ne.s32.totalorder %s5495_s20, %s5154_s8  ;;  %p5160_p5 = scmp.lt.u32.totalorder %s5495_s20, %s8544_s1 }
  0x78   : > { %p5161_p7 = scmp.lt.u32.totalorder %s5159_s25, %s5154_s8  ;;  %p5163_p0 = scmp.lt.u32.totalorder %s5154_s8, %s5495_s20 }
  0x79   : > { %p5157_p9 = pnand %p5155_p4, %p5126_p1 }
  0x7a   : > { %p5162_p12 = por %p5161_p7, %p5160_p5 }
  0x7b   : > { %p5158_p13 = pneg %p5157_p9 }
  0x7c   : > { %p5164_p2 = por %p5163_p0, %p5162_p12 }
  0x7e   : > { %p5165_p6 = pnand %p5164_p2, %p5158_p13 }
  0x80   : > { %5168 = shalt.err (!%p5165_p6)
}
  0x81   : > { %s5169_s28 = scalar_lea.vmem %s5530_s19, 256  ;;  %s5285_s12 = smov [#allocation5]  }
  0x82   : > { %p5170_p10 = scmp.ne.s32.totalorder %s5530_s19, %s5169_s28  ;;  %s5174_s11 = sshll.u32 %s5285_s12, 4  ;;  %s5175_s11 = int_to_ptr.vmem [resolvable:$false] %s5174_s11 }
  0x83   : > { %s5176_s0 = scalar_lea.vmem %s5175_s11, 512  ;;  %p5177_p9 = scmp.lt.s32.totalorder %s5530_s19, %s5175_s11 }
  0x84   : > { %p5172_p3 = pnand %p5170_p10, %p5126_p1  ;;  %p5178_p5 = scmp.lt.s32.totalorder %s5176_s0, %s5169_s28 }
  0x86   : > { %p5173_p4 = pneg %p5172_p3  ;;  %p5179_p7 = por %p5178_p5, %p5177_p9 }
  0x88   : > { %p5180_p12 = pnand %p5179_p7, %p5173_p4 }
  0x8a   : > { %5183 = shalt.err (!%p5180_p12)
}
  0x8b   : > { %4859 = dma.hbm_to_vmem [thread:$0]  (!%p5486_p11), %s5495_s20, 256, %s5530_s19, %s5532_s13, %s8578_s10, %s8578_s10, %s8577_s2  }
  0x8c   : > { %308 = sbr.rel (%p5380_p8) target bundleno = 1387 (0x56b), region = 44  ;;  %s5564_s23 = sand.u32 (!%p5380_p8), 1, %s5262_s22  }
  0x8d   : > { %s4527_s9 = sshll.u32 (!%p5380_p8), %s5564_s23, 4  ;;  %s311_s18 = scalar_lea.sflag (!%p5380_p8), [#allocation3], %s5564_s23 }
  0x8e   : > { %s314_s14 = scalar_lea.vmem (!%p5380_p8), [#allocation2], %s4527_s9  ;;  %p8579_p1 = scmp.ne.s32.totalorder (!%p5380_p8), %s8565_s29, 0 }
  0x93   : > { %5237 = dma.done.wait (%p8579_p1), %s311_s18, 256  }
  0x94   : > { %5239 = vsyncadd (%p8579_p1), %s311_s18, 4294967040  ;;  %s319_s16 = sand.u32 1, %s5361_s27   ;;  %s323_s7 = scalar_lea.vmem [#allocation5], %s4527_s9 }
  0x95   : > { %s320_s20 = scalar_lea.sflag [#allocation6], %s319_s16 }
  0x96   : > { %5241 = dma.done.wait (%p8579_p1), %s320_s20, 256  }
  0x97   : > { %5243 = vsyncadd (%p8579_p1), %s320_s20, 4294967040  ;;  %p8580_p8 = scmp.eq.s32.totalorder %s5361_s27, 0 }
  0x99   : > { %5245 = dma.done.wait (%p8580_p8), [#allocation6], 256   ;;  %p8581_p11 = pmov %p8580_p8 }
  0x9a   : > { %p8582_p13 = pmov %p8580_p8 }
  0x9b   : > { %5247 = vsyncadd (%p8581_p11), [#allocation6], 4294967040 }
  0x9c   : > { %5249 = dma.done.wait (%p8582_p13), [#allocation9], 256   ;;  %p8583_p0 = pmov %p8580_p8 }
  0x9d   : > { %vm374_vm0 = vcmask 130048   ;;  %v368_v0 = vld [vmem:[%s314_s14] sm:$0xff]  ;;  %v369_v1 = vld [vmem:[%s314_s14 + $0x8] sm:$0xff]  ;;  %v541_v10 = vlaneseq  ;;  %s4531_s19 = sshll.u32 %s5564_s23, 8  ;;  %s4673_s3 = sshll.u32 %s5270_s24, 12 }
  0x9e   : > { %5251 = vsyncadd (%p8583_p0), [#allocation9], 4294967040  ;;  %v372_v2 = vld [vmem:[#allocation7] sm:$0xff]  ;;  %v4696_v3 = vpack.c.bf16 %v369_v1, %v368_v0  ;;  %v456_v4 = vld [vmem:[#allocation8] sm:$0xff]  ;;  %s5998_s13 = scalar_lea.vmem [#allocation10], %s4531_s19  ;;  %s8490_s12 = scalar_lea.hbm %s8549_s6, %s4673_s3 }
  0x9f   : > { %4686 = vmatprep.mubr.msk.f32.mxu0 %vm374_vm0, %v372_v2  ;;  %v457_v5 = vld [vmem:[#allocation8 + $0x8] sm:$0xff]  ;;  %v370_v7 = vld [vmem:[%s323_s7] sm:$0xff]  ;;  %v373_v8 = vld [vmem:[#allocation7 + $0x8] sm:$0xff]  ;;  %v545_v11 = vshrl.u32 %v541_v10, 7  ;;  %s4383_s17 = sshll.u32 %s5998_s13, 4  ;;  %s4367_s24 = scalar_lea.sflag [#allocation4], %s5564_s23  ;;  %s8492_s17 = int_to_ptr.vmem [resolvable:$true] %s4383_s17 }
  0xa0   : > { %v4700_v6 = vpack.c.bf16 %v457_v5, %v456_v4  ;;  %4697 = vmatprep.subr.bf16.mxu0 %v4696_v3  ;;  %4693 = vmatprep.mubr.msk.f32.mxu1 %vm374_vm0, %v370_v7  ;;  %v371_v9 = vld [vmem:[%s323_s7 + $0x8] sm:$0xff]  ;;  %s5184_s11 = scalar_lea.vmem %s8492_s17, 4096  ;;  %p8644_p6 = scmp.ne.s32.totalorder %s8573_s15, 0 }
  0xa1   : > { %4699 = vmatpush3.bf16.msra.mxu0 %v4696_v3  ;;  %v5590_v12 = vsub.s32 0, %v545_v11  ;;  %v557_v16 = vsub.s32 1, %v545_v11  ;;  %v568_v20 = vsub.s32 2, %v545_v11  ;;  %v5595_v21 = vsub.s32 3, %v545_v11  ;;  %p5185_p2 = scmp.ne.s32.totalorder %s8492_s17, %s5184_s11  ;;  %s5292_s0 = smov [#allocation10]  }
  0xa2   : > { %4701 = vmatprep.subr.bf16.mxu1 %v4700_v6  ;;  %v5597_v22 = vsub.s32 4, %v545_v11  ;;  %v5599_v23 = vsub.s32 5, %v545_v11  ;;  %v5601_v24 = vsub.s32 6, %v545_v11  ;;  %v5603_v25 = vsub.s32 7, %v545_v11  ;;  %s5188_s9 = sshll.u32 %s5292_s0, 4  ;;  %s5189_s9 = int_to_ptr.vmem [resolvable:$false] %s5188_s9 }
  0xa3   : > { %4703 = vmatpush3.bf16.msra.mxu1 %v4700_v6  ;;  %v5693_v6 = vand.u32 127, %v541_v10  ;;  %p5186_p10 = pnand %p5185_p2, %p8644_p6  ;;  %s5190_s18 = scalar_lea.vmem %s5189_s9, 8192 }
  0xa4   : > { %4687 = vmatmul.mubr.msk.f32.vlgmr.msra.gmra.mrb[0].mxu0 %vm374_vm0, %v373_v8  ;;  %p5191_p4 = scmp.lt.s32.totalorder %s8492_s17, %s5189_s9  ;;  %p5192_p9 = scmp.lt.s32.totalorder %s5190_s18, %s5184_s11 }
  0xa5   : > { %vm543_vm1 = vcmp.lt.s32.totalorder %v5693_v6, 64  ;;  %p5187_p3 = pneg %p5186_p10 }
  0xa6   : > { %4694 = vmatmul.mubr.msk.f32.vlgmr.msra.gmra.mrb[0].mxu1 %vm374_vm0, %v371_v9  ;;  %v5703_v9 = vld [vmem:[%s8547_s4] ss:$0 sm:$0xff]  ;;  %p5193_p5 = por %p5192_p9, %p5191_p4 }
  0xa8   : > { %p5194_p7 = pnand %p5193_p5, %p5187_p3 }
 0x177   : > { %v4688_v13 = vpop.f32.mrb[0].mxu0 }
 0x178   : > { %v5592_v14 = vpop.f32.mrb[1].mxu0  ;;  %v635_v15 = vrot.slane %v4688_v13, %v5590_v12  ;;  %v646_v19 = vrot.slane %v4688_v13, %v557_v16  ;;  %v657_v33 = vrot.slane %v4688_v13, %v568_v20  ;;  %v668_v36 = vrot.slane %v4688_v13, %v5595_v21 }
 0x179   : > { %v4695_v17 = vpop.f32.mrb[0].mxu1  ;;  %v679_v37 = vrot.slane %v4688_v13, %v5597_v22  ;;  %v690_v38 = vrot.slane %v4688_v13, %v5599_v23  ;;  %v701_v39 = vrot.slane %v4688_v13, %v5601_v24  ;;  %v712_v40 = vrot.slane %v4688_v13, %v5603_v25  ;;  %v5708_v13 = vld [vmem:[%s8548_s5] ss:$0 sm:$0xff] }
 0x17a   : > { %v530_v18 = vpop.f32.mrb[1].mxu1  ;;  %641 = vbcast.lane.b32.xlu1 %v635_v15, 264  ;;  %637 = vbcast.lane.b32.xlu0 %v635_v15, 256  ;;  %v5628_v35 = vrot.slane %v4695_v17, %v5603_v25  ;;  %v811_v41 = vrot.slane %v4695_v17, %v5590_v12  ;;  %v822_v42 = vrot.slane %v4695_v17, %v557_v16 }
 0x17b   : > { %v5606_v26 = vrot.slane %v530_v18, %v5590_v12  ;;  %v5608_v27 = vrot.slane %v530_v18, %v557_v16  ;;  %v5610_v28 = vrot.slane %v530_v18, %v568_v20  ;;  %v5613_v29 = vrot.slane %v530_v18, %v5595_v21 }
 0x17c   : > { %v5616_v30 = vrot.slane %v530_v18, %v5597_v22  ;;  %v5619_v31 = vrot.slane %v530_v18, %v5599_v23  ;;  %v5622_v32 = vrot.slane %v530_v18, %v5601_v24  ;;  %v5625_v34 = vrot.slane %v530_v18, %v5603_v25 }
 0x17d   : > { %v833_v43 = vrot.slane %v4695_v17, %v568_v20  ;;  %v844_v44 = vrot.slane %v4695_v17, %v5595_v21  ;;  %v855_v45 = vrot.slane %v4695_v17, %v5597_v22  ;;  %v866_v46 = vrot.slane %v4695_v17, %v5599_v23 }
 0x17e   : > { %652 = vbcast.lane.b32.xlu1 %v646_v19, 264  ;;  %648 = vbcast.lane.b32.xlu0 %v646_v19, 256  ;;  %v877_v47 = vrot.slane %v4695_v17, %v5601_v24  ;;  %v558_v48 = vrot.slane %v5592_v14, %v557_v16  ;;  %v547_v49 = vrot.slane %v5592_v14, %v5590_v12 }
 0x17f   : > { %v569_v50 = vrot.slane %v5592_v14, %v568_v20  ;;  %v580_v51 = vrot.slane %v5592_v14, %v5595_v21  ;;  %v591_v52 = vrot.slane %v5592_v14, %v5597_v22  ;;  %v602_v53 = vrot.slane %v5592_v14, %v5599_v23 }
 0x180   : > { %v613_v54 = vrot.slane %v5592_v14, %v5601_v24  ;;  %v624_v55 = vrot.slane %v5592_v14, %v5603_v25 }
 0x182   : > { %663 = vbcast.lane.b32.xlu1 %v657_v33, 264  ;;  %659 = vbcast.lane.b32.xlu0 %v657_v33, 256 }
 0x186   : > { %674 = vbcast.lane.b32.xlu1 %v668_v36, 264  ;;  %670 = vbcast.lane.b32.xlu0 %v668_v36, 256 }
 0x18a   : > { %685 = vbcast.lane.b32.xlu1 %v679_v37, 264  ;;  %681 = vbcast.lane.b32.xlu0 %v679_v37, 256 }
 0x18e   : > { %696 = vbcast.lane.b32.xlu1 %v690_v38, 264  ;;  %692 = vbcast.lane.b32.xlu0 %v690_v38, 256 }
 0x192   : > { %707 = vbcast.lane.b32.xlu1 %v701_v39, 264  ;;  %703 = vbcast.lane.b32.xlu0 %v701_v39, 256 }
 0x196   : > { %718 = vbcast.lane.b32.xlu1 %v712_v40, 264  ;;  %714 = vbcast.lane.b32.xlu0 %v712_v40, 256 }
 0x19a   : > { %817 = vbcast.lane.b32.xlu1 %v811_v41, 264  ;;  %813 = vbcast.lane.b32.xlu0 %v811_v41, 256 }
 0x19e   : > { %828 = vbcast.lane.b32.xlu1 %v822_v42, 264  ;;  %824 = vbcast.lane.b32.xlu0 %v822_v42, 256 }
 0x1a2   : > { %839 = vbcast.lane.b32.xlu1 %v833_v43, 264  ;;  %835 = vbcast.lane.b32.xlu0 %v833_v43, 256 }
 0x1a6   : > { %850 = vbcast.lane.b32.xlu1 %v844_v44, 264  ;;  %846 = vbcast.lane.b32.xlu0 %v844_v44, 256 }
 0x1aa   : > { %861 = vbcast.lane.b32.xlu1 %v855_v45, 264  ;;  %857 = vbcast.lane.b32.xlu0 %v855_v45, 256 }
 0x1ae   : > { %872 = vbcast.lane.b32.xlu1 %v866_v46, 264  ;;  %868 = vbcast.lane.b32.xlu0 %v866_v46, 256 }
 0x1b2   : > { %883 = vbcast.lane.b32.xlu1 %v877_v47, 264  ;;  %879 = vbcast.lane.b32.xlu0 %v877_v47, 256 }
 0x1b6   : > { %560 = vbcast.lane.b32.xlu1 %v558_v48, 256  ;;  %549 = vbcast.lane.b32.xlu0 %v547_v49, 256 }
 0x1ba   : > { %564 = vbcast.lane.b32.xlu1 %v558_v48, 264  ;;  %553 = vbcast.lane.b32.xlu0 %v547_v49, 264 }
 0x1be   : > { %575 = vbcast.lane.b32.xlu1 %v569_v50, 264  ;;  %571 = vbcast.lane.b32.xlu0 %v569_v50, 256 }
 0x1c2   : > { %586 = vbcast.lane.b32.xlu1 %v580_v51, 264  ;;  %582 = vbcast.lane.b32.xlu0 %v580_v51, 256  ;;  %v5286_v51 = vmov 683565275  }
 0x1c6   : > { %597 = vbcast.lane.b32.xlu1 %v591_v52, 264  ;;  %593 = vbcast.lane.b32.xlu0 %v591_v52, 256 }
 0x1ca   : > { %608 = vbcast.lane.b32.xlu1 %v602_v53, 264  ;;  %604 = vbcast.lane.b32.xlu0 %v602_v53, 256 }
 0x1ce   : > { %619 = vbcast.lane.b32.xlu1 %v613_v54, 264  ;;  %615 = vbcast.lane.b32.xlu0 %v613_v54, 256 }
 0x1d2   : > { %630 = vbcast.lane.b32.xlu1 %v624_v55, 264  ;;  %626 = vbcast.lane.b32.xlu0 %v624_v55, 256  ;;  %v5287_v55 = vmov 2475754826  }
 0x1d6   : > { %729 = vbcast.lane.b32.xlu1 %v5606_v26, 264  ;;  %725 = vbcast.lane.b32.xlu0 %v5606_v26, 256 }
 0x1da   : > { %740 = vbcast.lane.b32.xlu1 %v5608_v27, 264  ;;  %736 = vbcast.lane.b32.xlu0 %v5608_v27, 256 }
 0x1de   : > { %751 = vbcast.lane.b32.xlu1 %v5610_v28, 264  ;;  %747 = vbcast.lane.b32.xlu0 %v5610_v28, 256 }
 0x1e2   : > { %762 = vbcast.lane.b32.xlu1 %v5613_v29, 264  ;;  %758 = vbcast.lane.b32.xlu0 %v5613_v29, 256 }
 0x1e6   : > { %773 = vbcast.lane.b32.xlu1 %v5616_v30, 264  ;;  %769 = vbcast.lane.b32.xlu0 %v5616_v30, 256 }
 0x1ea   : > { %784 = vbcast.lane.b32.xlu1 %v5619_v31, 264  ;;  %780 = vbcast.lane.b32.xlu0 %v5619_v31, 256 }
 0x1ec   : > { %v642_v56 = vpop.permute.xlu1 %641  ;;  %v638_v57 = vpop.permute.xlu0 %637 }
 0x1ee   : > { %795 = vbcast.lane.b32.xlu1 %v5622_v32, 264  ;;  %791 = vbcast.lane.b32.xlu0 %v5622_v32, 256 }
 0x1f0   : > { %v653_v58 = vpop.permute.xlu1 %652  ;;  %v649_v59 = vpop.permute.xlu0 %648 }
 0x1f2   : > { %806 = vbcast.lane.b32.xlu1 %v5625_v34, 264  ;;  %802 = vbcast.lane.b32.xlu0 %v5625_v34, 256 }
 0x1f4   : > { %v5670_v60 = vpop.permute.xlu1 %663  ;;  %v5672_v61 = vpop.permute.xlu0 %659 }
 0x1f6   : > { %894 = vbcast.lane.b32.xlu1 %v5628_v35, 264  ;;  %890 = vbcast.lane.b32.xlu0 %v5628_v35, 256 }
 0x1f8   : > { %v5676_v62 = vpop.permute.xlu1 %674  ;;  %v5678_v63 = vpop.permute.xlu0 %670 }
 0x1fc   : > { %v5680_v0 = vpop.permute.xlu1 %685  ;;  %v5682_v1 = vpop.permute.xlu0 %681 }
 0x200   : > { %v5684_v2 = vpop.permute.xlu1 %696  ;;  %v5686_v3 = vpop.permute.xlu0 %692 }
 0x204   : > { %v5688_v4 = vpop.permute.xlu1 %707  ;;  %v5690_v5 = vpop.permute.xlu0 %703 }
 0x208   : > { %v5695_v7 = vpop.permute.xlu1 %718  ;;  %v5697_v8 = vpop.permute.xlu0 %714 }
 0x20c   : > { %v818_v11 = vpop.permute.xlu1 %817  ;;  %v814_v12 = vpop.permute.xlu0 %813 }
 0x20d   : > { %v915_v10 = vsel %vm543_vm1, %v642_v56, %v818_v11  ;;  %v914_v14 = vsel %vm543_vm1, %v638_v57, %v814_v12  ;;  %v5288_v57 = vmov 2131351028   ;;  %v5290_v12 = vmov 920167782  }
 0x20e   : > { %v953_v15 = vmul.f32 %v5703_v9, %v915_v10  ;;  %v952_v16 = vmul.f32 %v5703_v9, %v914_v14 }
 0x210   : > { %v5717_v17 = vadd.f32 %v5708_v13, %v953_v15  ;;  %v5720_v18 = vadd.f32 %v5708_v13, %v952_v16  ;;  %v829_v19 = vpop.permute.xlu1 %828  ;;  %v825_v30 = vpop.permute.xlu0 %824 }
 0x211   : > { %v917_v20 = vsel %vm543_vm1, %v653_v58, %v829_v19  ;;  %v916_v35 = vsel %vm543_vm1, %v649_v59, %v825_v30  ;;  %v5289_v59 = vmov 2102212464  }
 0x212   : > { %v2774_v21 = vand.u32 2147483647, %v5717_v17  ;;  %v2777_v22 = vand.u32 2139095040, %v5717_v17  ;;  %v2670_v23 = vand.u32 2147483647, %v5720_v18  ;;  %v2673_v24 = vand.u32 2139095040, %v5720_v18 }
 0x213   : > { %v955_v26 = vmul.f32 %v5703_v9, %v917_v20  ;;  %v5740_v45 = vmul.f32 %v5703_v9, %v916_v35  ;;  %vm2776_vm15 = vcmp.lt.s32.totalorder %v5717_v17, 0  ;;  %vm2672_vm0 = vcmp.lt.s32.totalorder %v5720_v18, 0 }
 0x214   : > { %v2778_v25 = vshrl.u32 %v2777_v22, 23  ;;  %v2781_v27 = vand.u32 8388607, %v2774_v21  ;;  %v2674_v28 = vshrl.u32 %v2673_v24, 23  ;;  %v2677_v29 = vand.u32 8388607, %v2670_v23 }
 0x215   : > { %v5734_v32 = vadd.f32 %v5708_v13, %v955_v26  ;;  %v5291_v22 = vmov 1326507024  }
 0x216   : > { %v4606_v31 = vadd.s32 4294967169, %v2778_v25  ;;  %v4602_v33 = vadd.s32 4294967169, %v2674_v28  ;;  %v2782_v36 = vor.u32 8388608, %v2781_v27  ;;  %v2678_v37 = vor.u32 8388608, %v2677_v29 }
 0x217   : > { %v2985_v39 = vand.u32 2139095040, %v5734_v32  ;;  %v2982_v49 = vand.u32 2147483647, %v5734_v32 }
 0x218   : > { %v2784_v34 = vadd.s32 1, %v4606_v31  ;;  %v2680_v38 = vadd.s32 1, %v4602_v33  ;;  %v5742_v46 = vshll.u32 %v2782_v36, 8  ;;  %v5746_v48 = vshll.u32 %v2678_v37, 8 }
 0x219   : > { %v2986_v41 = vshrl.u32 %v2985_v39, 23 }
 0x21a   : > { %vm2785_vm2 = vcmp.gt.s32.totalorder %v2784_v34, 0  ;;  %vm2681_vm3 = vcmp.gt.s32.totalorder %v2680_v38, 0 }
 0x21b   : > { %v2786_v40 = vsel %vm2785_vm2, %v2784_v34, 0  ;;  %v2682_v44 = vsel %vm2681_vm3, %v2680_v38, 0  ;;  %v5750_v54 = vadd.s32 4294967169, %v2986_v41 }
 0x21c   : > { %v2787_v42 = vshrl.u32 %v2786_v40, 5  ;;  %v2788_v43 = vand.u32 31, %v2786_v40  ;;  %v5744_v47 = vshrl.u32 %v2682_v44, 5  ;;  %v2684_v53 = vand.u32 31, %v2682_v44 }
 0x21e   : > { %v2789_v50 = vsub.s32 32, %v2788_v43  ;;  %v2791_v52 = vshll.u32 %v5286_v51, %v2788_v43  ;;  %v2794_v56 = vshll.u32 %v5287_v55, %v2788_v43  ;;  %v2797_v58 = vshll.u32 %v5288_v57, %v2788_v43 }
 0x21f   : > { %v2800_v11 = vshll.u32 %v5289_v59, %v2788_v43  ;;  %v2803_v10 = vshll.u32 %v5290_v12, %v2788_v43  ;;  %vm2806_vm4 = vcmp.lt.s32.totalorder %v2787_v42, 1  ;;  %vm2807_vm5 = vcmp.lt.s32.totalorder %v2787_v42, 2 }
 0x220   : > { %v2792_v14 = vshrl.u32 %v5287_v55, %v2789_v50  ;;  %v2795_v15 = vshrl.u32 %v5288_v57, %v2789_v50  ;;  %v2798_v16 = vshrl.u32 %v5289_v59, %v2789_v50  ;;  %v2790_v19 = vshrl.u32 %v5286_v51, %v2789_v50 }
 0x221   : > { %v2801_v20 = vshrl.u32 %v5290_v12, %v2789_v50  ;;  %v2804_v24 = vshrl.u32 %v5291_v22, %v2789_v50  ;;  %v2685_v28 = vsub.s32 32, %v2684_v53  ;;  %vm2808_vm6 = vcmp.lt.s32.totalorder %v2787_v42, 3 }
 0x222   : > { %v2793_v25 = vor.u32 %v2792_v14, %v2791_v52  ;;  %v2796_v26 = vor.u32 %v2795_v15, %v2794_v56  ;;  %v2799_v27 = vor.u32 %v2798_v16, %v2797_v58  ;;  %vm2809_vm7 = vcmp.lt.s32.totalorder %v2787_v42, 4 }
 0x223   : > { %v2802_v29 = vor.u32 %v2801_v20, %v2800_v11  ;;  %v2805_v30 = vor.u32 %v2804_v24, %v2803_v10  ;;  %v2687_v39 = vshll.u32 %v5286_v51, %v2684_v53  ;;  %v2688_v43 = vshrl.u32 %v5287_v55, %v2685_v28 }
 0x224   : > { %v2810_v31 = vsel %vm2806_vm4, %v2790_v19, %v2793_v25  ;;  %v2811_v33 = vsel %vm2809_vm7, %v2799_v27, 2102212464  ;;  %v2814_v34 = vsel %vm2806_vm4, %v2793_v25, %v2796_v26  ;;  %v2818_v35 = vsel %vm2806_vm4, %v2796_v26, %v2799_v27 }
 0x225   : > { %v2812_v36 = vsel %vm2808_vm6, %v2796_v26, %v2811_v33  ;;  %v2815_v37 = vsel %vm2809_vm7, %v2802_v29, 920167782  ;;  %v2819_v38 = vsel %vm2809_vm7, %v2805_v30, 1326507024  ;;  %v2690_v44 = vshll.u32 %v5287_v55, %v2684_v53 }
 0x226   : > { %v2816_v40 = vsel %vm2808_vm6, %v2799_v27, %v2815_v37  ;;  %v2820_v41 = vsel %vm2808_vm6, %v2802_v29, %v2819_v38  ;;  %v2813_v50 = vsel %vm2807_vm5, %v2810_v31, %v2812_v36  ;;  %v2691_v58 = vshrl.u32 %v5288_v57, %v2685_v28 }
 0x227   : > { %v2817_v52 = vsel %vm2807_vm5, %v2814_v34, %v2816_v40  ;;  %v2821_v56 = vsel %vm2807_vm5, %v2818_v35, %v2820_v41  ;;  %v2689_v16 = vor.u32 %v2688_v43, %v2687_v39  ;;  %v2693_v20 = vshll.u32 %v5288_v57, %v2684_v53 }
 0x228   : > { %v5773_v11 = vmul.u32.u64.low %v5742_v46, %v2821_v56  ;;  %v5774_v10 = vmul.u32.u64.high %v5742_v46, %v2821_v56, %v5773_v11  ;;  %v5777_v14 = vmul.u32.u64.low %v5742_v46, %v2817_v52  ;;  %v5778_v15 = vmul.u32.u64.high %v5742_v46, %v2817_v52, %v5777_v14 }
 0x229   : > { %v2692_v19 = vor.u32 %v2691_v58, %v2690_v44  ;;  %v2694_v24 = vshrl.u32 %v5289_v59, %v2685_v28  ;;  %v2686_v25 = vshrl.u32 %v5286_v51, %v2685_v28  ;;  %v2696_v42 = vshll.u32 %v5289_v59, %v2684_v53 }
 0x22a   : > { %v2697_v26 = vshrl.u32 %v5290_v12, %v2685_v28  ;;  %v2700_v27 = vshrl.u32 %v5291_v22, %v2685_v28  ;;  %v2829_v29 = vmul.u32 %v5742_v46, %v2813_v50  ;;  %v2699_v31 = vshll.u32 %v5290_v12, %v2684_v53 }
 0x22b   : > { %v2695_v30 = vor.u32 %v2694_v24, %v2693_v20  ;;  %vm2702_vm8 = vcmp.lt.s32.totalorder %v5744_v47, 1  ;;  %vm2831_vm9 = vc.u32 %v5774_v10, %v5777_v14  ;;  %v2832_v33 = vadd.s32 1, %v5778_v15  ;;  %v840_v24 = vpop.permute.xlu1 %839 }
 0x22c   : > { %v2698_v34 = vor.u32 %v2697_v26, %v2696_v42  ;;  %vm2703_vm10 = vcmp.lt.s32.totalorder %v5744_v47, 2  ;;  %v2701_v35 = vor.u32 %v2700_v27, %v2699_v31  ;;  %vm2704_vm11 = vcmp.lt.s32.totalorder %v5744_v47, 3 }
 0x22d   : > { %vm2705_vm12 = vcmp.lt.s32.totalorder %v5744_v47, 4  ;;  %v2710_v28 = vsel %vm2702_vm8, %v2689_v16, %v2692_v19  ;;  %v2833_v46 = vsel %vm2831_vm9, %v2832_v33, %v5778_v15  ;;  %v2714_v53 = vsel %vm2702_vm8, %v2692_v19, %v2695_v30 }
 0x22e   : > { %v2707_v36 = vsel %vm2705_vm12, %v2695_v30, 2102212464  ;;  %v2711_v37 = vsel %vm2705_vm12, %v2698_v34, 920167782  ;;  %v2834_v38 = vadd.s32 %v2833_v46, %v2829_v29  ;;  %v2706_v39 = vsel %vm2702_vm8, %v2686_v25, %v2689_v16 }
 0x22f   : > { %v2712_v40 = vsel %vm2704_vm11, %v2695_v30, %v2711_v37  ;;  %v2715_v41 = vsel %vm2705_vm12, %v2701_v35, 1326507024  ;;  %v2708_v43 = vsel %vm2704_vm11, %v2692_v19, %v2707_v36  ;;  %v2992_v52 = vadd.s32 1, %v5750_v54 }
 0x230   : > { %v2713_v44 = vsel %vm2703_vm10, %v2710_v28, %v2712_v40  ;;  %v2716_v50 = vsel %vm2704_vm11, %v2698_v34, %v2715_v41  ;;  %v2835_v56 = vadd.s32 536870912, %v2834_v38  ;;  %v2989_v19 = vand.u32 8388607, %v2982_v49 }
 0x231   : > { %v2717_v58 = vsel %vm2703_vm10, %v2714_v53, %v2716_v50  ;;  %v5801_v11 = vmul.u32.u64.low %v5746_v48, %v2713_v44  ;;  %v5802_v15 = vmul.u32.u64.high %v5746_v48, %v2713_v44, %v5801_v11  ;;  %vm2993_vm13 = vcmp.gt.s32.totalorder %v2992_v52, 0 }
 0x232   : > { %v5806_v16 = vmul.u32.u64.low %v5746_v48, %v2717_v58  ;;  %v5807_v20 = vmul.u32.u64.high %v5746_v48, %v2717_v58, %v5806_v16  ;;  %v2836_v25 = vshrl.u32 %v2835_v56, 30  ;;  %v2709_v54 = vsel %vm2703_vm10, %v2706_v39, %v2708_v43 }
 0x233   : > { %v2994_v42 = vsel %vm2993_vm13, %v2992_v52, 0  ;;  %v2728_v29 = vadd.s32 1, %v5802_v15  ;;  %v5816_v30 = vadd.f32 %v5708_v13, %v5740_v45  ;;  %v919_v31 = vsel %vm543_vm1, %v5670_v60, %v840_v24 }
 0x234   : > { %v2996_v26 = vand.u32 31, %v2994_v42  ;;  %v2837_v27 = vshll.u32 %v2836_v25, 30  ;;  %v2725_v33 = vmul.u32 %v5746_v48, %v2709_v54  ;;  %vm2727_vm14 = vc.u32 %v5807_v20, %v5801_v11 }
 0x235   : > { %v2990_v47 = vor.u32 8388608, %v2989_v19  ;;  %v2729_v28 = vsel %vm2727_vm14, %v2728_v29, %v5802_v15  ;;  %v2830_v45 = vadd.s32 %v5777_v14, %v5774_v10  ;;  %v2878_v60 = vand.u32 2147483647, %v5816_v30 }
 0x236   : > { %v2997_v34 = vsub.s32 32, %v2996_v26  ;;  %v5824_v35 = vsub.s32 %v2834_v38, %v2837_v27  ;;  %v2730_v46 = vadd.s32 %v2729_v28, %v2725_v33  ;;  %v5832_v48 = vmul.f32 %v5703_v9, %v919_v31 }
 0x237   : > { %v5835_v39 = vshll.u32 %v2990_v47, 8  ;;  %v2881_v38 = vand.u32 2139095040, %v5816_v30  ;;  %v5839_v41 = vshrl.u32 %v2994_v42, 5  ;;  %v2860_v43 = vsub.s32 4, %v2836_v25 }
 0x238   : > { %v2840_v36 = vsub.s32 0, %v5824_v35  ;;  %v2731_v37 = vadd.s32 536870912, %v2730_v46  ;;  %v3000_v53 = vshrl.u32 %v5287_v55, %v2997_v34  ;;  %v3003_v10 = vshrl.u32 %v5288_v57, %v2997_v34 }
 0x239   : > { %v3006_v14 = vshrl.u32 %v5289_v59, %v2997_v34  ;;  %v2999_v50 = vshll.u32 %v5286_v51, %v2996_v26  ;;  %v3009_v52 = vshrl.u32 %v5290_v12, %v2997_v34  ;;  %v3002_v58 = vshll.u32 %v5287_v55, %v2996_v26 }
 0x23a   : > { %v4607_v40 = vmin.u32 %v2840_v36, %v5824_v35  ;;  %v2732_v44 = vshrl.u32 %v2731_v37, 30  ;;  %v3005_v15 = vshll.u32 %v5288_v57, %v2996_v26  ;;  %v3012_v16 = vshrl.u32 %v5291_v22, %v2997_v34 }
 0x23b   : > { %v3001_v24 = vor.u32 %v3000_v53, %v2999_v50  ;;  %v3008_v54 = vshll.u32 %v5289_v59, %v2996_v26  ;;  %v2882_v42 = vshrl.u32 %v2881_v38, 23  ;;  %v3004_v29 = vor.u32 %v3003_v10, %v3002_v58 }
 0x23c   : > { %v2842_v56 = vclz %v4607_v40  ;;  %v2733_v19 = vshll.u32 %v2732_v44, 30  ;;  %v3007_v31 = vor.u32 %v3006_v14, %v3005_v15  ;;  %v3011_v33 = vshll.u32 %v5290_v12, %v2996_v26 }
 0x23d   : > { %v5852_v47 = vsel %vm2776_vm15, %v2860_v43, %v2836_v25  ;;  %v2998_v36 = vshrl.u32 %v5286_v51, %v2997_v34  ;;  %v3010_v37 = vor.u32 %v3009_v52, %v3008_v54  ;;  %v2756_v53 = vsub.s32 4, %v2732_v44 }
 0x23e   : > { %v4608_v27 = vadd.s32 4294967294, %v2842_v56  ;;  %v5855_v28 = vsub.s32 %v2730_v46, %v2733_v19  ;;  %v3013_v40 = vor.u32 %v3012_v16, %v3011_v33  ;;  %vm3014_vm3 = vcmp.lt.s32.totalorder %v5839_v41, 1 }
 0x23f   : > { %vm5861_vm4 = vcmp.le.f32.partialorder %v2774_v21, 0.7853982  ;;  %vm3016_vm5 = vcmp.lt.s32.totalorder %v5839_v41, 3  ;;  %vm3017_vm6 = vcmp.lt.s32.totalorder %v5839_v41, 4  ;;  %vm5870_vm7 = vcmp.le.f32.partialorder %v2670_v23, 0.7853982 }
 0x240   : > { %vm4609_vm2 = vcmp.lt.s32.totalorder %v4608_v27, 0  ;;  %v2736_v38 = vsub.s32 0, %v5855_v28  ;;  %v3019_v14 = vsel %vm3017_vm6, %v3007_v31, 2102212464  ;;  %v3022_v21 = vsel %vm3014_vm3, %v3001_v24, %v3004_v29 }
 0x241   : > { %v2845_v25 = vsel %vm4609_vm2, 0, %v4608_v27  ;;  %v3023_v52 = vsel %vm3017_vm6, %v3010_v37, 920167782  ;;  %v3026_v56 = vsel %vm3014_vm3, %v3004_v29, %v3007_v31  ;;  %v3027_v16 = vsel %vm3017_vm6, %v3013_v40, 1326507024 }
 0x242   : > { %v2846_v34 = vsub.s32 32, %v2845_v25  ;;  %v2850_v46 = vsub.s32 4294967266, %v2845_v25  ;;  %v2847_v43 = vshll.u32 %v5824_v35, %v2845_v25  ;;  %v4603_v50 = vmin.u32 %v2736_v38, %v5855_v28 }
 0x243   : > { %v3024_v23 = vsel %vm3016_vm5, %v3007_v31, %v3023_v52  ;;  %vm3015_vm8 = vcmp.lt.s32.totalorder %v5839_v41, 2  ;;  %v3018_v54 = vsel %vm3014_vm3, %v2998_v36, %v3001_v24  ;;  %v3020_v35 = vsel %vm3016_vm5, %v3004_v29, %v3019_v14 }
 0x244   : > { %v2848_v58 = vshrl.u32 %v2830_v45, %v2846_v34  ;;  %v2851_v15 = vadd.s32 127, %v2850_v46  ;;  %v2738_v19 = vclz %v4603_v50  ;;  %v3025_v25 = vsel %vm3015_vm8, %v3022_v21, %v3024_v23 }
 0x245   : > { %v3028_v45 = vsel %vm3016_vm5, %v3010_v37, %v3027_v16  ;;  %v5890_v31 = vmul.u32.u64.low %v5835_v39, %v3025_v25  ;;  %v5891_v40 = vmul.u32.u64.high %v5835_v39, %v3025_v25, %v5890_v31  ;;  %v2757_v50 = vsel %vm2672_vm0, %v2756_v53, %v2732_v44 }
 0x246   : > { %v2849_v27 = vor.u32 %v2848_v58, %v2847_v43  ;;  %v2852_v33 = vshll.u32 %v2851_v15, 23  ;;  %v4604_v38 = vadd.s32 4294967294, %v2738_v19  ;;  %v3029_v34 = vsel %vm3015_vm8, %v3026_v56, %v3028_v45 }
 0x247   : > { %v5896_v24 = vmul.u32.u64.low %v5835_v39, %v3029_v34  ;;  %v5897_v36 = vmul.u32.u64.high %v5835_v39, %v3029_v34, %v5896_v24  ;;  %v2726_v29 = vadd.s32 %v5801_v11, %v5807_v20  ;;  %v3021_v41 = vsel %vm3015_vm8, %v3018_v54, %v3020_v35 }
 0x248   : > { %v2853_v46 = vor.u32 4788187, %v2852_v33  ;;  %vm4605_vm9 = vcmp.lt.s32.totalorder %v4604_v38, 0  ;;  %v4610_v37 = vadd.s32 4294967169, %v2882_v42  ;;  %v2856_v21 = vcvt.s32.f32 %v2849_v27 }
 0x249   : > { %v2863_v43 = vsel %vm5861_vm4, 0, %v5852_v47  ;;  %v2741_v52 = vsel %vm4605_vm9, 0, %v4604_v38  ;;  %v2759_v44 = vsel %vm5870_vm7, 0, %v2757_v50  ;;  %v3040_v53 = vadd.s32 1, %v5891_v40 }
 0x24a   : > { %v2854_v14 = vand.u32 2147483647, %v2853_v46  ;;  %v2742_v56 = vsub.s32 32, %v2741_v52  ;;  %v2746_v58 = vsub.s32 4294967266, %v2741_v52  ;;  %v3037_v11 = vmul.u32 %v5835_v39, %v3021_v41 }
 0x24b   : > { %vm3039_vm10 = vc.u32 %v5897_v36, %v5890_v31  ;;  %v2888_v20 = vadd.s32 1, %v4610_v37  ;;  %v2743_v42 = vshll.u32 %v5855_v28, %v2741_v52  ;;  %v2867_v54 = vadd.s32 3, %v2863_v43 }
 0x24c   : > { %v2857_v15 = vmul.f32 %v2856_v21, %v2854_v14  ;;  %v2744_v23 = vshrl.u32 %v2726_v29, %v2742_v56  ;;  %v2747_v16 = vadd.s32 127, %v2746_v58  ;;  %v3041_v47 = vsel %vm3039_vm10, %v3040_v53, %v5891_v40 }
 0x24d   : > { %v3042_v35 = vadd.s32 %v3041_v47, %v3037_v11  ;;  %vm2889_vm11 = vcmp.gt.s32.totalorder %v2888_v20, 0  ;;  %v2763_v25 = vadd.s32 3, %v2759_v44  ;;  %v2885_v34 = vand.u32 8388607, %v2878_v60 }
 0x24e   : > { %v2858_v19 = vxor.u32 2147483648, %v2857_v15  ;;  %v2745_v27 = vor.u32 %v2744_v23, %v2743_v42  ;;  %v2748_v33 = vshll.u32 %v2747_v16, 23  ;;  %v2890_v45 = vsel %vm2889_vm11, %v2888_v20, 0 }
 0x24f   : > { %v3043_v38 = vadd.s32 536870912, %v3042_v35  ;;  %v2892_v28 = vand.u32 31, %v2890_v45  ;;  %v5918_v50 = vand.u32 3, %v2867_v54  ;;  %vm2984_vm12 = vcmp.lt.s32.totalorder %v5734_v32, 0 }
 0x250   : > { %v2859_v39 = vsel %vm2776_vm15, %v2858_v19, %v2857_v15  ;;  %v2749_v46 = vor.u32 4788187, %v2748_v33  ;;  %v2752_v37 = vcvt.s32.f32 %v2745_v27  ;;  %v5921_v14 = vand.u32 3, %v2763_v25 }
 0x251   : > { %v2862_v40 = vsel %vm5861_vm4, %v5717_v17, %v2859_v39  ;;  %v3044_v24 = vshrl.u32 %v3043_v38, 30  ;;  %v2893_v29 = vsub.s32 32, %v2892_v28  ;;  %v2886_v43 = vor.u32 8388608, %v2885_v34 }
 0x252   : > { %4930 = vcosq.f32 %v2862_v40  ;;  %v2750_v41 = vand.u32 2147483647, %v2749_v46  ;;  %v5926_v26 = vadd.f32 %v5708_v13, %v5832_v48  ;;  %v5929_v58 = vadd.s32 %v5890_v31, %v5897_v36 }
 0x253   : > { %4932 = vsinq.f32 %v2862_v40  ;;  %v3045_v21 = vshll.u32 %v3044_v24, 30  ;;  %v2896_v52 = vshrl.u32 %v5287_v55, %v2893_v29  ;;  %v2899_v44 = vshrl.u32 %v5288_v57, %v2893_v29 }
 0x254   : > { %v2753_v56 = vmul.f32 %v2752_v37, %v2750_v41  ;;  %v2902_v53 = vshrl.u32 %v5289_v59, %v2893_v29  ;;  %vm2873_vm13 = vcmp.eq.s32.totalorder %v5918_v50, 2  ;;  %v5936_v11 = vshrl.u32 %v2890_v45, 5 }
 0x255   : > { %v5934_v15 = vsub.s32 %v3042_v35, %v3045_v21  ;;  %v2895_v20 = vshll.u32 %v5286_v51, %v2892_v28  ;;  %v2905_v42 = vshrl.u32 %v5290_v12, %v2893_v29  ;;  %vm2870_vm14 = vcmp.eq.s32.totalorder %v5918_v50, 0 }
 0x256   : > { %v2754_v48 = vxor.u32 2147483648, %v2753_v56  ;;  %v3068_v23 = vsub.s32 4, %v3044_v24  ;;  %v2898_v31 = vshll.u32 %v5287_v55, %v2892_v28  ;;  %v2901_v36 = vshll.u32 %v5288_v57, %v2892_v28 }
 0x257   : > { %vm2869_vm15 = vcmp.lt.s32.totalorder %v5918_v50, 2  ;;  %v3048_v16 = vsub.s32 0, %v5934_v15  ;;  %v2897_v47 = vor.u32 %v2896_v52, %v2895_v20  ;;  %v2904_v19 = vshll.u32 %v5289_v59, %v2892_v28 }
 0x258   : > { %v5946_v54 = vshll.u32 %v2886_v43, 8  ;;  %vm2866_vm2 = vweird.f32 %v5717_v17  ;;  %v2755_v35 = vsel %vm2672_vm0, %v2754_v48, %v2753_v56  ;;  %v2900_v27 = vor.u32 %v2899_v44, %v2898_v31 }
 0x259   : > { %v2903_v33 = vor.u32 %v2902_v53, %v2901_v36  ;;  %v2908_v25 = vshrl.u32 %v5291_v22, %v2893_v29  ;;  %v2758_v45 = vsel %vm5870_vm7, %v5720_v18, %v2755_v35  ;;  %v4615_v39 = vmin.u32 %v3048_v16, %v5934_v15 }
 0x25a   : > { %v2906_v38 = vor.u32 %v2905_v42, %v2904_v19  ;;  %v2907_v34 = vshll.u32 %v5290_v12, %v2892_v28  ;;  %4934 = vcosq.f32 %v2758_v45  ;;  %v5959_v40 = vsel %vm2984_vm12, %v3068_v23, %v3044_v24 }
 0x25b   : > { %v2894_v46 = vshrl.u32 %v5286_v51, %v2893_v29  ;;  %vm2910_vm0 = vcmp.lt.s32.totalorder %v5936_v11, 1  ;;  %4936 = vsinq.f32 %v2758_v45  ;;  %vm5965_vm3 = vcmp.le.f32.partialorder %v2982_v49, 0.7853982 }
 0x25c   : > { %v4931_v41 = vpop.eup %4930  ;;  %v3050_v37 = vclz %v4615_v39  ;;  %v2909_v21 = vor.u32 %v2908_v25, %v2907_v34  ;;  %vm2911_vm4 = vcmp.lt.s32.totalorder %v5936_v11, 2  ;;  %vm2912_vm5 = vcmp.lt.s32.totalorder %v5936_v11, 3 }
 0x25d   : > { %v4933_v28 = vpop.eup %4932  ;;  %v2874_v24 = vxor.u32 2147483648, %v4931_v41  ;;  %vm2913_vm6 = vcmp.lt.s32.totalorder %v5936_v11, 4  ;;  %v2918_v29 = vsel %vm2910_vm0, %v2897_v47, %v2900_v27  ;;  %v2914_v53 = vsel %vm2910_vm0, %v2894_v46, %v2897_v47 }
 0x25e   : > { %v2871_v43 = vxor.u32 2147483648, %v4933_v28  ;;  %v4616_v52 = vadd.s32 4294967294, %v3050_v37  ;;  %v2915_v49 = vsel %vm2913_vm6, %v2903_v33, 2102212464  ;;  %v2919_v56 = vsel %vm2913_vm6, %v2906_v38, 920167782 }
 0x25f   : > { %v2875_v44 = vsel %vm2873_vm13, %v2874_v24, %v4933_v28  ;;  %v2920_v20 = vsel %vm2912_vm5, %v2903_v33, %v2919_v56  ;;  %v2922_v42 = vsel %vm2910_vm0, %v2900_v27, %v2903_v33  ;;  %v2923_v31 = vsel %vm2913_vm6, %v2909_v21, 1326507024  ;;  %v836_v28 = vpop.permute.xlu0 %835 }
 0x260   : > { %v2872_v48 = vsel %vm2870_vm14, %v4931_v41, %v2871_v43  ;;  %vm4617_vm7 = vcmp.lt.s32.totalorder %v4616_v52, 0  ;;  %v2921_v23 = vsel %vm2911_vm4, %v2918_v29, %v2920_v20  ;;  %vm2765_vm8 = vcmp.lt.s32.totalorder %v5921_v14, 2 }
 0x261   : > { %v2876_v36 = vsel %vm2869_vm15, %v2872_v48, %v2875_v44  ;;  %v3053_v16 = vsel %vm4617_vm7, 0, %v4616_v52  ;;  %v2916_v47 = vsel %vm2912_vm5, %v2900_v27, %v2915_v49  ;;  %v2924_v19 = vsel %vm2912_vm5, %v2906_v38, %v2923_v31 }
 0x262   : > { %v2877_v35 = vsel %vm2866_vm2, nan, %v2876_v36  ;;  %vm2762_vm9 = vweird.f32 %v5720_v18  ;;  %v3054_v33 = vsub.s32 32, %v3053_v16  ;;  %v3055_v25 = vshll.u32 %v5934_v15, %v3053_v16 }
 0x263   : > { %v3058_v45 = vsub.s32 4294967266, %v3053_v16  ;;  %4351 = vst [vmem:[%s5998_s13 + $0x88] sm:$0xff] %v2877_v35  ;;  %v2925_v50 = vsel %vm2911_vm4, %v2922_v42, %v2924_v19  ;;  %v6004_v27 = vmul.u32.u64.low %v5946_v54, %v2921_v23  ;;  %v6005_v39 = vmul.u32.u64.high %v5946_v54, %v2921_v23, %v6004_v27 }
 0x264   : > { %v3193_v17 = vand.u32 2139095040, %v5926_v26  ;;  %v3056_v38 = vshrl.u32 %v5929_v58, %v3054_v33  ;;  %v6011_v15 = vmul.u32.u64.low %v5946_v54, %v2925_v50  ;;  %v6012_v46 = vmul.u32.u64.high %v5946_v54, %v2925_v50, %v6011_v15  ;;  %v4935_v41 = vpop.eup %4934  ;;  %v851_v50 = vpop.permute.xlu1 %850 }
 0x265   : > { %v3059_v34 = vadd.s32 127, %v3058_v45  ;;  %vm2766_vm10 = vcmp.eq.s32.totalorder %v5921_v14, 0  ;;  %vm2769_vm11 = vcmp.eq.s32.totalorder %v5921_v14, 2  ;;  %v3071_v37 = vsel %vm5965_vm3, 0, %v5959_v40  ;;  %v4937_v24 = vpop.eup %4936 }
 0x266   : > { %v3194_v21 = vshrl.u32 %v3193_v17, 23  ;;  %v2770_v29 = vxor.u32 2147483648, %v4935_v41  ;;  %v3057_v43 = vor.u32 %v3056_v38, %v3055_v25  ;;  %v2917_v52 = vsel %vm2911_vm4, %v2914_v53, %v2916_v47 }
 0x267   : > { %v3060_v58 = vshll.u32 %v3059_v34, 23  ;;  %v2767_v49 = vxor.u32 2147483648, %v4937_v24  ;;  %v2936_v56 = vadd.s32 1, %v6005_v39  ;;  %v3190_v44 = vand.u32 2147483647, %v5926_v26 }
 0x268   : > { %v4622_v20 = vadd.s32 4294967169, %v3194_v21  ;;  %v2771_v42 = vsel %vm2769_vm11, %v2770_v29, %v4937_v24  ;;  %v3075_v23 = vadd.s32 3, %v3071_v37  ;;  %v918_v40 = vsel %vm543_vm1, %v5672_v61, %v836_v28 }
 0x269   : > { %v3061_v48 = vor.u32 4788187, %v3060_v58  ;;  %v2768_v31 = vsel %vm2766_vm10, %v4935_v41, %v2767_v49  ;;  %v2933_v11 = vmul.u32 %v5946_v54, %v2917_v52  ;;  %vm2935_vm13 = vc.u32 %v6012_v46, %v6004_v27 }
 0x26a   : > { %v3200_v53 = vadd.s32 1, %v4622_v20  ;;  %v2772_v36 = vsel %vm2765_vm8, %v2768_v31, %v2771_v42  ;;  %v3064_v47 = vcvt.s32.f32 %v3057_v43  ;;  %v2937_v19 = vsel %vm2935_vm13, %v2936_v56, %v6005_v39 }
 0x26b   : > { %v3062_v16 = vand.u32 2147483647, %v3061_v48  ;;  %v2773_v35 = vsel %vm2762_vm9, nan, %v2772_v36  ;;  %v2938_v61 = vadd.s32 %v2937_v19, %v2933_v11  ;;  %v3197_v33 = vand.u32 8388607, %v3190_v44 }
 0x26c   : > { %vm3201_vm14 = vcmp.gt.s32.totalorder %v3200_v53, 0  ;;  %4350 = vst [vmem:[%s5998_s13 + $0x80] sm:$0xff] %v2773_v35  ;;  %v956_v45 = vmul.f32 %v5703_v9, %v918_v40  ;;  %v6040_v34 = vand.u32 3, %v3075_v23  ;;  %vm2880_vm15 = vcmp.lt.s32.totalorder %v5816_v30, 0 }
 0x26d   : > { %v3065_v54 = vmul.f32 %v3064_v47, %v3062_v16  ;;  %v3202_v25 = vsel %vm3201_vm14, %v3200_v53, 0  ;;  %v2939_v14 = vadd.s32 536870912, %v2938_v61  ;;  %v3198_v39 = vor.u32 8388608, %v3197_v33 }
 0x26e   : > { %v3204_v17 = vand.u32 31, %v3202_v25  ;;  %v921_v41 = vsel %vm543_vm1, %v5676_v62, %v851_v50  ;;  %v6048_v21 = vshrl.u32 %v3202_v25, 5  ;;  %v6052_v24 = vadd.f32 %v5708_v13, %v956_v45 }
 0x26f   : > { %v3066_v38 = vxor.u32 2147483648, %v3065_v54  ;;  %v2940_v18 = vshrl.u32 %v2939_v14, 30  ;;  %v2934_v47 = vadd.s32 %v6004_v27, %v6012_v46  ;;  %v6072_v19 = vshll.u32 %v3198_v39, 8 }
 0x270   : > { %v3205_v15 = vsub.s32 32, %v3204_v17  ;;  %v3207_v28 = vshll.u32 %v5286_v51, %v3204_v17  ;;  %v3210_v58 = vshll.u32 %v5287_v55, %v3204_v17  ;;  %v3213_v52 = vshll.u32 %v5288_v57, %v3204_v17 }
 0x271   : > { %v3067_v37 = vsel %vm2984_vm12, %v3066_v38, %v3065_v54  ;;  %v2941_v43 = vshll.u32 %v2940_v18, 30  ;;  %v3216_v42 = vshll.u32 %v5289_v59, %v3204_v17  ;;  %v2964_v48 = vsub.s32 4, %v2940_v18 }
 0x272   : > { %v3070_v29 = vsel %vm5965_vm3, %v5734_v32, %v3067_v37  ;;  %v3208_v62 = vshrl.u32 %v5287_v55, %v3205_v15  ;;  %v3211_v49 = vshrl.u32 %v5288_v57, %v3205_v15  ;;  %v3214_v56 = vshrl.u32 %v5289_v59, %v3205_v15 }
 0x273   : > { %4938 = vcosq.f32 %v3070_v29  ;;  %v6062_v20 = vsub.s32 %v2938_v61, %v2941_v43  ;;  %v3217_v10 = vshrl.u32 %v5290_v12, %v3205_v15  ;;  %v3219_v31 = vshll.u32 %v5290_v12, %v3204_v17 }
 0x274   : > { %4940 = vsinq.f32 %v3070_v29  ;;  %v3209_v23 = vor.u32 %v3208_v62, %v3207_v28  ;;  %v3212_v40 = vor.u32 %v3211_v49, %v3210_v58  ;;  %v3215_v53 = vor.u32 %v3214_v56, %v3213_v52 }
 0x275   : > { %v2944_v11 = vsub.s32 0, %v6062_v20  ;;  %v3218_v36 = vor.u32 %v3217_v10, %v3216_v42  ;;  %v3220_v16 = vshrl.u32 %v5291_v22, %v3205_v15  ;;  %vm3081_vm12 = vcmp.eq.s32.totalorder %v6040_v34, 2 }
 0x276   : > { %v3089_v35 = vand.u32 2139095040, %v6052_v24  ;;  %v6076_v61 = vmul.f32 %v5703_v9, %v921_v41  ;;  %vm3078_vm2 = vcmp.eq.s32.totalorder %v6040_v34, 0  ;;  %vm6081_vm0 = vcmp.le.f32.partialorder %v2878_v60, 0.7853982 }
 0x277   : > { %v4611_v54 = vmin.u32 %v2944_v11, %v6062_v20  ;;  %v3221_v25 = vor.u32 %v3220_v16, %v3219_v31  ;;  %vm3222_vm3 = vcmp.lt.s32.totalorder %v6048_v21, 1  ;;  %vm3225_vm4 = vcmp.lt.s32.totalorder %v6048_v21, 4 }
 0x278   : > { %vm3077_vm5 = vcmp.lt.s32.totalorder %v6040_v34, 2  ;;  %v2965_v9 = vsel %vm2880_vm15, %v2964_v48, %v2940_v18  ;;  %v3206_v27 = vshrl.u32 %v5286_v51, %v3205_v15  ;;  %v3230_v60 = vsel %vm3222_vm3, %v3209_v23, %v3212_v40 }
 0x279   : > { %v3231_v46 = vsel %vm3225_vm4, %v3218_v36, 920167782  ;;  %vm3074_vm6 = vweird.f32 %v5734_v32  ;;  %v2946_v45 = vclz %v4611_v54  ;;  %vm3224_vm7 = vcmp.lt.s32.totalorder %v6048_v21, 3 }
 0x27a   : > { %v3227_v50 = vsel %vm3225_vm4, %v3215_v53, 2102212464  ;;  %v3234_v14 = vsel %vm3222_vm3, %v3212_v40, %v3215_v53  ;;  %vm3223_vm8 = vcmp.lt.s32.totalorder %v6048_v21, 2  ;;  %v3232_v17 = vsel %vm3224_vm7, %v3215_v53, %v3231_v46 }
 0x27b   : > { %v3235_v38 = vsel %vm3225_vm4, %v3221_v25, 1326507024  ;;  %v3090_v18 = vshrl.u32 %v3089_v35, 23  ;;  %v4612_v39 = vadd.s32 4294967294, %v2946_v45  ;;  %v3226_v15 = vsel %vm3222_vm3, %v3206_v27, %v3209_v23 }
 0x27c   : > { %v3233_v41 = vsel %vm3223_vm8, %v3230_v60, %v3232_v17  ;;  %v3236_v37 = vsel %vm3224_vm7, %v3218_v36, %v3235_v38  ;;  %v3228_v29 = vsel %vm3224_vm7, %v3212_v40, %v3227_v50  ;;  %v3086_v23 = vand.u32 2147483647, %v6052_v24 }
 0x27d   : > { %v4939_v28 = vpop.eup %4938  ;;  %v3237_v43 = vsel %vm3223_vm8, %v3234_v14, %v3236_v37  ;;  %v6106_v58 = vmul.u32.u64.low %v6072_v19, %v3233_v41  ;;  %v6107_v52 = vmul.u32.u64.high %v6072_v19, %v3233_v41, %v6106_v58  ;;  %vm4613_vm9 = vcmp.lt.s32.totalorder %v4612_v39, 0 }
 0x27e   : > { %v4941_v62 = vpop.eup %4940  ;;  %v3082_v49 = vxor.u32 2147483648, %v4939_v28  ;;  %v6111_v56 = vmul.u32.u64.low %v6072_v19, %v3237_v43  ;;  %v6112_v42 = vmul.u32.u64.high %v6072_v19, %v3237_v43, %v6111_v56  ;;  %v2949_v48 = vsel %vm4613_vm9, 0, %v4612_v39 }
 0x27f   : > { %v3079_v10 = vxor.u32 2147483648, %v4941_v62  ;;  %v4618_v40 = vadd.s32 4294967169, %v3090_v18  ;;  %v2950_v11 = vsub.s32 32, %v2949_v48  ;;  %v2954_v53 = vsub.s32 4294967266, %v2949_v48 }
 0x280   : > { %v3083_v31 = vsel %vm3081_vm12, %v3082_v49, %v4941_v62  ;;  %v3229_v36 = vsel %vm3223_vm8, %v3226_v15, %v3228_v29  ;;  %v2967_v35 = vsel %vm6081_vm0, 0, %v2965_v9  ;;  %v3248_v54 = vadd.s32 1, %v6107_v52 }
 0x281   : > { %v3080_v16 = vsel %vm3078_vm2, %v4939_v28, %v3079_v10  ;;  %v3096_v25 = vadd.s32 1, %v4618_v40  ;;  %v2951_v60 = vshll.u32 %v6062_v20, %v2949_v48  ;;  %v2952_v46 = vshrl.u32 %v2934_v47, %v2950_v11 }
 0x282   : > { %v3084_v27 = vsel %vm3077_vm5, %v3080_v16, %v3083_v31  ;;  %v2955_v45 = vadd.s32 127, %v2954_v53  ;;  %v3245_v50 = vmul.u32 %v6072_v19, %v3229_v36  ;;  %vm3247_vm10 = vc.u32 %v6112_v42, %v6106_v58 }
 0x283   : > { %v3085_v21 = vsel %vm3074_vm6, nan, %v3084_v27  ;;  %vm3097_vm11 = vcmp.gt.s32.totalorder %v3096_v25, 0  ;;  %v2953_v9 = vor.u32 %v2952_v46, %v2951_v60  ;;  %v3249_v17 = vsel %vm3247_vm10, %v3248_v54, %v6107_v52 }
 0x284   : > { %4353 = vst [vmem:[%s5998_s13 + $0x98] sm:$0xff] %v3085_v21  ;;  %v2956_v14 = vshll.u32 %v2955_v45, 23  ;;  %v3098_v34 = vsel %vm3097_vm11, %v3096_v25, 0  ;;  %v3250_v38 = vadd.s32 %v3249_v17, %v3245_v50  ;;  %v2971_v47 = vadd.s32 3, %v2967_v35 }
 0x285   : > { %v3100_v18 = vand.u32 31, %v3098_v34  ;;  %v3093_v32 = vand.u32 8388607, %v3086_v23  ;;  %v2960_v41 = vcvt.s32.f32 %v2953_v9  ;;  %v6136_v37 = vshrl.u32 %v3098_v34, 5 }
 0x286   : > { %v2957_v20 = vor.u32 4788187, %v2956_v14  ;;  %v3251_v39 = vadd.s32 536870912, %v3250_v38  ;;  %v6140_v28 = vadd.f32 %v5708_v13, %v6076_v61  ;;  %v6151_v53 = vand.u32 3, %v2971_v47 }
 0x287   : > { %v3101_v15 = vsub.s32 32, %v3100_v18  ;;  %v3112_v62 = vshll.u32 %v5289_v59, %v3100_v18  ;;  %v3103_v31 = vshll.u32 %v5286_v51, %v3100_v18  ;;  %v3106_v13 = vshll.u32 %v5287_v55, %v3100_v18 }
 0x288   : > { %v2958_v19 = vand.u32 2147483647, %v2957_v20  ;;  %v3252_v29 = vshrl.u32 %v3251_v39, 30  ;;  %v3109_v61 = vshll.u32 %v5288_v57, %v3100_v18  ;;  %v3115_v16 = vshll.u32 %v5290_v12, %v3100_v18 }
 0x289   : > { %v3104_v43 = vshrl.u32 %v5287_v55, %v3101_v15  ;;  %v3107_v52 = vshrl.u32 %v5288_v57, %v3101_v15  ;;  %v3110_v56 = vshrl.u32 %v5289_v59, %v3101_v15  ;;  %v3113_v10 = vshrl.u32 %v5290_v12, %v3101_v15 }
 0x28a   : > { %v2961_v49 = vmul.f32 %v2960_v41, %v2958_v19  ;;  %v3116_v48 = vshrl.u32 %v5291_v22, %v3101_v15  ;;  %v3253_v40 = vshll.u32 %v3252_v29, 30  ;;  %vm3192_vm13 = vcmp.lt.s32.totalorder %v5926_v26, 0 }
 0x28b   : > { %v3114_v36 = vor.u32 %v3113_v10, %v3112_v62  ;;  %v3105_v54 = vor.u32 %v3104_v43, %v3103_v31  ;;  %v3108_v25 = vor.u32 %v3107_v52, %v3106_v13  ;;  %v3111_v27 = vor.u32 %v3110_v56, %v3109_v61 }
 0x28c   : > { %v2962_v11 = vxor.u32 2147483648, %v2961_v49  ;;  %v6155_v35 = vsub.s32 %v3250_v38, %v3253_v40  ;;  %v3094_v46 = vor.u32 8388608, %v3093_v32  ;;  %v3117_v45 = vor.u32 %v3116_v48, %v3115_v16 }
 0x28d   : > { %v3401_v21 = vand.u32 2139095040, %v6140_v28  ;;  %v3102_v14 = vshrl.u32 %v5286_v51, %v3101_v15  ;;  %vm3121_vm14 = vcmp.lt.s32.totalorder %v6136_v37, 4  ;;  %vm3118_vm12 = vcmp.lt.s32.totalorder %v6136_v37, 1 }
 0x28e   : > { %v2963_v60 = vsel %vm2880_vm15, %v2962_v11, %v2961_v49  ;;  %v3256_v9 = vsub.s32 0, %v6155_v35  ;;  %vm3120_vm2 = vcmp.lt.s32.totalorder %v6136_v37, 3  ;;  %v3127_v17 = vsel %vm3121_vm14, %v3114_v36, 920167782 }
 0x28f   : > { %v2966_v50 = vsel %vm6081_vm0, %v5816_v30, %v2963_v60  ;;  %v3123_v38 = vsel %vm3121_vm14, %v3111_v27, 2102212464  ;;  %v3126_v18 = vsel %vm3118_vm12, %v3105_v54, %v3108_v25  ;;  %v3276_v20 = vsub.s32 4, %v3252_v29 }
 0x290   : > { %4942 = vcosq.f32 %v2966_v50  ;;  %v4623_v34 = vmin.u32 %v3256_v9, %v6155_v35  ;;  %v3128_v33 = vsel %vm3120_vm2, %v3111_v27, %v3127_v17  ;;  %v3130_v47 = vsel %vm3118_vm12, %v3108_v25, %v3111_v27 }
 0x291   : > { %4944 = vsinq.f32 %v2966_v50  ;;  %v3131_v39 = vsel %vm3121_vm14, %v3117_v45, 1326507024  ;;  %vm6173_vm15 = vcmp.le.f32.partialorder %v3190_v44, 0.7853982  ;;  %vm3119_vm0 = vcmp.lt.s32.totalorder %v6136_v37, 2 }
 0x292   : > { %v3258_v15 = vclz %v4623_v34  ;;  %v3134_v19 = vshll.u32 %v3094_v46, 8  ;;  %v3122_v41 = vsel %vm3118_vm12, %v3102_v14, %v3105_v54  ;;  %v3124_v43 = vsel %vm3120_vm2, %v3108_v25, %v3123_v38 }
 0x293   : > { %v3129_v52 = vsel %vm3119_vm0, %v3126_v18, %v3128_v33  ;;  %v3132_v62 = vsel %vm3120_vm2, %v3114_v36, %v3131_v39  ;;  %vm2973_vm3 = vcmp.lt.s32.totalorder %v6151_v53, 2  ;;  %v3277_v48 = vsel %vm3192_vm13, %v3276_v20, %v3252_v29 }
 0x294   : > { %v4624_v49 = vadd.s32 4294967294, %v3258_v15  ;;  %v3133_v44 = vsel %vm3119_vm0, %v3130_v47, %v3132_v62  ;;  %v6186_v56 = vmul.u32.u64.low %v3134_v19, %v3129_v52  ;;  %v6187_v10 = vmul.u32.u64.high %v3134_v19, %v3129_v52, %v6186_v56 }
 0x295   : > { %v6193_v40 = vmul.u32.u64.low %v3134_v19, %v3133_v44  ;;  %v6194_v31 = vmul.u32.u64.high %v3134_v19, %v3133_v44, %v6193_v40  ;;  %v3402_v13 = vshrl.u32 %v3401_v21, 23  ;;  %vm2974_vm4 = vcmp.eq.s32.totalorder %v6151_v53, 0 }
 0x296   : > { %vm2977_vm5 = vcmp.eq.s32.totalorder %v6151_v53, 2  ;;  %vm4625_vm6 = vcmp.lt.s32.totalorder %v4624_v49, 0  ;;  %v3125_v61 = vsel %vm3119_vm0, %v3122_v41, %v3124_v43  ;;  %v3246_v11 = vadd.s32 %v6106_v58, %v6112_v42  ;;  %v847_v41 = vpop.permute.xlu0 %846 }
 0x297   : > { %v3261_v36 = vsel %vm4625_vm6, 0, %v4624_v49  ;;  %v3398_v16 = vand.u32 2147483647, %v6140_v28  ;;  %v4630_v54 = vadd.s32 4294967169, %v3402_v13  ;;  %v3279_v27 = vsel %vm6173_vm15, 0, %v3277_v48 }
 0x298   : > { %v3262_v29 = vsub.s32 32, %v3261_v36  ;;  %v3266_v25 = vsub.s32 4294967266, %v3261_v36  ;;  %v3144_v60 = vadd.s32 1, %v6187_v10  ;;  %v3263_v45 = vshll.u32 %v6155_v35, %v3261_v36 }
 0x299   : > { %v3141_v21 = vmul.u32 %v3134_v19, %v3125_v61  ;;  %vm3143_vm7 = vc.u32 %v6194_v31, %v6186_v56  ;;  %v3408_v37 = vadd.s32 1, %v4630_v54  ;;  %v3283_v34 = vadd.s32 3, %v3279_v27 }
 0x29a   : > { %v4943_v46 = vpop.eup %4942  ;;  %v3264_v50 = vshrl.u32 %v3246_v11, %v3262_v29  ;;  %v3267_v9 = vadd.s32 127, %v3266_v25  ;;  %v3145_v14 = vsel %vm3143_vm7, %v3144_v60, %v6187_v10  ;;  %v3405_v15 = vand.u32 8388607, %v3398_v16 }
 0x29b   : > { %v4945_v58 = vpop.eup %4944  ;;  %v2978_v42 = vxor.u32 2147483648, %v4943_v46  ;;  %v3146_v38 = vadd.s32 %v3145_v14, %v3141_v21  ;;  %vm3409_vm8 = vcmp.gt.s32.totalorder %v3408_v37, 0  ;;  %vm2970_vm9 = vweird.f32 %v5816_v30 }
 0x29c   : > { %v2975_v17 = vxor.u32 2147483648, %v4945_v58  ;;  %v3265_v35 = vor.u32 %v3264_v50, %v3263_v45  ;;  %v3268_v20 = vshll.u32 %v3267_v9, 23  ;;  %v3410_v33 = vsel %vm3409_vm8, %v3408_v37, 0 }
 0x29d   : > { %v2979_v18 = vsel %vm2977_vm5, %v2978_v42, %v4945_v58  ;;  %v3147_v39 = vadd.s32 536870912, %v3146_v38  ;;  %v3412_v19 = vand.u32 31, %v3410_v33  ;;  %v6222_v40 = vand.u32 3, %v3283_v34 }
 0x29e   : > { %v2976_v47 = vsel %vm2974_vm4, %v4943_v46, %v2975_v17  ;;  %v3269_v52 = vor.u32 4788187, %v3268_v20  ;;  %v3272_v48 = vcvt.s32.f32 %v3265_v35  ;;  %v920_v13 = vsel %vm543_vm1, %v5678_v63, %v847_v41  ;;  %v6239_v63 = vld [vmem:[%s8547_s4] ss:$0 sm:$0xff] }
 0x29f   : > { %v2980_v43 = vsel %vm2973_vm3, %v2976_v47, %v2979_v18  ;;  %v6219_v49 = vshrl.u32 %v3147_v39, 30  ;;  %v3413_v44 = vsub.s32 32, %v3412_v19  ;;  %v3406_v30 = vor.u32 8388608, %v3405_v15  ;;  %v6257_v39 = vld [vmem:[%s8548_s5] ss:$0 sm:$0xff] }
 0x2a0   : > { %v2981_v62 = vsel %vm2970_vm9, nan, %v2980_v43  ;;  %v3270_v10 = vand.u32 2147483647, %v3269_v52  ;;  %v3415_v53 = vshll.u32 %v5286_v51, %v3412_v19  ;;  %v3411_v60 = vshrl.u32 %v3410_v33, 5 }
 0x2a1   : > { %4352 = vst [vmem:[%s5998_s13 + $0x90] sm:$0xff] %v2981_v62  ;;  %v3149_v61 = vshll.u32 %v6219_v49, 30  ;;  %v3416_v11 = vshrl.u32 %v5287_v55, %v3413_v44  ;;  %v3419_v54 = vshrl.u32 %v5288_v57, %v3413_v44  ;;  %v3422_v29 = vshrl.u32 %v5289_v59, %v3413_v44 }
 0x2a2   : > { %v3273_v36 = vmul.f32 %v3272_v48, %v3270_v10  ;;  %v3425_v25 = vshrl.u32 %v5290_v12, %v3413_v44  ;;  %v3418_v46 = vshll.u32 %v5287_v55, %v3412_v19  ;;  %v958_v45 = vmul.f32 %v6239_v63, %v920_v13 }
 0x2a3   : > { %v6233_v27 = vsub.s32 %v3146_v38, %v3149_v61  ;;  %v3417_v37 = vor.u32 %v3416_v11, %v3415_v53  ;;  %v3421_v58 = vshll.u32 %v5288_v57, %v3412_v19  ;;  %v3424_v42 = vshll.u32 %v5289_v59, %v3412_v19 }
 0x2a4   : > { %v3274_v21 = vxor.u32 2147483648, %v3273_v36  ;;  %v3420_v9 = vor.u32 %v3419_v54, %v3418_v46  ;;  %v3427_v14 = vshll.u32 %v5290_v12, %v3412_v19  ;;  %v3428_v17 = vshrl.u32 %v5291_v22, %v3413_v44 }
 0x2a5   : > { %v3152_v50 = vsub.s32 0, %v6233_v27  ;;  %v3423_v38 = vor.u32 %v3422_v29, %v3421_v58  ;;  %v3426_v18 = vor.u32 %v3425_v25, %v3424_v42  ;;  %v3446_v35 = vshll.u32 %v3406_v30, 8  ;;  %v862_v25 = vpop.permute.xlu1 %861 }
 0x2a6   : > { %v3275_v34 = vsel %vm3192_vm13, %v3274_v21, %v3273_v36  ;;  %vm3088_vm10 = vcmp.lt.s32.totalorder %v6052_v24, 0  ;;  %v3429_v47 = vor.u32 %v3428_v17, %v3427_v14  ;;  %v6260_v15 = vadd.f32 %v6257_v39, %v958_v45 }
 0x2a7   : > { %v3278_v20 = vsel %vm6173_vm15, %v5926_v26, %v3275_v34  ;;  %v4619_v33 = vmin.u32 %v3152_v50, %v6233_v27  ;;  %v3172_v19 = vsub.s32 4, %v6219_v49  ;;  %v3414_v41 = vshrl.u32 %v5286_v51, %v3413_v44 }
 0x2a8   : > { %4946 = vcosq.f32 %v3278_v20  ;;  %vm3430_vm11 = vcmp.lt.s32.totalorder %v3411_v60, 1  ;;  %vm3433_vm13 = vcmp.lt.s32.totalorder %v3411_v60, 4  ;;  %vm3432_vm14 = vcmp.lt.s32.totalorder %v3411_v60, 3 }
 0x2a9   : > { %4948 = vsinq.f32 %v3278_v20  ;;  %v3154_v32 = vclz %v4619_v33  ;;  %v3438_v43 = vsel %vm3430_vm11, %v3417_v37, %v3420_v9  ;;  %v3435_v52 = vsel %vm3433_vm13, %v3423_v38, 2102212464 }
 0x2aa   : > { %v3439_v62 = vsel %vm3433_vm13, %v3426_v18, 920167782  ;;  %v3442_v10 = vsel %vm3430_vm11, %v3420_v9, %v3423_v38  ;;  %vm3431_vm12 = vcmp.lt.s32.totalorder %v3411_v60, 2  ;;  %v3443_v61 = vsel %vm3433_vm13, %v3429_v47, 1326507024 }
 0x2ab   : > { %v4620_v48 = vadd.s32 4294967294, %v3154_v32  ;;  %v3440_v13 = vsel %vm3432_vm14, %v3423_v38, %v3439_v62  ;;  %v3434_v30 = vsel %vm3430_vm11, %v3414_v41, %v3417_v37  ;;  %v3436_v53 = vsel %vm3432_vm14, %v3420_v9, %v3435_v52 }
 0x2ac   : > { %v3441_v11 = vsel %vm3431_vm12, %v3438_v43, %v3440_v13  ;;  %v3444_v36 = vsel %vm3432_vm14, %v3426_v18, %v3443_v61  ;;  %vm6271_vm15 = vcmp.le.f32.partialorder %v3086_v23, 0.7853982  ;;  %vm3282_vm0 = vweird.f32 %v5926_v26 }
 0x2ad   : > { %vm4621_vm2 = vcmp.lt.s32.totalorder %v4620_v48, 0  ;;  %v3445_v44 = vsel %vm3431_vm12, %v3442_v10, %v3444_v36  ;;  %v6266_v54 = vmul.u32.u64.low %v3446_v35, %v3441_v11  ;;  %v6267_v29 = vmul.u32.u64.high %v3446_v35, %v3441_v11, %v6266_v54 }
 0x2ae   : > { %v3157_v45 = vsel %vm4621_vm2, 0, %v4620_v48  ;;  %v6275_v21 = vmul.u32.u64.low %v3446_v35, %v3445_v44  ;;  %v6276_v37 = vmul.u32.u64.high %v3446_v35, %v3445_v44, %v6275_v21  ;;  %v3142_v58 = vadd.s32 %v6186_v56, %v6194_v31 }
 0x2af   : > { %v3158_v42 = vsub.s32 32, %v3157_v45  ;;  %v3162_v50 = vsub.s32 4294967266, %v3157_v45  ;;  %v3437_v9 = vsel %vm3431_vm12, %v3434_v30, %v3436_v53  ;;  %vm3289_vm3 = vcmp.eq.s32.totalorder %v6222_v40, 2 }
 0x2b0   : > { %v3173_v23 = vsel %vm3088_vm10, %v3172_v19, %v6219_v49  ;;  %v3297_v14 = vand.u32 2139095040, %v6260_v15  ;;  %v923_v17 = vsel %vm543_vm1, %v5680_v0, %v862_v25  ;;  %v3159_v34 = vshll.u32 %v6233_v27, %v3157_v45  ;;  %v858_v45 = vpop.permute.xlu0 %857 }
 0x2b1   : > { %v3160_v38 = vshrl.u32 %v3142_v58, %v3158_v42  ;;  %v3163_v56 = vadd.s32 127, %v3162_v50  ;;  %v3456_v31 = vadd.s32 1, %v6267_v29  ;;  %v3453_v18 = vmul.u32 %v3446_v35, %v3437_v9 }
 0x2b2   : > { %v4947_v60 = vpop.eup %4946  ;;  %vm3455_vm4 = vc.u32 %v6276_v37, %v6266_v54  ;;  %v3294_v20 = vand.u32 2147483647, %v6260_v15  ;;  %v3298_v33 = vshrl.u32 %v3297_v14, 23  ;;  %v3175_v27 = vsel %vm6271_vm15, 0, %v3173_v23 }
 0x2b3   : > { %v4949_v49 = vpop.eup %4948  ;;  %v3290_v47 = vxor.u32 2147483648, %v4947_v60  ;;  %v3161_v19 = vor.u32 %v3160_v38, %v3159_v34  ;;  %v3164_v41 = vshll.u32 %v3163_v56, 23  ;;  %v3457_v32 = vsel %vm3455_vm4, %v3456_v31, %v6267_v29 }
 0x2b4   : > { %v3287_v0 = vxor.u32 2147483648, %v4949_v49  ;;  %v3458_v43 = vadd.s32 %v3457_v32, %v3453_v18  ;;  %v4626_v52 = vadd.s32 4294967169, %v3298_v33  ;;  %vm3286_vm5 = vcmp.eq.s32.totalorder %v6222_v40, 0 }
 0x2b5   : > { %v3291_v35 = vsel %vm3289_vm3, %v3290_v47, %v4949_v49  ;;  %v3165_v62 = vor.u32 4788187, %v3164_v41  ;;  %v961_v10 = vmul.f32 %v6239_v63, %v923_v17  ;;  %vm3285_vm6 = vcmp.lt.s32.totalorder %v6222_v40, 2 }
 0x2b6   : > { %v3288_v48 = vsel %vm3286_vm5, %v4947_v60, %v3287_v0  ;;  %v3459_v13 = vadd.s32 536870912, %v3458_v43  ;;  %v3304_v61 = vadd.s32 1, %v4626_v52  ;;  %v3168_v11 = vcvt.s32.f32 %v3161_v19 }
 0x2b7   : > { %v3292_v30 = vsel %vm3285_vm6, %v3288_v48, %v3291_v35  ;;  %v3166_v53 = vand.u32 2147483647, %v3165_v62  ;;  %v3179_v36 = vadd.s32 3, %v3175_v27  ;;  %v3301_v25 = vand.u32 8388607, %v3294_v20 }
 0x2b8   : > { %v3293_v44 = vsel %vm3282_vm0, nan, %v3292_v30  ;;  %v3460_v29 = vshrl.u32 %v3459_v13, 30  ;;  %vm3305_vm7 = vcmp.gt.s32.totalorder %v3304_v61, 0  ;;  %v6308_v40 = vadd.f32 %v6257_v39, %v961_v10 }
 0x2b9   : > { %4355 = vst [vmem:[%s5998_s13 + $0xa8] sm:$0xff] %v3293_v44  ;;  %v3169_v21 = vmul.f32 %v3168_v11, %v3166_v53  ;;  %v3306_v58 = vsel %vm3305_vm7, %v3304_v61, 0  ;;  %vm6312_vm8 = vcmp.le.f32.partialorder %v3398_v16, 0.7853982  ;;  %vm3400_vm9 = vcmp.lt.s32.totalorder %v6140_v28, 0 }
 0x2ba   : > { %v3461_v26 = vshll.u32 %v3460_v29, 30  ;;  %v3308_v50 = vand.u32 31, %v3306_v58  ;;  %v6317_v23 = vand.u32 3, %v3179_v36  ;;  %v6320_v14 = vadd.s32 %v6266_v54, %v6276_v37 }
 0x2bb   : > { %v3170_v9 = vxor.u32 2147483648, %v3169_v21  ;;  %v6325_v17 = vsel %vm543_vm1, %v5682_v1, %v858_v45  ;;  %v3484_v16 = vsub.s32 4, %v3460_v29  ;;  %v3302_v38 = vor.u32 8388608, %v3301_v25 }
 0x2bc   : > { %v6327_v34 = vsub.s32 %v3458_v43, %v3461_v26  ;;  %v3309_v56 = vsub.s32 32, %v3308_v50  ;;  %v6331_v60 = vshrl.u32 %v3306_v58, 5  ;;  %v3311_v18 = vshll.u32 %v5286_v51, %v3308_v50 }
 0x2bd   : > { %v3171_v31 = vsel %vm3088_vm10, %v3170_v9, %v3169_v21  ;;  %v3609_v54 = vand.u32 2139095040, %v6308_v40  ;;  %v3314_v33 = vshll.u32 %v5287_v55, %v3308_v50  ;;  %v3317_v49 = vshll.u32 %v5288_v57, %v3308_v50 }
 0x2be   : > { %v3174_v37 = vsel %vm6271_vm15, %v6052_v24, %v3171_v31  ;;  %v3464_v1 = vsub.s32 0, %v6327_v34  ;;  %v3312_v47 = vshrl.u32 %v5287_v55, %v3309_v56  ;;  %v3315_v19 = vshrl.u32 %v5288_v57, %v3309_v56 }
 0x2bf   : > { %4950 = vcosq.f32 %v3174_v37  ;;  %v3318_v41 = vshrl.u32 %v5289_v59, %v3309_v56  ;;  %v3485_v46 = vsel %vm3400_vm9, %v3484_v16, %v3460_v29  ;;  %v3320_v0 = vshll.u32 %v5289_v59, %v3308_v50 }
 0x2c0   : > { %4952 = vsinq.f32 %v3174_v37  ;;  %v4631_v32 = vmin.u32 %v3464_v1, %v6327_v34  ;;  %v3313_v27 = vor.u32 %v3312_v47, %v3311_v18  ;;  %v3316_v43 = vor.u32 %v3315_v19, %v3314_v33 }
 0x2c1   : > { %v3319_v52 = vor.u32 %v3318_v41, %v3317_v49  ;;  %v3321_v35 = vshrl.u32 %v5290_v12, %v3309_v56  ;;  %v6349_v10 = vshll.u32 %v3302_v38, 8  ;;  %v3606_v48 = vand.u32 2147483647, %v6308_v40 }
 0x2c2   : > { %v3466_v62 = vclz %v4631_v32  ;;  %v3610_v13 = vshrl.u32 %v3609_v54, 23  ;;  %vm3185_vm10 = vcmp.eq.s32.totalorder %v6317_v23, 2  ;;  %v3487_v61 = vsel %vm6312_vm8, 0, %v3485_v46 }
 0x2c3   : > { %v3322_v30 = vor.u32 %v3321_v35, %v3320_v0  ;;  %v3323_v53 = vshll.u32 %v5290_v12, %v3308_v50  ;;  %v3324_v11 = vshrl.u32 %v5291_v22, %v3309_v56  ;;  %vm3182_vm11 = vcmp.eq.s32.totalorder %v6317_v23, 0 }
 0x2c4   : > { %v4632_v36 = vadd.s32 4294967294, %v3466_v62  ;;  %v3310_v44 = vshrl.u32 %v5286_v51, %v3309_v56  ;;  %vm3326_vm13 = vcmp.lt.s32.totalorder %v6331_v60, 1  ;;  %vm3329_vm14 = vcmp.lt.s32.totalorder %v6331_v60, 4 }
 0x2c5   : > { %vm3181_vm12 = vcmp.lt.s32.totalorder %v6317_v23, 2  ;;  %v3325_v29 = vor.u32 %v3324_v11, %v3323_v53  ;;  %vm3327_vm2 = vcmp.lt.s32.totalorder %v6331_v60, 2  ;;  %v3331_v25 = vsel %vm3329_vm14, %v3319_v52, 2102212464 }
 0x2c6   : > { %v3334_v45 = vsel %vm3326_vm13, %v3313_v27, %v3316_v43  ;;  %vm3178_vm15 = vweird.f32 %v6052_v24  ;;  %vm4633_vm0 = vcmp.lt.s32.totalorder %v4632_v36, 0  ;;  %vm3328_vm3 = vcmp.lt.s32.totalorder %v6331_v60, 3 }
 0x2c7   : > { %v3330_v21 = vsel %vm3326_vm13, %v3310_v44, %v3313_v27  ;;  %v3335_v58 = vsel %vm3329_vm14, %v3322_v30, 920167782  ;;  %v3469_v26 = vsel %vm4633_vm0, 0, %v4632_v36  ;;  %v3338_v9 = vsel %vm3326_vm13, %v3316_v43, %v3319_v52 }
 0x2c8   : > { %v3336_v50 = vsel %vm3328_vm3, %v3319_v52, %v3335_v58  ;;  %v3339_v16 = vsel %vm3329_vm14, %v3325_v29, 1326507024  ;;  %v3470_v38 = vsub.s32 32, %v3469_v26  ;;  %v3474_v56 = vsub.s32 4294967266, %v3469_v26 }
 0x2c9   : > { %v3332_v31 = vsel %vm3328_vm3, %v3316_v43, %v3331_v25  ;;  %v3337_v18 = vsel %vm3327_vm2, %v3334_v45, %v3336_v50  ;;  %v4951_v54 = vpop.eup %4950  ;;  %v3471_v37 = vshll.u32 %v6327_v34, %v3469_v26  ;;  %v3340_v1 = vsel %vm3328_vm3, %v3322_v30, %v3339_v16 }
 0x2ca   : > { %v6369_v33 = vmul.u32.u64.low %v6349_v10, %v3337_v18  ;;  %v6370_v49 = vmul.u32.u64.high %v6349_v10, %v3337_v18, %v6369_v33  ;;  %v4953_v47 = vpop.eup %4952  ;;  %v3186_v19 = vxor.u32 2147483648, %v4951_v54  ;;  %v3472_v41 = vshrl.u32 %v6320_v14, %v3470_v38 }
 0x2cb   : > { %v3475_v32 = vadd.s32 127, %v3474_v56  ;;  %v3341_v46 = vsel %vm3327_vm2, %v3338_v9, %v3340_v1  ;;  %v3183_v0 = vxor.u32 2147483648, %v4953_v47  ;;  %v4638_v34 = vadd.s32 4294967169, %v3610_v13 }
 0x2cc   : > { %v6377_v27 = vmul.u32.u64.low %v6349_v10, %v3341_v46  ;;  %v6378_v43 = vmul.u32.u64.high %v6349_v10, %v3341_v46, %v6377_v27  ;;  %v3187_v52 = vsel %vm3185_vm10, %v3186_v19, %v4953_v47  ;;  %v3473_v35 = vor.u32 %v3472_v41, %v3471_v37 }
 0x2cd   : > { %v3476_v62 = vshll.u32 %v3475_v32, 23  ;;  %v3333_v30 = vsel %vm3327_vm2, %v3330_v21, %v3332_v31  ;;  %v3184_v14 = vsel %vm3182_vm11, %v4951_v54, %v3183_v0  ;;  %v3352_v53 = vadd.s32 1, %v6370_v49 }
 0x2ce   : > { %v3616_v11 = vadd.s32 1, %v4638_v34  ;;  %v960_v36 = vmul.f32 %v6239_v63, %v6325_v17  ;;  %v3188_v13 = vsel %vm3181_vm12, %v3184_v14, %v3187_v52  ;;  %v3491_v29 = vadd.s32 3, %v3487_v61 }
 0x2cf   : > { %v3477_v44 = vor.u32 4788187, %v3476_v62  ;;  %v3613_v25 = vand.u32 8388607, %v3606_v48  ;;  %v3189_v60 = vsel %vm3178_vm15, nan, %v3188_v13  ;;  %v3349_v45 = vmul.u32 %v6349_v10, %v3333_v30 }
 0x2d0   : > { %vm3351_vm4 = vc.u32 %v6378_v43, %v6369_v33  ;;  %vm3617_vm5 = vcmp.gt.s32.totalorder %v3616_v11, 0  ;;  %4354 = vst [vmem:[%s5998_s13 + $0xa0] sm:$0xff] %v3189_v60  ;;  %v3480_v17 = vcvt.s32.f32 %v3473_v35  ;;  %v6400_v9 = vand.u32 3, %v3491_v29 }
 0x2d1   : > { %v3478_v21 = vand.u32 2147483647, %v3477_v44  ;;  %v3353_v23 = vsel %vm3351_vm4, %v3352_v53, %v6370_v49  ;;  %v3618_v58 = vsel %vm3617_vm5, %v3616_v11, 0  ;;  %v3614_v16 = vor.u32 8388608, %v3613_v25 }
 0x2d2   : > { %v3354_v26 = vadd.s32 %v3353_v23, %v3349_v45  ;;  %v3620_v61 = vand.u32 31, %v3618_v58  ;;  %v6402_v38 = vshrl.u32 %v3618_v58, 5  ;;  %v6405_v56 = vadd.f32 %v6257_v39, %v960_v36  ;;  %v873_v23 = vpop.permute.xlu1 %872 }
 0x2d3   : > { %v3481_v50 = vmul.f32 %v3480_v17, %v3478_v21  ;;  %vm3296_vm6 = vcmp.lt.s32.totalorder %v6260_v15, 0  ;;  %v6425_v36 = vshll.u32 %v3614_v16, 8  ;;  %vm6430_vm7 = vcmp.le.f32.partialorder %v3294_v20, 0.7853982 }
 0x2d4   : > { %v3355_v24 = vadd.s32 536870912, %v3354_v26  ;;  %v3621_v10 = vsub.s32 32, %v3620_v61  ;;  %v3623_v18 = vshll.u32 %v5286_v51, %v3620_v61  ;;  %v3626_v54 = vshll.u32 %v5287_v55, %v3620_v61 }
 0x2d5   : > { %v3482_v31 = vxor.u32 2147483648, %v3481_v50  ;;  %v3629_v37 = vshll.u32 %v5288_v57, %v3620_v61  ;;  %v3632_v19 = vshll.u32 %v5289_v59, %v3620_v61  ;;  %v3635_v35 = vshll.u32 %v5290_v12, %v3620_v61 }
 0x2d6   : > { %v3356_v1 = vshrl.u32 %v3355_v24, 30  ;;  %v3624_v49 = vshrl.u32 %v5287_v55, %v3621_v10  ;;  %v3627_v47 = vshrl.u32 %v5288_v57, %v3621_v10  ;;  %v3630_v32 = vshrl.u32 %v5289_v59, %v3621_v10 }
 0x2d7   : > { %v3483_v41 = vsel %vm3400_vm9, %v3482_v31, %v3481_v50  ;;  %v3633_v46 = vshrl.u32 %v5290_v12, %v3621_v10  ;;  %v3636_v0 = vshrl.u32 %v5291_v22, %v3621_v10  ;;  %v3505_v13 = vand.u32 2139095040, %v6405_v56 }
 0x2d8   : > { %v3486_v27 = vsel %vm6312_vm8, %v6140_v28, %v3483_v41  ;;  %v3357_v34 = vshll.u32 %v3356_v1, 30  ;;  %v3625_v52 = vor.u32 %v3624_v49, %v3623_v18  ;;  %v3628_v62 = vor.u32 %v3627_v47, %v3626_v54 }
 0x2d9   : > { %4954 = vcosq.f32 %v3486_v27  ;;  %v3631_v30 = vor.u32 %v3630_v32, %v3629_v37  ;;  %v3634_v14 = vor.u32 %v3633_v46, %v3632_v19  ;;  %v3637_v11 = vor.u32 %v3636_v0, %v3635_v35 }
 0x2da   : > { %4956 = vsinq.f32 %v3486_v27  ;;  %v6422_v53 = vsub.s32 %v3354_v26, %v3357_v34  ;;  %v3622_v29 = vshrl.u32 %v5286_v51, %v3621_v10  ;;  %vm3638_vm8 = vcmp.lt.s32.totalorder %v6402_v38, 1 }
 0x2db   : > { %vm3641_vm9 = vcmp.lt.s32.totalorder %v6402_v38, 4  ;;  %vm3497_vm10 = vcmp.eq.s32.totalorder %v6400_v9, 2  ;;  %vm3640_vm11 = vcmp.lt.s32.totalorder %v6402_v38, 3  ;;  %v3646_v60 = vsel %vm3638_vm8, %v3625_v52, %v3628_v62 }
 0x2dc   : > { %v3360_v44 = vsub.s32 0, %v6422_v53  ;;  %v3643_v25 = vsel %vm3641_vm9, %v3631_v30, 2102212464  ;;  %v3647_v20 = vsel %vm3641_vm9, %v3634_v14, 920167782  ;;  %vm3494_vm13 = vcmp.eq.s32.totalorder %v6400_v9, 0 }
 0x2dd   : > { %v3380_v21 = vsub.s32 4, %v3356_v1  ;;  %vm3639_vm14 = vcmp.lt.s32.totalorder %v6402_v38, 2  ;;  %v3648_v17 = vsel %vm3640_vm11, %v3631_v30, %v3647_v20  ;;  %vm3493_vm12 = vcmp.lt.s32.totalorder %v6400_v9, 2 }
 0x2de   : > { %v4627_v45 = vmin.u32 %v3360_v44, %v6422_v53  ;;  %v3649_v58 = vsel %vm3639_vm14, %v3646_v60, %v3648_v17  ;;  %v3650_v26 = vsel %vm3638_vm8, %v3628_v62, %v3631_v30  ;;  %v3651_v61 = vsel %vm3641_vm9, %v3637_v11, 1326507024 }
 0x2df   : > { %v3506_v50 = vshrl.u32 %v3505_v13, 23  ;;  %vm3490_vm2 = vweird.f32 %v6140_v28  ;;  %v3642_v24 = vsel %vm3638_vm8, %v3622_v29, %v3625_v52  ;;  %v3644_v10 = vsel %vm3640_vm11, %v3628_v62, %v3643_v25 }
 0x2e0   : > { %v3362_v16 = vclz %v4627_v45  ;;  %v3502_v31 = vand.u32 2147483647, %v6405_v56  ;;  %v3652_v18 = vsel %vm3640_vm11, %v3634_v14, %v3651_v61  ;;  %v925_v49 = vsel %vm543_vm1, %v5684_v2, %v873_v23 }
 0x2e1   : > { %v6461_v54 = vmul.u32.u64.low %v6425_v36, %v3649_v58  ;;  %v6462_v37 = vmul.u32.u64.high %v6425_v36, %v3649_v58, %v6461_v54  ;;  %v3381_v19 = vsel %vm3296_vm6, %v3380_v21, %v3356_v1  ;;  %v3653_v41 = vsel %vm3639_vm14, %v3650_v26, %v3652_v18 }
 0x2e2   : > { %v4628_v47 = vadd.s32 4294967294, %v3362_v16  ;;  %v4634_v32 = vadd.s32 4294967169, %v3506_v50  ;;  %v3350_v0 = vadd.s32 %v6369_v33, %v6378_v43  ;;  %v3645_v27 = vsel %vm3639_vm14, %v3642_v24, %v3644_v10 }
 0x2e3   : > { %v4955_v46 = vpop.eup %4954  ;;  %v6477_v34 = vmul.u32.u64.low %v6425_v36, %v3653_v41  ;;  %v6478_v52 = vmul.u32.u64.high %v6425_v36, %v3653_v41, %v6477_v34  ;;  %v3509_v1 = vand.u32 8388607, %v3502_v31  ;;  %v3383_v11 = vsel %vm6430_vm7, 0, %v3381_v19 }
 0x2e4   : > { %v4957_v2 = vpop.eup %4956  ;;  %v3498_v35 = vxor.u32 2147483648, %v4955_v46  ;;  %vm4629_vm15 = vcmp.lt.s32.totalorder %v4628_v47, 0  ;;  %v3512_v62 = vadd.s32 1, %v4634_v32  ;;  %v3664_v33 = vadd.s32 1, %v6462_v37 }
 0x2e5   : > { %v3495_v30 = vxor.u32 2147483648, %v4957_v2  ;;  %v3365_v14 = vsel %vm4629_vm15, 0, %v4628_v47  ;;  %v3661_v44 = vmul.u32 %v6425_v36, %v3645_v27  ;;  %vm3663_vm0 = vc.u32 %v6478_v52, %v6461_v54 }
 0x2e6   : > { %v3499_v43 = vsel %vm3497_vm10, %v3498_v35, %v4957_v2  ;;  %v3366_v38 = vsub.s32 32, %v3365_v14  ;;  %v3370_v13 = vsub.s32 4294967266, %v3365_v14  ;;  %v3367_v25 = vshll.u32 %v6422_v53, %v3365_v14 }
 0x2e7   : > { %v3496_v29 = vsel %vm3494_vm13, %v4955_v46, %v3495_v30  ;;  %vm3513_vm3 = vcmp.gt.s32.totalorder %v3512_v62, 0  ;;  %v3665_v21 = vsel %vm3663_vm0, %v3664_v33, %v6462_v37  ;;  %v963_v58 = vmul.f32 %v6239_v63, %v925_v49 }
 0x2e8   : > { %v3500_v60 = vsel %vm3493_vm12, %v3496_v29, %v3499_v43  ;;  %v3368_v20 = vshrl.u32 %v3350_v0, %v3366_v38  ;;  %v3371_v45 = vadd.s32 127, %v3370_v13  ;;  %v3666_v36 = vadd.s32 %v3665_v21, %v3661_v44 }
 0x2e9   : > { %v3501_v17 = vsel %vm3490_vm2, nan, %v3500_v60  ;;  %v3514_v23 = vsel %vm3513_vm3, %v3512_v62, 0  ;;  %v3387_v24 = vadd.s32 3, %v3383_v11  ;;  %v3510_v47 = vor.u32 8388608, %v3509_v1 }
 0x2ea   : > { %4357 = vst [vmem:[%s5998_s13 + $0xb8] sm:$0xff] %v3501_v17  ;;  %v3369_v53 = vor.u32 %v3368_v20, %v3367_v25  ;;  %v3372_v26 = vshll.u32 %v3371_v45, 23  ;;  %v3516_v61 = vand.u32 31, %v3514_v23  ;;  %v3667_v50 = vadd.s32 536870912, %v3666_v36 }
 0x2eb   : > { %v6503_v37 = vadd.f32 %v6257_v39, %v963_v58  ;;  %v3515_v2 = vshrl.u32 %v3514_v23, 5  ;;  %v6517_v13 = vand.u32 3, %v3387_v24  ;;  %v6521_v25 = vshll.u32 %v3510_v47, 8 }
 0x2ec   : > { %v3373_v16 = vor.u32 4788187, %v3372_v26  ;;  %v3517_v9 = vsub.s32 32, %v3516_v61  ;;  %v3376_v10 = vcvt.s32.f32 %v3369_v53  ;;  %v6500_v18 = vshrl.u32 %v3667_v50, 30 }
 0x2ed   : > { %v3519_v19 = vshll.u32 %v5286_v51, %v3516_v61  ;;  %v3522_v46 = vshll.u32 %v5287_v55, %v3516_v61  ;;  %v3525_v35 = vshll.u32 %v5288_v57, %v3516_v61  ;;  %v3528_v1 = vshll.u32 %v5289_v59, %v3516_v61 }
 0x2ee   : > { %v3374_v28 = vand.u32 2147483647, %v3373_v16  ;;  %v3520_v49 = vshrl.u32 %v5287_v55, %v3517_v9  ;;  %v3523_v41 = vshrl.u32 %v5288_v57, %v3517_v9  ;;  %v3669_v32 = vshll.u32 %v6500_v18, 30 }
 0x2ef   : > { %v3526_v0 = vshrl.u32 %v5289_v59, %v3517_v9  ;;  %v3529_v27 = vshrl.u32 %v5290_v12, %v3517_v9  ;;  %v3532_v38 = vshrl.u32 %v5291_v22, %v3517_v9  ;;  %v3531_v29 = vshll.u32 %v5290_v12, %v3516_v61 }
 0x2f0   : > { %v3377_v34 = vmul.f32 %v3376_v10, %v3374_v28  ;;  %v6514_v62 = vsub.s32 %v3666_v36, %v3669_v32  ;;  %v3521_v30 = vor.u32 %v3520_v49, %v3519_v19  ;;  %v3524_v14 = vor.u32 %v3523_v41, %v3522_v46 }
 0x2f1   : > { %v3527_v33 = vor.u32 %v3526_v0, %v3525_v35  ;;  %v3530_v43 = vor.u32 %v3529_v27, %v3528_v1  ;;  %vm3608_vm4 = vcmp.lt.s32.totalorder %v6308_v40, 0  ;;  %v3518_v20 = vshrl.u32 %v5286_v51, %v3517_v9 }
 0x2f2   : > { %v3378_v11 = vxor.u32 2147483648, %v3377_v34  ;;  %v3672_v44 = vsub.s32 0, %v6514_v62  ;;  %vm3534_vm5 = vcmp.lt.s32.totalorder %v3515_v2, 1  ;;  %v3817_v45 = vand.u32 2139095040, %v6503_v37 }
 0x2f3   : > { %v3533_v36 = vor.u32 %v3532_v38, %v3531_v29  ;;  %vm3537_vm8 = vcmp.lt.s32.totalorder %v3515_v2, 4  ;;  %v3542_v58 = vsel %vm3534_vm5, %v3521_v30, %v3524_v14  ;;  %v3692_v61 = vsub.s32 4, %v6500_v18 }
 0x2f4   : > { %v3379_v60 = vsel %vm3296_vm6, %v3378_v11, %v3377_v34  ;;  %v4639_v17 = vmin.u32 %v3672_v44, %v6514_v62  ;;  %v3539_v23 = vsel %vm3537_vm8, %v3527_v33, 2102212464  ;;  %v3543_v53 = vsel %vm3537_vm8, %v3530_v43, 920167782 }
 0x2f5   : > { %v3382_v21 = vsel %vm6430_vm7, %v6260_v15, %v3379_v60  ;;  %vm3536_vm6 = vcmp.lt.s32.totalorder %v3515_v2, 3  ;;  %vm3535_vm9 = vcmp.lt.s32.totalorder %v3515_v2, 2  ;;  %v3538_v42 = vsel %vm3534_vm5, %v3518_v20, %v3521_v30 }
 0x2f6   : > { %4958 = vcosq.f32 %v3382_v21  ;;  %v3674_v26 = vclz %v4639_v17  ;;  %v3544_v50 = vsel %vm3536_vm6, %v3527_v33, %v3543_v53  ;;  %v3546_v16 = vsel %vm3534_vm5, %v3524_v14, %v3527_v33  ;;  %v869_v17 = vpop.permute.xlu0 %868 }
 0x2f7   : > { %4960 = vsinq.f32 %v3382_v21  ;;  %v3540_v9 = vsel %vm3536_vm6, %v3524_v14, %v3539_v23  ;;  %v3545_v10 = vsel %vm3535_vm9, %v3542_v58, %v3544_v50  ;;  %v3547_v47 = vsel %vm3537_vm8, %v3533_v36, 1326507024 }
 0x2f8   : > { %v4640_v24 = vadd.s32 4294967294, %v3674_v26  ;;  %v3548_v28 = vsel %vm3536_vm6, %v3530_v43, %v3547_v47  ;;  %v6541_v19 = vmul.u32.u64.low %v6521_v25, %v3545_v10  ;;  %v6542_v49 = vmul.u32.u64.high %v6521_v25, %v3545_v10, %v6541_v19 }
 0x2f9   : > { %v3818_v41 = vshrl.u32 %v3817_v45, 23  ;;  %vm6547_vm7 = vcmp.le.f32.partialorder %v3606_v48, 0.7853982  ;;  %v3662_v46 = vadd.s32 %v6461_v54, %v6478_v52  ;;  %v3549_v0 = vsel %vm3535_vm9, %v3546_v16, %v3548_v28 }
 0x2fa   : > { %vm4641_vm10 = vcmp.lt.s32.totalorder %v4640_v24, 0  ;;  %v6555_v34 = vmul.u32.u64.low %v6521_v25, %v3549_v0  ;;  %v6556_v35 = vmul.u32.u64.high %v6521_v25, %v3549_v0, %v6555_v34  ;;  %v3693_v48 = vsel %vm3608_vm4, %v3692_v61, %v6500_v18 }
 0x2fb   : > { %v3677_v27 = vsel %vm4641_vm10, 0, %v4640_v24  ;;  %v4646_v1 = vadd.s32 4294967169, %v3818_v41  ;;  %v3541_v11 = vsel %vm3535_vm9, %v3538_v42, %v3540_v9  ;;  %vm3389_vm11 = vcmp.lt.s32.totalorder %v6517_v13, 2 }
 0x2fc   : > { %v3678_v30 = vsub.s32 32, %v3677_v27  ;;  %v3682_v14 = vsub.s32 4294967266, %v3677_v27  ;;  %vm3390_vm13 = vcmp.eq.s32.totalorder %v6517_v13, 0  ;;  %v3560_v54 = vadd.s32 1, %v6542_v49 }
 0x2fd   : > { %v3824_v52 = vadd.s32 1, %v4646_v1  ;;  %v3679_v33 = vshll.u32 %v6514_v62, %v3677_v27  ;;  %v3814_v44 = vand.u32 2147483647, %v6503_v37  ;;  %v3695_v60 = vsel %vm6547_vm7, 0, %v3693_v48 }
 0x2fe   : > { %v3680_v43 = vshrl.u32 %v3662_v46, %v3678_v30  ;;  %v3683_v38 = vadd.s32 127, %v3682_v14  ;;  %v3557_v18 = vmul.u32 %v6521_v25, %v3541_v11  ;;  %vm3559_vm14 = vc.u32 %v6556_v35, %v6541_v19 }
 0x2ff   : > { %vm3825_vm12 = vcmp.gt.s32.totalorder %v3824_v52, 0  ;;  %v3561_v62 = vsel %vm3559_vm14, %v3560_v54, %v6542_v49  ;;  %vm3393_vm2 = vcmp.eq.s32.totalorder %v6517_v13, 2  ;;  %v3699_v25 = vadd.s32 3, %v3695_v60 }
 0x300   : > { %v4959_v29 = vpop.eup %4958  ;;  %v3681_v45 = vor.u32 %v3680_v43, %v3679_v33  ;;  %v3684_v21 = vshll.u32 %v3683_v38, 23  ;;  %v3562_v23 = vadd.s32 %v3561_v62, %v3557_v18  ;;  %v3826_v58 = vsel %vm3825_vm12, %v3824_v52, 0 }
 0x301   : > { %v4961_v2 = vpop.eup %4960  ;;  %v3394_v20 = vxor.u32 2147483648, %v4959_v29  ;;  %v3821_v61 = vand.u32 8388607, %v3814_v44  ;;  %v3828_v16 = vand.u32 31, %v3826_v58  ;;  %v924_v24 = vsel %vm543_vm1, %v5686_v3, %v869_v17 }
 0x302   : > { %v3391_v36 = vxor.u32 2147483648, %v4961_v2  ;;  %v3685_v26 = vor.u32 4788187, %v3684_v21  ;;  %v3563_v50 = vadd.s32 536870912, %v3562_v23  ;;  %vm3386_vm15 = vweird.f32 %v6260_v15 }
 0x303   : > { %v3395_v53 = vsel %vm3393_vm2, %v3394_v20, %v4961_v2  ;;  %v3688_v47 = vcvt.s32.f32 %v3681_v45  ;;  %v3829_v41 = vsub.s32 32, %v3828_v16  ;;  %v6585_v0 = vand.u32 3, %v3699_v25 }
 0x304   : > { %v3392_v42 = vsel %vm3390_vm13, %v4959_v29, %v3391_v36  ;;  %v3686_v10 = vand.u32 2147483647, %v3685_v26  ;;  %v3564_v49 = vshrl.u32 %v3563_v50, 30  ;;  %v3822_v27 = vor.u32 8388608, %v3821_v61 }
 0x305   : > { %v3396_v9 = vsel %vm3389_vm11, %v3392_v42, %v3395_v53  ;;  %v962_v34 = vmul.f32 %v6239_v63, %v924_v24  ;;  %v3831_v3 = vshll.u32 %v5286_v51, %v3828_v16  ;;  %v3832_v15 = vshrl.u32 %v5287_v55, %v3829_v41 }
 0x306   : > { %v3397_v28 = vsel %vm3386_vm15, nan, %v3396_v9  ;;  %v3689_v46 = vmul.f32 %v3688_v47, %v3686_v10  ;;  %v3565_v1 = vshll.u32 %v3564_v49, 30  ;;  %v3834_v13 = vshll.u32 %v5287_v55, %v3828_v16 }
 0x307   : > { %4356 = vst [vmem:[%s5998_s13 + $0xb0] sm:$0xff] %v3397_v28  ;;  %v3835_v14 = vshrl.u32 %v5288_v57, %v3829_v41  ;;  %v3838_v48 = vshrl.u32 %v5289_v59, %v3829_v41  ;;  %v3841_v11 = vshrl.u32 %v5290_v12, %v3829_v41  ;;  %v3827_v52 = vshrl.u32 %v3826_v58, 5 }
 0x308   : > { %v3690_v30 = vxor.u32 2147483648, %v3689_v46  ;;  %v6594_v54 = vsub.s32 %v3562_v23, %v3565_v1  ;;  %v3837_v33 = vshll.u32 %v5288_v57, %v3828_v16  ;;  %v3840_v43 = vshll.u32 %v5289_v59, %v3828_v16 }
 0x309   : > { %vm3504_vm0 = vcmp.lt.s32.totalorder %v6405_v56, 0  ;;  %v3833_v29 = vor.u32 %v3832_v15, %v3831_v3  ;;  %v3836_v60 = vor.u32 %v3835_v14, %v3834_v13  ;;  %v6601_v18 = vshll.u32 %v3822_v27, 8 }
 0x30a   : > { %v3691_v38 = vsel %vm3608_vm4, %v3690_v30, %v3689_v46  ;;  %v3568_v20 = vsub.s32 0, %v6594_v54  ;;  %v3839_v45 = vor.u32 %v3838_v48, %v3837_v33  ;;  %v3842_v21 = vor.u32 %v3841_v11, %v3840_v43  ;;  %v884_v46 = vpop.permute.xlu1 %883 }
 0x30b   : > { %v3694_v2 = vsel %vm6547_vm7, %v6308_v40, %v3691_v38  ;;  %v3843_v62 = vshll.u32 %v5290_v12, %v3828_v16  ;;  %v3844_v17 = vshrl.u32 %v5291_v22, %v3829_v41  ;;  %v6610_v36 = vadd.f32 %v6257_v39, %v962_v34 }
 0x30c   : > { %4962 = vcosq.f32 %v3694_v2  ;;  %vm6614_vm3 = vcmp.le.f32.partialorder %v3502_v31, 0.7853982  ;;  %v4635_v32 = vmin.u32 %v3568_v20, %v6594_v54  ;;  %vm3846_vm4 = vcmp.lt.s32.totalorder %v3827_v52, 1 }
 0x30d   : > { %4964 = vsinq.f32 %v3694_v2  ;;  %vm3849_vm5 = vcmp.lt.s32.totalorder %v3827_v52, 4  ;;  %v3588_v58 = vsub.s32 4, %v3564_v49  ;;  %v3845_v53 = vor.u32 %v3844_v17, %v3843_v62 }
 0x30e   : > { %v3854_v26 = vsel %vm3846_vm4, %v3833_v29, %v3836_v60  ;;  %v3855_v25 = vsel %vm3849_vm5, %v3842_v21, 920167782  ;;  %v3570_v61 = vclz %v4635_v32  ;;  %v3830_v42 = vshrl.u32 %v5286_v51, %v3829_v41 }
 0x30f   : > { %vm3848_vm8 = vcmp.lt.s32.totalorder %v3827_v52, 3  ;;  %v3851_v50 = vsel %vm3849_vm5, %v3839_v45, 2102212464  ;;  %vm3847_vm6 = vcmp.lt.s32.totalorder %v3827_v52, 2  ;;  %v3858_v31 = vsel %vm3846_vm4, %v3836_v60, %v3839_v45 }
 0x310   : > { %v3856_v16 = vsel %vm3848_vm8, %v3839_v45, %v3855_v25  ;;  %v3859_v24 = vsel %vm3849_vm5, %v3845_v53, 1326507024  ;;  %vm3702_vm9 = vcmp.eq.s32.totalorder %v6585_v0, 0  ;;  %v4636_v9 = vadd.s32 4294967294, %v3570_v61  ;;  %v6657_v25 = vpop.permute.xlu1 %560 }
 0x311   : > { %v3850_v10 = vsel %vm3846_vm4, %v3830_v42, %v3833_v29  ;;  %v3857_v47 = vsel %vm3847_vm6, %v3854_v26, %v3856_v16  ;;  %v3860_v28 = vsel %vm3848_vm8, %v3842_v21, %v3859_v24  ;;  %vm3701_vm7 = vcmp.lt.s32.totalorder %v6585_v0, 2 }
 0x312   : > { %v3852_v27 = vsel %vm3848_vm8, %v3836_v60, %v3851_v50  ;;  %v3861_v41 = vsel %vm3847_vm6, %v3858_v31, %v3860_v28  ;;  %v6628_v34 = vmul.u32.u64.low %v6601_v18, %v3857_v47  ;;  %v6629_v1 = vmul.u32.u64.high %v6601_v18, %v3857_v47, %v6628_v34 }
 0x313   : > { %vm4637_vm10 = vcmp.lt.s32.totalorder %v4636_v9, 0  ;;  %v3589_v3 = vsel %vm3504_vm0, %v3588_v58, %v3564_v49  ;;  %v6635_v15 = vmul.u32.u64.low %v6601_v18, %v3861_v41  ;;  %v6636_v13 = vmul.u32.u64.high %v6601_v18, %v3861_v41, %v6635_v15 }
 0x314   : > { %vm3705_vm11 = vcmp.eq.s32.totalorder %v6585_v0, 2  ;;  %v3573_v30 = vsel %vm4637_vm10, 0, %v4636_v9  ;;  %v3713_v14 = vand.u32 2139095040, %v6610_v36  ;;  %v927_v48 = vsel %vm543_vm1, %v5688_v4, %v884_v46  ;;  %v6673_v41 = vpop.permute.xlu1 %564 }
 0x315   : > { %v3558_v11 = vadd.s32 %v6541_v19, %v6556_v35  ;;  %v3574_v33 = vsub.s32 32, %v3573_v30  ;;  %v3578_v43 = vsub.s32 4294967266, %v3573_v30  ;;  %v3853_v49 = vsel %vm3847_vm6, %v3850_v10, %v3852_v27 }
 0x316   : > { %v4963_v38 = vpop.eup %4962  ;;  %v3591_v29 = vsel %vm6614_vm3, 0, %v3589_v3  ;;  %v3872_v60 = vadd.s32 1, %v6629_v1  ;;  %v3710_v2 = vand.u32 2147483647, %v6610_v36  ;;  %v3714_v20 = vshrl.u32 %v3713_v14, 23 }
 0x317   : > { %v4965_v45 = vpop.eup %4964  ;;  %v3706_v21 = vxor.u32 2147483648, %v4963_v38  ;;  %v3575_v4 = vshll.u32 %v6594_v54, %v3573_v30  ;;  %v3576_v62 = vshrl.u32 %v3558_v11, %v3574_v33  ;;  %v3579_v17 = vadd.s32 127, %v3578_v43 }
 0x318   : > { %v3703_v19 = vxor.u32 2147483648, %v4965_v45  ;;  %v3869_v35 = vmul.u32 %v6601_v18, %v3853_v49  ;;  %vm3871_vm13 = vc.u32 %v6636_v13, %v6628_v34  ;;  %v4642_v52 = vadd.s32 4294967169, %v3714_v20 }
 0x319   : > { %v3707_v32 = vsel %vm3705_vm11, %v3706_v21, %v4965_v45  ;;  %v3577_v58 = vor.u32 %v3576_v62, %v3575_v4  ;;  %v3580_v53 = vshll.u32 %v3579_v17, 23  ;;  %v3873_v26 = vsel %vm3871_vm13, %v3872_v60, %v6629_v1 }
 0x31a   : > { %v3704_v54 = vsel %vm3702_vm9, %v4963_v38, %v3703_v19  ;;  %v3874_v61 = vadd.s32 %v3873_v26, %v3869_v35  ;;  %v3720_v42 = vadd.s32 1, %v4642_v52  ;;  %v965_v18 = vmul.f32 %v6239_v63, %v927_v48  ;;  %v6695_v19 = vpop.permute.xlu1 %575 }
 0x31b   : > { %vm3698_vm14 = vweird.f32 %v6308_v40  ;;  %v3708_v50 = vsel %vm3701_vm7, %v3704_v54, %v3707_v32  ;;  %v3581_v16 = vor.u32 4788187, %v3580_v53  ;;  %v3595_v24 = vadd.s32 3, %v3591_v29 }
 0x31c   : > { %v3709_v31 = vsel %vm3698_vm14, nan, %v3708_v50  ;;  %v3875_v9 = vadd.s32 536870912, %v3874_v61  ;;  %vm3721_vm12 = vcmp.gt.s32.totalorder %v3720_v42, 0  ;;  %v3584_v47 = vcvt.s32.f32 %v3577_v58 }
 0x31d   : > { %4359 = vst [vmem:[%s5998_s13 + $0xc8] sm:$0xff] %v3709_v31  ;;  %v3582_v10 = vand.u32 2147483647, %v3581_v16  ;;  %v3717_v28 = vand.u32 8388607, %v3710_v2  ;;  %v3722_v46 = vsel %vm3721_vm12, %v3720_v42, 0  ;;  %v6671_v40 = vadd.f32 %v6257_v39, %v965_v18 }
 0x31e   : > { %v6668_v27 = vshrl.u32 %v3875_v9, 30  ;;  %v3724_v63 = vand.u32 31, %v3722_v46  ;;  %v6676_v30 = vand.u32 3, %v3595_v24  ;;  %v3723_v11 = vshrl.u32 %v3722_v46, 5  ;;  %v880_v46 = vpop.permute.xlu0 %879 }
 0x31f   : > { %v3585_v0 = vmul.f32 %v3584_v47, %v3582_v10  ;;  %v3718_v14 = vor.u32 8388608, %v3717_v28  ;;  %v4025_v43 = vand.u32 2139095040, %v6671_v40  ;;  %vm3594_vm6 = vweird.f32 %v6405_v56 }
 0x320   : > { %v3877_v1 = vshll.u32 %v6668_v27, 30  ;;  %v3725_v3 = vsub.s32 32, %v3724_v63  ;;  %v3727_v49 = vshll.u32 %v5286_v51, %v3724_v63  ;;  %v3730_v45 = vshll.u32 %v5287_v55, %v3724_v63 }
 0x321   : > { %v3586_v15 = vxor.u32 2147483648, %v3585_v0  ;;  %v3733_v21 = vshll.u32 %v5288_v57, %v3724_v63  ;;  %v3736_v62 = vshll.u32 %v5289_v59, %v3724_v63  ;;  %v3739_v58 = vshll.u32 %v5290_v12, %v3724_v63  ;;  %v6707_v63 = vpop.permute.xlu1 %586 }
 0x322   : > { %v6678_v48 = vsub.s32 %v3874_v61, %v3877_v1  ;;  %v3728_v33 = vshrl.u32 %v5287_v55, %v3725_v3  ;;  %v3731_v38 = vshrl.u32 %v5288_v57, %v3725_v3  ;;  %v3734_v29 = vshrl.u32 %v5289_v59, %v3725_v3 }
 0x323   : > { %v3587_v39 = vsel %vm3504_vm0, %v3586_v15, %v3585_v0  ;;  %v3737_v17 = vshrl.u32 %v5290_v12, %v3725_v3  ;;  %v3740_v53 = vshrl.u32 %v5291_v22, %v3725_v3  ;;  %v6700_v26 = vshll.u32 %v3718_v14, 8 }
 0x324   : > { %v3590_v60 = vsel %vm6614_vm3, %v6405_v56, %v3587_v39  ;;  %v3880_v20 = vsub.s32 0, %v6678_v48  ;;  %v3729_v4 = vor.u32 %v3728_v33, %v3727_v49  ;;  %v3732_v52 = vor.u32 %v3731_v38, %v3730_v45 }
 0x325   : > { %4966 = vcosq.f32 %v3590_v60  ;;  %v3735_v23 = vor.u32 %v3734_v29, %v3733_v21  ;;  %v3738_v32 = vor.u32 %v3737_v17, %v3736_v62  ;;  %v3726_v61 = vshrl.u32 %v5286_v51, %v3725_v3 }
 0x326   : > { %4968 = vsinq.f32 %v3590_v60  ;;  %v4647_v35 = vmin.u32 %v3880_v20, %v6678_v48  ;;  %vm3742_vm2 = vcmp.lt.s32.totalorder %v3723_v11, 1  ;;  %v4026_v42 = vshrl.u32 %v4025_v43, 23 }
 0x327   : > { %vm3601_vm15 = vcmp.eq.s32.totalorder %v6676_v30, 2  ;;  %v3741_v18 = vor.u32 %v3740_v53, %v3739_v58  ;;  %vm3743_vm0 = vcmp.lt.s32.totalorder %v3723_v11, 2  ;;  %vm3744_vm3 = vcmp.lt.s32.totalorder %v3723_v11, 3  ;;  %v6733_v58 = vpop.permute.xlu1 %597 }
 0x328   : > { %v3882_v54 = vclz %v4647_v35  ;;  %vm3745_vm4 = vcmp.lt.s32.totalorder %v3723_v11, 4  ;;  %vm3598_vm5 = vcmp.eq.s32.totalorder %v6676_v30, 0  ;;  %v3750_v31 = vsel %vm3742_vm2, %v3729_v4, %v3732_v52 }
 0x329   : > { %v3747_v16 = vsel %vm3745_vm4, %v3735_v23, 2102212464  ;;  %v3751_v24 = vsel %vm3745_vm4, %v3738_v32, 920167782  ;;  %vm3597_vm8 = vcmp.lt.s32.totalorder %v6676_v30, 2  ;;  %v3746_v9 = vsel %vm3742_vm2, %v3726_v61, %v3729_v4 }
 0x32a   : > { %v4648_v50 = vadd.s32 4294967294, %v3882_v54  ;;  %v3752_v10 = vsel %vm3744_vm3, %v3735_v23, %v3751_v24  ;;  %v3754_v47 = vsel %vm3742_vm2, %v3732_v52, %v3735_v23  ;;  %v3755_v28 = vsel %vm3745_vm4, %v3741_v18, 1326507024 }
 0x32b   : > { %vm3816_vm9 = vcmp.lt.s32.totalorder %v6503_v37, 0  ;;  %v3748_v0 = vsel %vm3744_vm3, %v3732_v52, %v3747_v16  ;;  %v3753_v1 = vsel %vm3743_vm0, %v3750_v31, %v3752_v10  ;;  %v3756_v3 = vsel %vm3744_vm3, %v3738_v32, %v3755_v28  ;;  %v6749_v31 = vld [vmem:[%s8547_s4] ss:$0 sm:$0xff] }
 0x32c   : > { %vm4649_vm7 = vcmp.lt.s32.totalorder %v4648_v50, 0  ;;  %v3757_v14 = vsel %vm3743_vm0, %v3754_v47, %v3756_v3  ;;  %v6716_v33 = vmul.u32.u64.low %v6700_v26, %v3753_v1  ;;  %v6717_v43 = vmul.u32.u64.high %v6700_v26, %v3753_v1, %v6716_v33 }
 0x32d   : > { %v3885_v15 = vsel %vm4649_vm7, 0, %v4648_v50  ;;  %v3870_v39 = vadd.s32 %v6628_v34, %v6636_v13  ;;  %v926_v29 = vsel %vm543_vm1, %v5690_v5, %v880_v46  ;;  %v3749_v20 = vsel %vm3743_vm0, %v3746_v9, %v3748_v0  ;;  %v6752_v9 = vpop.permute.xlu0 %549 }
 0x32e   : > { %v3886_v49 = vsub.s32 32, %v3885_v15  ;;  %v3890_v38 = vsub.s32 4294967266, %v3885_v15  ;;  %v6727_v45 = vmul.u32.u64.low %v6700_v26, %v3757_v14  ;;  %v6728_v21 = vmul.u32.u64.high %v6700_v26, %v3757_v14, %v6727_v45 }
 0x32f   : > { %v4967_v60 = vpop.eup %4966  ;;  %v4654_v4 = vadd.s32 4294967169, %v4026_v42  ;;  %v3887_v35 = vshll.u32 %v6678_v48, %v3885_v15  ;;  %v3900_v23 = vsub.s32 4, %v6668_v27  ;;  %v3768_v32 = vadd.s32 1, %v6717_v43  ;;  %v6768_v15 = vpop.permute.xlu1 %608 }
 0x330   : > { %v4969_v62 = vpop.eup %4968  ;;  %v3602_v17 = vxor.u32 2147483648, %v4967_v60  ;;  %v3888_v52 = vshrl.u32 %v3870_v39, %v3886_v49  ;;  %v3891_v34 = vadd.s32 127, %v3890_v38  ;;  %v4022_v61 = vand.u32 2147483647, %v6671_v40  ;;  %v6775_v39 = vld [vmem:[%s8548_s5] ss:$0 sm:$0xff] }
 0x331   : > { %v3599_v13 = vxor.u32 2147483648, %v4969_v62  ;;  %v4032_v5 = vadd.s32 1, %v4654_v4  ;;  %v3765_v42 = vmul.u32 %v6700_v26, %v3749_v20  ;;  %vm3767_vm10 = vc.u32 %v6728_v21, %v6716_v33 }
 0x332   : > { %v3603_v11 = vsel %vm3601_vm15, %v3602_v17, %v4969_v62  ;;  %v3889_v53 = vor.u32 %v3888_v52, %v3887_v35  ;;  %v3892_v54 = vshll.u32 %v3891_v34, 23  ;;  %v3769_v16 = vsel %vm3767_vm10, %v3768_v32, %v6717_v43  ;;  %v6787_v17 = vpop.permute.xlu0 %553 }
 0x333   : > { %v3600_v48 = vsel %vm3598_vm5, %v4967_v60, %v3599_v13  ;;  %vm4033_vm11 = vcmp.gt.s32.totalorder %v4032_v5, 0  ;;  %v964_v24 = vmul.f32 %v6749_v31, %v926_v29  ;;  %v3901_v30 = vsel %vm3816_vm9, %v3900_v23, %v6668_v27 }
 0x334   : > { %v3604_v18 = vsel %vm3597_vm8, %v3600_v48, %v3603_v11  ;;  %v3893_v50 = vor.u32 4788187, %v3892_v54  ;;  %v3770_v10 = vadd.s32 %v3769_v16, %v3765_v42  ;;  %v4034_v47 = vsel %vm4033_vm11, %v4032_v5, 0 }
 0x335   : > { %v3605_v26 = vsel %vm3594_vm6, nan, %v3604_v18  ;;  %v3896_v46 = vcvt.s32.f32 %v3889_v53  ;;  %v4036_v0 = vand.u32 31, %v4034_v47  ;;  %vm6762_vm13 = vcmp.le.f32.partialorder %v3814_v44, 0.7853982  ;;  %v6802_v18 = vpop.permute.xlu1 %619 }
 0x336   : > { %4358 = vst [vmem:[%s5998_s13 + $0xc0] sm:$0xff] %v3605_v26  ;;  %v3894_v28 = vand.u32 2147483647, %v3893_v50  ;;  %v3771_v3 = vadd.s32 536870912, %v3770_v10  ;;  %v4029_v56 = vand.u32 8388607, %v4022_v61  ;;  %v6778_v44 = vadd.f32 %v6775_v39, %v964_v24 }
 0x337   : > { %v3903_v27 = vsel %vm6762_vm13, 0, %v3901_v30  ;;  %v4037_v43 = vsub.s32 32, %v4036_v0  ;;  %v4035_v38 = vshrl.u32 %v4034_v47, 5  ;;  %v4039_v29 = vshll.u32 %v5286_v51, %v4036_v0 }
 0x338   : > { %v3897_v14 = vmul.f32 %v3896_v46, %v3894_v28  ;;  %v6780_v49 = vshrl.u32 %v3771_v3, 30  ;;  %v4042_v60 = vshll.u32 %v5287_v55, %v4036_v0  ;;  %v4045_v62 = vshll.u32 %v5288_v57, %v4036_v0  ;;  %v6808_v28 = vpop.permute.xlu0 %571 }
 0x339   : > { %v4040_v45 = vshrl.u32 %v5287_v55, %v4037_v43  ;;  %v4043_v4 = vshrl.u32 %v5288_v57, %v4037_v43  ;;  %v4046_v52 = vshrl.u32 %v5289_v59, %v4037_v43  ;;  %v4048_v34 = vshll.u32 %v5289_v59, %v4036_v0 }
 0x33a   : > { %v3898_v20 = vxor.u32 2147483648, %v3897_v14  ;;  %v3773_v35 = vshll.u32 %v6780_v49, 30  ;;  %v4049_v13 = vshrl.u32 %v5290_v12, %v4037_v43  ;;  %v4051_v5 = vshll.u32 %v5290_v12, %v4036_v0 }
 0x33b   : > { %v4041_v32 = vor.u32 %v4040_v45, %v4039_v29  ;;  %v4052_v11 = vshrl.u32 %v5291_v22, %v4037_v43  ;;  %v4044_v48 = vor.u32 %v4043_v4, %v4042_v60  ;;  %v4047_v42 = vor.u32 %v4046_v52, %v4045_v62  ;;  %v6813_v4 = vpop.permute.xlu1 %630 }
 0x33c   : > { %v3899_v23 = vsel %vm3816_vm9, %v3898_v20, %v3897_v14  ;;  %v6800_v54 = vsub.s32 %v3770_v10, %v3773_v35  ;;  %v4030_v50 = vor.u32 8388608, %v4029_v56  ;;  %v4050_v16 = vor.u32 %v4049_v13, %v4048_v34 }
 0x33d   : > { %v3902_v53 = vsel %vm6762_vm13, %v6503_v37, %v3899_v23  ;;  %v4053_v24 = vor.u32 %v4052_v11, %v4051_v5  ;;  %v3907_v26 = vadd.s32 3, %v3903_v27  ;;  %vm3712_vm14 = vcmp.lt.s32.totalorder %v6610_v36, 0 }
 0x33e   : > { %4970 = vcosq.f32 %v3902_v53  ;;  %v3776_v30 = vsub.s32 0, %v6800_v54  ;;  %v4038_v47 = vshrl.u32 %v5286_v51, %v4037_v43  ;;  %vm4054_vm12 = vcmp.lt.s32.totalorder %v4035_v38, 1 }
 0x33f   : > { %4972 = vsinq.f32 %v3902_v53  ;;  %vm4056_vm2 = vcmp.lt.s32.totalorder %v4035_v38, 3  ;;  %vm4057_vm15 = vcmp.lt.s32.totalorder %v4035_v38, 4  ;;  %v3921_v10 = vand.u32 2139095040, %v6778_v44 }
 0x340   : > { %v4643_v46 = vmin.u32 %v3776_v30, %v6800_v54  ;;  %v4058_v0 = vsel %vm4054_vm12, %v4038_v47, %v4041_v32  ;;  %v4059_v1 = vsel %vm4057_vm15, %v4047_v42, 2102212464  ;;  %v4062_v3 = vsel %vm4054_vm12, %v4041_v32, %v4044_v48 }
 0x341   : > { %v4060_v56 = vsel %vm4056_vm2, %v4044_v48, %v4059_v1  ;;  %v4063_v14 = vsel %vm4057_vm15, %v4050_v16, 920167782  ;;  %v4066_v27 = vsel %vm4054_vm12, %v4044_v48, %v4047_v42  ;;  %v4067_v29 = vsel %vm4057_vm15, %v4053_v24, 1326507024 }
 0x342   : > { %v3908_v60 = vand.u32 3, %v3907_v26  ;;  %v3778_v20 = vclz %v4643_v46  ;;  %v3796_v43 = vsub.s32 4, %v6780_v49  ;;  %v4070_v45 = vshll.u32 %v4030_v50, 8 }
 0x343   : > { %vm4055_vm0 = vcmp.lt.s32.totalorder %v4035_v38, 2  ;;  %v4064_v62 = vsel %vm4056_vm2, %v4047_v42, %v4063_v14  ;;  %v4068_v35 = vsel %vm4056_vm2, %v4050_v16, %v4067_v29  ;;  %v3922_v52 = vshrl.u32 %v3921_v10, 23  ;;  %v6831_v38 = vpop.permute.xlu0 %582 }
 0x344   : > { %vm3906_vm3 = vweird.f32 %v6503_v37  ;;  %vm6820_vm4 = vcmp.le.f32.partialorder %v3710_v2, 0.7853982  ;;  %v4644_v13 = vadd.s32 4294967294, %v3778_v20  ;;  %v4061_v23 = vsel %vm4055_vm0, %v4058_v0, %v4060_v56 }
 0x345   : > { %v4065_v32 = vsel %vm4055_vm0, %v4062_v3, %v4064_v62  ;;  %v4069_v5 = vsel %vm4055_vm0, %v4066_v27, %v4068_v35  ;;  %vm3910_vm5 = vcmp.eq.s32.totalorder %v3908_v60, 0  ;;  %vm3913_vm8 = vcmp.eq.s32.totalorder %v3908_v60, 2  ;;  %v730_v3 = vpop.permute.xlu1 %729 }
 0x346   : > { %v6824_v11 = vmul.u32.u64.low %v4070_v45, %v4069_v5  ;;  %v6825_v53 = vmul.u32.u64.high %v4070_v45, %v4069_v5, %v6824_v11  ;;  %v6827_v48 = vmul.u32.u64.low %v4070_v45, %v4065_v32  ;;  %v6828_v42 = vmul.u32.u64.high %v4070_v45, %v4065_v32, %v6827_v48 }
 0x347   : > { %vm4645_vm6 = vcmp.lt.s32.totalorder %v4644_v13, 0  ;;  %v4650_v2 = vadd.s32 4294967169, %v3922_v52  ;;  %v3766_v16 = vadd.s32 %v6716_v33, %v6728_v21  ;;  %v3797_v26 = vsel %vm3712_vm14, %v3796_v43, %v6780_v49 }
 0x348   : > { %v4971_v50 = vpop.eup %4970  ;;  %v3781_v24 = vsel %vm4645_vm6, 0, %v4644_v13  ;;  %v3918_v30 = vand.u32 2147483647, %v6778_v44  ;;  %v4077_v1 = vmul.u32 %v4070_v45, %v4061_v23  ;;  %vm4079_vm9 = vc.u32 %v6825_v53, %v6827_v48  ;;  %v6846_v45 = vpop.permute.xlu0 %593 }
 0x349   : > { %v4973_v47 = vpop.eup %4972  ;;  %v3914_v10 = vxor.u32 2147483648, %v4971_v50  ;;  %v3782_v46 = vsub.s32 32, %v3781_v24  ;;  %v3786_v0 = vsub.s32 4294967266, %v3781_v24  ;;  %v3783_v14 = vshll.u32 %v6800_v54, %v3781_v24 }
 0x34a   : > { %v3911_v56 = vxor.u32 2147483648, %v4973_v47  ;;  %v4080_v33 = vadd.s32 1, %v6828_v42  ;;  %v3928_v29 = vadd.s32 1, %v4650_v2  ;;  %vm3909_vm7 = vcmp.lt.s32.totalorder %v3908_v60, 2 }
 0x34b   : > { %v3915_v21 = vsel %vm3913_vm8, %v3914_v10, %v4973_v47  ;;  %v3784_v27 = vshrl.u32 %v3766_v16, %v3782_v46  ;;  %v3787_v49 = vadd.s32 127, %v3786_v0  ;;  %v899_v54 = vsel %vm543_vm1, %v6787_v17, %v730_v3 }
 0x34c   : > { %v3912_v20 = vsel %vm3910_vm5, %v4971_v50, %v3911_v56  ;;  %v4081_v43 = vsel %vm4079_vm9, %v4080_v33, %v6828_v42  ;;  %v3799_v32 = vsel %vm6820_vm4, 0, %v3797_v26  ;;  %v3925_v60 = vand.u32 8388607, %v3918_v30  ;;  %v6861_v46 = vpop.permute.xlu0 %604 }
 0x34d   : > { %v3916_v62 = vsel %vm3909_vm7, %v3912_v20, %v3915_v21  ;;  %v3785_v35 = vor.u32 %v3784_v27, %v3783_v14  ;;  %v3788_v52 = vshll.u32 %v3787_v49, 23  ;;  %v4082_v13 = vadd.s32 %v4081_v43, %v4077_v1 }
 0x34e   : > { %v3917_v23 = vsel %vm3906_vm3, nan, %v3916_v62  ;;  %vm3929_vm10 = vcmp.gt.s32.totalorder %v3928_v29, 0  ;;  %v937_v17 = vmul.f32 %v6749_v31, %v899_v54  ;;  %v3803_v37 = vadd.s32 3, %v3799_v32 }
 0x34f   : > { %4361 = vst [vmem:[%s5998_s13 + $0xd8] sm:$0xff] %v3917_v23  ;;  %v3789_v5 = vor.u32 4788187, %v3788_v52  ;;  %v4083_v11 = vadd.s32 536870912, %v4082_v13  ;;  %v3930_v42 = vsel %vm3929_vm10, %v3928_v29, 0  ;;  %v3792_v16 = vcvt.s32.f32 %v3785_v35 }
 0x350   : > { %v3932_v2 = vand.u32 31, %v3930_v42  ;;  %v3926_v47 = vor.u32 8388608, %v3925_v60  ;;  %v6866_v3 = vadd.f32 %v6775_v39, %v937_v17  ;;  %v6876_v43 = vand.u32 3, %v3803_v37  ;;  %v6888_v17 = vpop.permute.xlu0 %615 }
 0x351   : > { %v3790_v50 = vand.u32 2147483647, %v3789_v5  ;;  %v6859_v24 = vshrl.u32 %v4083_v11, 30  ;;  %v3931_v54 = vshrl.u32 %v3930_v42, 5  ;;  %vm4024_vm11 = vcmp.lt.s32.totalorder %v6671_v40, 0 }
 0x352   : > { %v3933_v10 = vsub.s32 32, %v3932_v2  ;;  %v3935_v1 = vshll.u32 %v5286_v51, %v3932_v2  ;;  %v3938_v14 = vshll.u32 %v5287_v55, %v3932_v2  ;;  %v3941_v29 = vshll.u32 %v5288_v57, %v3932_v2 }
 0x353   : > { %v3793_v26 = vmul.f32 %v3792_v16, %v3790_v50  ;;  %v4085_v0 = vshll.u32 %v6859_v24, 30  ;;  %v3944_v35 = vshll.u32 %v5289_v59, %v3932_v2  ;;  %v3947_v11 = vshll.u32 %v5290_v12, %v3932_v2 }
 0x354   : > { %v3936_v56 = vshrl.u32 %v5287_v55, %v3933_v10  ;;  %v3939_v33 = vshrl.u32 %v5288_v57, %v3933_v10  ;;  %v3942_v21 = vshrl.u32 %v5289_v59, %v3933_v10  ;;  %v3945_v20 = vshrl.u32 %v5290_v12, %v3933_v10 }
 0x355   : > { %v3794_v27 = vxor.u32 2147483648, %v3793_v26  ;;  %v6872_v49 = vsub.s32 %v4082_v13, %v4085_v0  ;;  %v3948_v42 = vshrl.u32 %v5291_v22, %v3933_v10  ;;  %v6891_v16 = vshll.u32 %v3926_v47, 8 }
 0x356   : > { %v3937_v62 = vor.u32 %v3936_v56, %v3935_v1  ;;  %v3940_v32 = vor.u32 %v3939_v33, %v3938_v14  ;;  %v3943_v60 = vor.u32 %v3942_v21, %v3941_v29  ;;  %v3946_v5 = vor.u32 %v3945_v20, %v3944_v35  ;;  %v6906_v35 = vpop.permute.xlu0 %626 }
 0x357   : > { %v3795_v52 = vsel %vm3712_vm14, %v3794_v27, %v3793_v26  ;;  %v4088_v23 = vsub.s32 0, %v6872_v49  ;;  %v1113_v37 = vand.u32 2139095040, %v6866_v3  ;;  %v4108_v34 = vsub.s32 4, %v6859_v24 }
 0x358   : > { %v3798_v13 = vsel %vm6820_vm4, %v6610_v36, %v3795_v52  ;;  %v3934_v26 = vshrl.u32 %v5286_v51, %v3933_v10  ;;  %v3949_v0 = vor.u32 %v3948_v42, %v3947_v11  ;;  %vm6898_vm13 = vcmp.le.f32.partialorder %v4022_v61, 0.7853982 }
 0x359   : > { %4974 = vcosq.f32 %v3798_v13  ;;  %v4655_v50 = vmin.u32 %v4088_v23, %v6872_v49  ;;  %vm3950_vm14 = vcmp.lt.s32.totalorder %v3931_v54, 1  ;;  %vm3951_vm12 = vcmp.lt.s32.totalorder %v3931_v54, 2 }
 0x35a   : > { %4976 = vsinq.f32 %v3798_v13  ;;  %vm3953_vm2 = vcmp.lt.s32.totalorder %v3931_v54, 4  ;;  %vm3952_vm15 = vcmp.lt.s32.totalorder %v3931_v54, 3  ;;  %v3958_v56 = vsel %vm3950_vm14, %v3937_v62, %v3940_v32  ;;  %v726_v54 = vpop.permute.xlu0 %725 }
 0x35b   : > { %v4090_v1 = vclz %v4655_v50  ;;  %v3955_v47 = vsel %vm3953_vm2, %v3943_v60, 2102212464  ;;  %v3959_v14 = vsel %vm3953_vm2, %v3946_v5, 920167782  ;;  %vm3809_vm0 = vcmp.eq.s32.totalorder %v6876_v43, 2 }
 0x35c   : > { %v3954_v21 = vsel %vm3950_vm14, %v3934_v26, %v3937_v62  ;;  %v3960_v10 = vsel %vm3952_vm15, %v3943_v60, %v3959_v14  ;;  %v3962_v27 = vsel %vm3950_vm14, %v3940_v32, %v3943_v60  ;;  %v3956_v61 = vsel %vm3952_vm15, %v3940_v32, %v3955_v47 }
 0x35d   : > { %v4656_v33 = vadd.s32 4294967294, %v4090_v1  ;;  %v3961_v29 = vsel %vm3951_vm12, %v3958_v56, %v3960_v10  ;;  %v3963_v20 = vsel %vm3953_vm2, %v3949_v0, 1326507024  ;;  %v1114_v52 = vshrl.u32 %v1113_v37, 23 }
 0x35e   : > { %vm3805_vm3 = vcmp.lt.s32.totalorder %v6876_v43, 2  ;;  %v3964_v23 = vsel %vm3952_vm15, %v3946_v5, %v3963_v20  ;;  %v6911_v13 = vmul.u32.u64.low %v6891_v16, %v3961_v29  ;;  %v6912_v11 = vmul.u32.u64.high %v6891_v16, %v3961_v29, %v6911_v13 }
 0x35f   : > { %vm4657_vm4 = vcmp.lt.s32.totalorder %v4656_v33, 0  ;;  %vm3802_vm5 = vweird.f32 %v6610_v36  ;;  %v3965_v32 = vsel %vm3951_vm12, %v3962_v27, %v3964_v23  ;;  %v1110_v60 = vand.u32 2147483647, %v6866_v3 }
 0x360   : > { %v4093_v62 = vsel %vm4657_vm4, 0, %v4656_v33  ;;  %v4542_v42 = vadd.s32 4294967169, %v1114_v52  ;;  %v4078_v50 = vadd.s32 %v6827_v48, %v6825_v53  ;;  %v4109_v5 = vsel %vm4024_vm11, %v4108_v34, %v6859_v24 }
 0x361   : > { %v4094_v37 = vsub.s32 32, %v4093_v62  ;;  %v4098_v26 = vsub.s32 4294967266, %v4093_v62  ;;  %v3957_v0 = vsel %vm3951_vm12, %v3954_v21, %v3956_v61  ;;  %v4095_v33 = vshll.u32 %v6872_v49, %v4093_v62 }
 0x362   : > { %v6925_v1 = vmul.u32.u64.low %v6891_v16, %v3965_v32  ;;  %v6926_v47 = vmul.u32.u64.high %v6891_v16, %v3965_v32, %v6925_v1  ;;  %v1120_v56 = vadd.s32 1, %v4542_v42  ;;  %v3976_v53 = vadd.s32 1, %v6912_v11 }
 0x363   : > { %v4975_v14 = vpop.eup %4974  ;;  %v4096_v10 = vshrl.u32 %v4078_v50, %v4094_v37  ;;  %v4099_v27 = vadd.s32 127, %v4098_v26  ;;  %v4111_v20 = vsel %vm6898_vm13, 0, %v4109_v5  ;;  %v1117_v24 = vand.u32 8388607, %v1110_v60 }
 0x364   : > { %v4977_v48 = vpop.eup %4976  ;;  %v3810_v29 = vxor.u32 2147483648, %v4975_v14  ;;  %vm1121_vm8 = vcmp.gt.s32.totalorder %v1120_v56, 0  ;;  %vm3806_vm6 = vcmp.eq.s32.totalorder %v6876_v43, 0  ;;  %v3973_v23 = vmul.u32 %v6891_v16, %v3957_v0 }
 0x365   : > { %v3807_v34 = vxor.u32 2147483648, %v4977_v48  ;;  %v4097_v21 = vor.u32 %v4096_v10, %v4095_v33  ;;  %v4100_v61 = vshll.u32 %v4099_v27, 23  ;;  %v1122_v52 = vsel %vm1121_vm8, %v1120_v56, 0 }
 0x366   : > { %v3811_v49 = vsel %vm3809_vm0, %v3810_v29, %v4977_v48  ;;  %vm3975_vm9 = vc.u32 %v6926_v47, %v6911_v13  ;;  %v898_v50 = vsel %vm543_vm1, %v6752_v9, %v726_v54  ;;  %v4115_v26 = vadd.s32 3, %v4111_v20 }
 0x367   : > { %v3808_v62 = vsel %vm3806_vm6, %v4975_v14, %v3807_v34  ;;  %v4101_v32 = vor.u32 4788187, %v4100_v61  ;;  %v3977_v42 = vsel %vm3975_vm9, %v3976_v53, %v6912_v11  ;;  %v1124_v1 = vand.u32 31, %v1122_v52 }
 0x368   : > { %v3812_v37 = vsel %vm3805_vm3, %v3808_v62, %v3811_v49  ;;  %v3978_v5 = vadd.s32 %v3977_v42, %v3973_v23  ;;  %v4104_v56 = vcvt.s32.f32 %v4097_v21  ;;  %v1118_v33 = vor.u32 8388608, %v1117_v24 }
 0x369   : > { %v3813_v16 = vsel %vm3802_vm5, nan, %v3812_v37  ;;  %v4102_v0 = vand.u32 2147483647, %v4101_v32  ;;  %v1123_v10 = vshrl.u32 %v1122_v52, 5  ;;  %v1125_v11 = vsub.s32 32, %v1124_v1 }
 0x36a   : > { %4360 = vst [vmem:[%s5998_s13 + $0xd0] sm:$0xff] %v3813_v16  ;;  %v3979_v14 = vadd.s32 536870912, %v3978_v5  ;;  %v936_v27 = vmul.f32 %v6749_v31, %v898_v50  ;;  %v1127_v9 = vshll.u32 %v5286_v51, %v1124_v1  ;;  %v1130_v43 = vshll.u32 %v5287_v55, %v1124_v1 }
 0x36b   : > { %v4105_v53 = vmul.f32 %v4104_v56, %v4102_v0  ;;  %v1133_v48 = vshll.u32 %v5288_v57, %v1124_v1  ;;  %v1128_v36 = vshrl.u32 %v5287_v55, %v1125_v11  ;;  %v1131_v20 = vshrl.u32 %v5288_v57, %v1125_v11 }
 0x36c   : > { %v3980_v29 = vshrl.u32 %v3979_v14, 30  ;;  %v1136_v24 = vshll.u32 %v5289_v59, %v1124_v1  ;;  %v1134_v34 = vshrl.u32 %v5289_v59, %v1125_v11  ;;  %v1137_v21 = vshrl.u32 %v5290_v12, %v1125_v11 }
 0x36d   : > { %v4106_v54 = vxor.u32 2147483648, %v4105_v53  ;;  %v1140_v61 = vshrl.u32 %v5291_v22, %v1125_v11  ;;  %v6959_v52 = vand.u32 3, %v4115_v26  ;;  %v1129_v23 = vor.u32 %v1128_v36, %v1127_v9 }
 0x36e   : > { %v3981_v49 = vshll.u32 %v3980_v29, 30  ;;  %v1139_v62 = vshll.u32 %v5290_v12, %v1124_v1  ;;  %v1132_v42 = vor.u32 %v1131_v20, %v1130_v43  ;;  %v1135_v50 = vor.u32 %v1134_v34, %v1133_v48 }
 0x36f   : > { %v4107_v32 = vsel %vm4024_vm11, %v4106_v54, %v4105_v53  ;;  %v1138_v37 = vor.u32 %v1137_v21, %v1136_v24  ;;  %v1158_v14 = vshll.u32 %v1118_v33, 8  ;;  %vm1142_vm7 = vcmp.lt.s32.totalorder %v1123_v10, 1 }
 0x370   : > { %v4110_v16 = vsel %vm6898_vm13, %v6671_v40, %v4107_v32  ;;  %v6967_v0 = vsub.s32 %v3978_v5, %v3981_v49  ;;  %v1141_v56 = vor.u32 %v1140_v61, %v1139_v62  ;;  %vm1145_vm10 = vcmp.lt.s32.totalorder %v1123_v10, 4  ;;  %v741_v61 = vpop.permute.xlu1 %740 }
 0x371   : > { %4978 = vcosq.f32 %v4110_v16  ;;  %v6970_v26 = vadd.f32 %v6775_v39, %v936_v27  ;;  %vm1143_vm11 = vcmp.lt.s32.totalorder %v1123_v10, 2  ;;  %v1147_v53 = vsel %vm1145_vm10, %v1135_v50, 2102212464 }
 0x372   : > { %4980 = vsinq.f32 %v4110_v16  ;;  %v3984_v1 = vsub.s32 0, %v6967_v0  ;;  %v1126_v9 = vshrl.u32 %v5286_v51, %v1125_v11  ;;  %vm1144_vm14 = vcmp.lt.s32.totalorder %v1123_v10, 3 }
 0x373   : > { %v1150_v2 = vsel %vm1142_vm7, %v1129_v23, %v1132_v42  ;;  %v1151_v43 = vsel %vm1145_vm10, %v1138_v37, 920167782  ;;  %v1154_v33 = vsel %vm1142_vm7, %v1132_v42, %v1135_v50  ;;  %v1155_v36 = vsel %vm1145_vm10, %v1141_v56, 1326507024 }
 0x374   : > { %v4651_v5 = vmin.u32 %v3984_v1, %v6967_v0  ;;  %v1152_v48 = vsel %vm1144_vm14, %v1135_v50, %v1151_v43  ;;  %v1146_v20 = vsel %vm1142_vm7, %v1126_v9, %v1129_v23  ;;  %v1148_v24 = vsel %vm1144_vm14, %v1132_v42, %v1147_v53 }
 0x375   : > { %v1153_v27 = vsel %vm1143_vm11, %v1150_v2, %v1152_v48  ;;  %v1156_v54 = vsel %vm1144_vm14, %v1138_v37, %v1155_v36  ;;  %vm3920_vm13 = vcmp.lt.s32.totalorder %v6778_v44, 0  ;;  %v4004_v21 = vsub.s32 4, %v3980_v29 }
 0x376   : > { %v3986_v34 = vclz %v4651_v5  ;;  %vm6979_vm12 = vcmp.le.f32.partialorder %v3918_v30, 0.7853982  ;;  %v1157_v49 = vsel %vm1143_vm11, %v1154_v33, %v1156_v54  ;;  %v1149_v42 = vsel %vm1143_vm11, %v1146_v20, %v1148_v24 }
 0x377   : > { %v6984_v62 = vmul.u32.u64.low %v1158_v14, %v1153_v27  ;;  %v6985_v32 = vmul.u32.u64.high %v1158_v14, %v1153_v27, %v6984_v62  ;;  %v6988_v50 = vmul.u32.u64.low %v1158_v14, %v1157_v49  ;;  %v6989_v37 = vmul.u32.u64.high %v1158_v14, %v1157_v49, %v6988_v50 }
 0x378   : > { %v4652_v23 = vadd.s32 4294967294, %v3986_v34  ;;  %vm4117_vm2 = vcmp.lt.s32.totalorder %v6959_v52, 2  ;;  %vm4118_vm15 = vcmp.eq.s32.totalorder %v6959_v52, 0  ;;  %v1009_v30 = vand.u32 2139095040, %v6970_v26 }
 0x379   : > { %v901_v16 = vsel %vm543_vm1, %v6673_v41, %v741_v61  ;;  %vm4121_vm0 = vcmp.eq.s32.totalorder %v6959_v52, 2  ;;  %v3974_v56 = vadd.s32 %v6911_v13, %v6926_v47  ;;  %v4005_v10 = vsel %vm3920_vm13, %v4004_v21, %v3980_v29 }
 0x37a   : > { %vm4653_vm3 = vcmp.lt.s32.totalorder %v4652_v23, 0  ;;  %v1165_v9 = vmul.u32 %v1158_v14, %v1149_v42  ;;  %v1168_v2 = vadd.s32 1, %v6985_v32  ;;  %v1010_v43 = vshrl.u32 %v1009_v30, 23 }
 0x37b   : > { %v4979_v1 = vpop.eup %4978  ;;  %v3989_v53 = vsel %vm4653_vm3, 0, %v4652_v23  ;;  %v1006_v41 = vand.u32 2147483647, %v6970_v26  ;;  %vm1167_vm4 = vc.u32 %v6989_v37, %v6984_v62  ;;  %v4007_v34 = vsel %vm6979_vm12, 0, %v4005_v10 }
 0x37c   : > { %v4981_v5 = vpop.eup %4980  ;;  %v4122_v48 = vxor.u32 2147483648, %v4979_v1  ;;  %v3990_v33 = vsub.s32 32, %v3989_v53  ;;  %v3994_v36 = vsub.s32 4294967266, %v3989_v53  ;;  %v3991_v24 = vshll.u32 %v6967_v0, %v3989_v53 }
 0x37d   : > { %v4119_v20 = vxor.u32 2147483648, %v4981_v5  ;;  %v4538_v13 = vadd.s32 4294967169, %v1010_v43  ;;  %v1169_v27 = vsel %vm1167_vm4, %v1168_v2, %v6985_v32  ;;  %vm4114_vm5 = vweird.f32 %v6671_v40 }
 0x37e   : > { %v4123_v47 = vsel %vm4121_vm0, %v4122_v48, %v4981_v5  ;;  %v3992_v29 = vshrl.u32 %v3974_v56, %v3990_v33  ;;  %v3995_v14 = vadd.s32 127, %v3994_v36  ;;  %v1170_v21 = vadd.s32 %v1169_v27, %v1165_v9 }
 0x37f   : > { %v4120_v54 = vsel %vm4118_vm15, %v4979_v1, %v4119_v20  ;;  %v1016_v61 = vadd.s32 1, %v4538_v13  ;;  %v939_v32 = vmul.f32 %v6749_v31, %v901_v16  ;;  %v4011_v56 = vadd.s32 3, %v4007_v34 }
 0x380   : > { %v4124_v0 = vsel %vm4117_vm2, %v4120_v54, %v4123_v47  ;;  %v3993_v49 = vor.u32 %v3992_v29, %v3991_v24  ;;  %v3996_v23 = vshll.u32 %v3995_v14, 23  ;;  %v1171_v50 = vadd.s32 536870912, %v1170_v21 }
 0x381   : > { %v4125_v42 = vsel %vm4114_vm5, nan, %v4124_v0  ;;  %vm1017_vm8 = vcmp.gt.s32.totalorder %v1016_v61, 0  ;;  %v1013_v10 = vand.u32 8388607, %v1006_v41  ;;  %vm1112_vm6 = vcmp.lt.s32.totalorder %v6866_v3, 0 }
 0x382   : > { %4363 = vst [vmem:[%s5998_s13 + $0xe8] sm:$0xff] %v4125_v42  ;;  %v3997_v30 = vor.u32 4788187, %v3996_v23  ;;  %v1018_v1 = vsel %vm1017_vm8, %v1016_v61, 0  ;;  %v1172_v53 = vshrl.u32 %v1171_v50, 30  ;;  %v4000_v2 = vcvt.s32.f32 %v3993_v49 }
 0x383   : > { %v1020_v9 = vand.u32 31, %v1018_v1  ;;  %v7021_v48 = vand.u32 3, %v4011_v56  ;;  %v1014_v33 = vor.u32 8388608, %v1013_v10  ;;  %v7024_v16 = vadd.f32 %v6775_v39, %v939_v32 }
 0x384   : > { %v3998_v40 = vand.u32 2147483647, %v3997_v30  ;;  %v1173_v52 = vshll.u32 %v1172_v53, 30  ;;  %v1166_v36 = vadd.s32 %v6984_v62, %v6989_v37  ;;  %v7029_v24 = vshrl.u32 %v1018_v1, 5 }
 0x385   : > { %v1021_v43 = vsub.s32 32, %v1020_v9  ;;  %v1023_v29 = vshll.u32 %v5286_v51, %v1020_v9  ;;  %v1026_v34 = vshll.u32 %v5287_v55, %v1020_v9  ;;  %v1029_v61 = vshll.u32 %v5288_v57, %v1020_v9 }
 0x386   : > { %v4001_v5 = vmul.f32 %v4000_v2, %v3998_v40  ;;  %v7027_v20 = vsub.s32 %v1170_v21, %v1173_v52  ;;  %v1196_v21 = vsub.s32 4, %v1172_v53  ;;  %v1032_v49 = vshll.u32 %v5289_v59, %v1020_v9 }
 0x387   : > { %v1024_v13 = vshrl.u32 %v5287_v55, %v1021_v43  ;;  %v1027_v14 = vshrl.u32 %v5288_v57, %v1021_v43  ;;  %v1030_v27 = vshrl.u32 %v5289_v59, %v1021_v43  ;;  %v1033_v62 = vshrl.u32 %v5290_v12, %v1021_v43 }
 0x388   : > { %v4002_v47 = vxor.u32 2147483648, %v4001_v5  ;;  %v1176_v54 = vsub.s32 0, %v7027_v20  ;;  %v1035_v56 = vshll.u32 %v5290_v12, %v1020_v9  ;;  %v1036_v10 = vshrl.u32 %v5291_v22, %v1021_v43 }
 0x389   : > { %v1025_v0 = vor.u32 %v1024_v13, %v1023_v29  ;;  %v1028_v50 = vor.u32 %v1027_v14, %v1026_v34  ;;  %v1031_v32 = vor.u32 %v1030_v27, %v1029_v61  ;;  %v1034_v30 = vor.u32 %v1033_v62, %v1032_v49 }
 0x38a   : > { %v4003_v37 = vsel %vm3920_vm13, %v4002_v47, %v4001_v5  ;;  %v4543_v42 = vmin.u32 %v1176_v54, %v7027_v20  ;;  %vm7050_vm9 = vcmp.le.f32.partialorder %v1110_v60, 0.7853982  ;;  %v7054_v11 = vshll.u32 %v1014_v33, 8 }
 0x38b   : > { %v4006_v23 = vsel %vm6979_vm12, %v6778_v44, %v4003_v37  ;;  %v1321_v2 = vand.u32 2139095040, %v7024_v16  ;;  %v1197_v52 = vsel %vm1112_vm6, %v1196_v21, %v1172_v53  ;;  %v1022_v5 = vshrl.u32 %v5286_v51, %v1021_v43 }
 0x38c   : > { %4982 = vcosq.f32 %v4006_v23  ;;  %v1178_v40 = vclz %v4543_v42  ;;  %v1037_v9 = vor.u32 %v1036_v10, %v1035_v56  ;;  %vm1038_vm7 = vcmp.lt.s32.totalorder %v7029_v24, 1 }
 0x38d   : > { %4984 = vsinq.f32 %v4006_v23  ;;  %vm1040_vm10 = vcmp.lt.s32.totalorder %v7029_v24, 3  ;;  %vm1041_vm11 = vcmp.lt.s32.totalorder %v7029_v24, 4  ;;  %v1046_v60 = vsel %vm1038_vm7, %v1025_v0, %v1028_v50  ;;  %v737_v23 = vpop.permute.xlu0 %736 }
 0x38e   : > { %v4544_v13 = vadd.s32 4294967294, %v1178_v40  ;;  %v1043_v33 = vsel %vm1041_vm11, %v1031_v32, 2102212464  ;;  %v1047_v47 = vsel %vm1041_vm11, %v1034_v30, 920167782  ;;  %v1050_v29 = vsel %vm1038_vm7, %v1028_v50, %v1031_v32 }
 0x38f   : > { %v1051_v14 = vsel %vm1041_vm11, %v1037_v9, 1326507024  ;;  %vm4014_vm14 = vcmp.eq.s32.totalorder %v7021_v48, 0  ;;  %vm1039_vm12 = vcmp.lt.s32.totalorder %v7029_v24, 2  ;;  %v1048_v53 = vsel %vm1040_vm10, %v1031_v32, %v1047_v47 }
 0x390   : > { %vm4545_vm13 = vcmp.lt.s32.totalorder %v4544_v13, 0  ;;  %v1052_v43 = vsel %vm1040_vm10, %v1034_v30, %v1051_v14  ;;  %vm4013_vm2 = vcmp.lt.s32.totalorder %v7021_v48, 2  ;;  %v1042_v54 = vsel %vm1038_vm7, %v1022_v5, %v1025_v0 }
 0x391   : > { %v1181_v27 = vsel %vm4545_vm13, 0, %v4544_v13  ;;  %v1049_v34 = vsel %vm1039_vm12, %v1046_v60, %v1048_v53  ;;  %v1053_v61 = vsel %vm1039_vm12, %v1050_v29, %v1052_v43  ;;  %vm4010_vm15 = vweird.f32 %v6778_v44 }
 0x392   : > { %v1182_v62 = vsub.s32 32, %v1181_v27  ;;  %v1186_v37 = vsub.s32 4294967266, %v1181_v27  ;;  %v1044_v21 = vsel %vm1040_vm10, %v1028_v50, %v1043_v33  ;;  %v1322_v49 = vshrl.u32 %v1321_v2, 23 }
 0x393   : > { %v7084_v42 = vmul.u32.u64.low %v7054_v11, %v1053_v61  ;;  %v7085_v32 = vmul.u32.u64.high %v7054_v11, %v1053_v61, %v7084_v42  ;;  %v7088_v0 = vmul.u32.u64.low %v7054_v11, %v1049_v34  ;;  %v7089_v30 = vmul.u32.u64.high %v7054_v11, %v1049_v34, %v7088_v0  ;;  %v752_v61 = vpop.permute.xlu1 %751 }
 0x394   : > { %v1183_v56 = vshll.u32 %v7027_v20, %v1181_v27  ;;  %v1184_v10 = vshrl.u32 %v1166_v36, %v1182_v62  ;;  %v1187_v40 = vadd.s32 127, %v1186_v37  ;;  %v4550_v5 = vadd.s32 4294967169, %v1322_v49 }
 0x395   : > { %vm4017_vm0 = vcmp.eq.s32.totalorder %v7021_v48, 2  ;;  %v1199_v50 = vsel %vm7050_vm9, 0, %v1197_v52  ;;  %v1045_v2 = vsel %vm1039_vm12, %v1042_v54, %v1044_v21  ;;  %v900_v13 = vsel %vm543_vm1, %v6657_v25, %v737_v23 }
 0x396   : > { %v4983_v9 = vpop.eup %4982  ;;  %v1185_v47 = vor.u32 %v1184_v10, %v1183_v56  ;;  %v1188_v20 = vshll.u32 %v1187_v40, 23  ;;  %v1328_v36 = vadd.s32 1, %v4550_v5  ;;  %vm1063_vm3 = vc.u32 %v7085_v32, %v7088_v0 }
 0x397   : > { %v4985_v60 = vpop.eup %4984  ;;  %v4018_v33 = vxor.u32 2147483648, %v4983_v9  ;;  %v1064_v14 = vadd.s32 1, %v7089_v30  ;;  %v1318_v52 = vand.u32 2147483647, %v7024_v16  ;;  %v1061_v43 = vmul.u32 %v7054_v11, %v1045_v2 }
 0x398   : > { %v4015_v29 = vxor.u32 2147483648, %v4985_v60  ;;  %v1189_v53 = vor.u32 4788187, %v1188_v20  ;;  %vm1329_vm4 = vcmp.gt.s32.totalorder %v1328_v36, 0  ;;  %v1203_v27 = vadd.s32 3, %v1199_v50 }
 0x399   : > { %v4019_v24 = vsel %vm4017_vm0, %v4018_v33, %v4985_v60  ;;  %v1065_v54 = vsel %vm1063_vm3, %v1064_v14, %v7089_v30  ;;  %v1330_v34 = vsel %vm1329_vm4, %v1328_v36, 0  ;;  %v1192_v21 = vcvt.s32.f32 %v1185_v47 }
 0x39a   : > { %v4016_v25 = vsel %vm4014_vm14, %v4983_v9, %v4015_v29  ;;  %v1190_v37 = vand.u32 2147483647, %v1189_v53  ;;  %v1066_v49 = vadd.s32 %v1065_v54, %v1061_v43  ;;  %v1332_v42 = vand.u32 31, %v1330_v34 }
 0x39b   : > { %v4020_v62 = vsel %vm4013_vm2, %v4016_v25, %v4019_v24  ;;  %v1325_v10 = vand.u32 8388607, %v1318_v52  ;;  %v7119_v30 = vsel %vm543_vm1, %v6695_v19, %v752_v61  ;;  %v7121_v48 = vand.u32 3, %v1203_v27 }
 0x39c   : > { %v4021_v23 = vsel %vm4010_vm15, nan, %v4020_v62  ;;  %v1193_v11 = vmul.f32 %v1192_v21, %v1190_v37  ;;  %v1067_v56 = vadd.s32 536870912, %v1066_v49  ;;  %v1331_v40 = vshrl.u32 %v1330_v34, 5 }
 0x39d   : > { %4362 = vst [vmem:[%s5998_s13 + $0xe0] sm:$0xff] %v4021_v23  ;;  %v1333_v5 = vsub.s32 32, %v1332_v42  ;;  %v938_v9 = vmul.f32 %v6749_v31, %v900_v13  ;;  %v1335_v2 = vshll.u32 %v5286_v51, %v1332_v42  ;;  %v1338_v60 = vshll.u32 %v5287_v55, %v1332_v42 }
 0x39e   : > { %v1194_v44 = vxor.u32 2147483648, %v1193_v11  ;;  %v7124_v50 = vshrl.u32 %v1067_v56, 30  ;;  %v1341_v19 = vshll.u32 %v5288_v57, %v1332_v42  ;;  %v1344_v29 = vshll.u32 %v5289_v59, %v1332_v42 }
 0x39f   : > { %v1336_v33 = vshrl.u32 %v5287_v55, %v1333_v5  ;;  %v1339_v47 = vshrl.u32 %v5288_v57, %v1333_v5  ;;  %v1342_v20 = vshrl.u32 %v5289_v59, %v1333_v5  ;;  %v1345_v14 = vshrl.u32 %v5290_v12, %v1333_v5 }
 0x3a0   : > { %v1195_v36 = vsel %vm1112_vm6, %v1194_v44, %v1193_v11  ;;  %v1069_v13 = vshll.u32 %v7124_v50, 30  ;;  %v1326_v54 = vor.u32 8388608, %v1325_v10  ;;  %v1347_v61 = vshll.u32 %v5290_v12, %v1332_v42 }
 0x3a1   : > { %v1198_v24 = vsel %vm7050_vm9, %v6866_v3, %v1195_v36  ;;  %v1337_v53 = vor.u32 %v1336_v33, %v1335_v2  ;;  %v1340_v43 = vor.u32 %v1339_v47, %v1338_v60  ;;  %v1343_v25 = vor.u32 %v1342_v20, %v1341_v19 }
 0x3a2   : > { %4986 = vcosq.f32 %v1198_v24  ;;  %v7140_v27 = vsub.s32 %v1066_v49, %v1069_v13  ;;  %v1346_v34 = vor.u32 %v1345_v14, %v1344_v29  ;;  %v1348_v62 = vshrl.u32 %v5291_v22, %v1333_v5 }
 0x3a3   : > { %4988 = vsinq.f32 %v1198_v24  ;;  %v7145_v37 = vadd.f32 %v6775_v39, %v938_v9  ;;  %vm1008_vm5 = vcmp.lt.s32.totalorder %v6970_v26, 0  ;;  %vm1350_vm8 = vcmp.lt.s32.totalorder %v1331_v40, 1 }
 0x3a4   : > { %v1072_v1 = vsub.s32 0, %v7140_v27  ;;  %vm1352_vm6 = vcmp.lt.s32.totalorder %v1331_v40, 3  ;;  %vm1353_vm9 = vcmp.lt.s32.totalorder %v1331_v40, 4  ;;  %v1349_v21 = vor.u32 %v1348_v62, %v1347_v61 }
 0x3a5   : > { %v1355_v49 = vsel %vm1353_vm9, %v1343_v25, 2102212464  ;;  %v1358_v23 = vsel %vm1350_vm8, %v1337_v53, %v1340_v43  ;;  %v1359_v11 = vsel %vm1353_vm9, %v1346_v34, 920167782  ;;  %v1334_v42 = vshrl.u32 %v5286_v51, %v1333_v5 }
 0x3a6   : > { %v4539_v56 = vmin.u32 %v1072_v1, %v7140_v27  ;;  %vm1351_vm7 = vcmp.lt.s32.totalorder %v1331_v40, 2  ;;  %v1360_v39 = vsel %vm1352_vm6, %v1343_v25, %v1359_v11  ;;  %v1362_v9 = vsel %vm1350_vm8, %v1340_v43, %v1343_v25 }
 0x3a7   : > { %v1361_v10 = vsel %vm1351_vm7, %v1358_v23, %v1360_v39  ;;  %v1363_v44 = vsel %vm1353_vm9, %v1349_v21, 1326507024  ;;  %v1366_v2 = vshll.u32 %v1326_v54, 8  ;;  %vm1205_vm10 = vcmp.lt.s32.totalorder %v7121_v48, 2 }
 0x3a8   : > { %vm1206_vm11 = vcmp.eq.s32.totalorder %v7121_v48, 0  ;;  %vm7159_vm14 = vcmp.le.f32.partialorder %v1006_v41, 0.7853982  ;;  %v1074_v5 = vclz %v4539_v56  ;;  %v1354_v33 = vsel %vm1350_vm8, %v1334_v42, %v1337_v53 }
 0x3a9   : > { %v1356_v47 = vsel %vm1352_vm6, %v1340_v43, %v1355_v49  ;;  %vm1202_vm13 = vweird.f32 %v6866_v3  ;;  %v1092_v19 = vsub.s32 4, %v7124_v50  ;;  %v1364_v20 = vsel %vm1352_vm6, %v1346_v34, %v1363_v44  ;;  %v7208_v3 = vld [vmem:[%s8548_s5] ss:$0 sm:$0xff] }
 0x3aa   : > { %v7168_v36 = vmul.u32.u64.low %v1366_v2, %v1361_v10  ;;  %v7169_v13 = vmul.u32.u64.high %v1366_v2, %v1361_v10, %v7168_v36  ;;  %vm1209_vm12 = vcmp.eq.s32.totalorder %v7121_v48, 2  ;;  %v4540_v41 = vadd.s32 4294967294, %v1074_v5 }
 0x3ab   : > { %v1365_v29 = vsel %vm1351_vm7, %v1362_v9, %v1364_v20  ;;  %v1217_v14 = vand.u32 2139095040, %v7145_v37  ;;  %v1357_v24 = vsel %vm1351_vm7, %v1354_v33, %v1356_v47  ;;  %v941_v25 = vmul.f32 %v6749_v31, %v7119_v30  ;;  %v748_v20 = vpop.permute.xlu0 %747 }
 0x3ac   : > { %v7175_v53 = vmul.u32.u64.low %v1366_v2, %v1365_v29  ;;  %v7176_v43 = vmul.u32.u64.high %v1366_v2, %v1365_v29, %v7175_v53  ;;  %v4987_v54 = vpop.eup %4986  ;;  %v1062_v34 = vadd.s32 %v7088_v0, %v7085_v32  ;;  %vm4541_vm2 = vcmp.lt.s32.totalorder %v4540_v41, 0 }
 0x3ad   : > { %v1214_v61 = vand.u32 2147483647, %v7145_v37  ;;  %v1218_v62 = vshrl.u32 %v1217_v14, 23  ;;  %v4989_v1 = vpop.eup %4988  ;;  %v1210_v21 = vxor.u32 2147483648, %v4987_v54  ;;  %v1077_v49 = vsel %vm4541_vm2, 0, %v4540_v41 }
 0x3ae   : > { %v1093_v40 = vsel %vm1008_vm5, %v1092_v19, %v7124_v50  ;;  %v1376_v23 = vadd.s32 1, %v7169_v13  ;;  %v1207_v11 = vxor.u32 2147483648, %v4989_v1  ;;  %v1078_v56 = vsub.s32 32, %v1077_v49 }
 0x3af   : > { %v1082_v31 = vsub.s32 4294967266, %v1077_v49  ;;  %v1373_v30 = vmul.u32 %v1366_v2, %v1357_v24  ;;  %v1211_v32 = vsel %vm1209_vm12, %v1210_v21, %v4989_v1  ;;  %v1079_v0 = vshll.u32 %v7140_v27, %v1077_v49 }
 0x3b0   : > { %vm1375_vm15 = vc.u32 %v7176_v43, %v7168_v36  ;;  %v4546_v42 = vadd.s32 4294967169, %v1218_v62  ;;  %v1208_v39 = vsel %vm1206_vm11, %v4987_v54, %v1207_v11  ;;  %v1080_v10 = vshrl.u32 %v1062_v34, %v1078_v56  ;;  %v7222_v56 = vld [vmem:[%s8547_s4] ss:$0 sm:$0xff] }
 0x3b1   : > { %v1083_v50 = vadd.s32 127, %v1082_v31  ;;  %v1377_v9 = vsel %vm1375_vm15, %v1376_v23, %v7169_v13  ;;  %v1212_v44 = vsel %vm1205_vm10, %v1208_v39, %v1211_v32  ;;  %v1095_v2 = vsel %vm7159_vm14, 0, %v1093_v40 }
 0x3b2   : > { %v1378_v5 = vadd.s32 %v1377_v9, %v1373_v30  ;;  %v1224_v33 = vadd.s32 1, %v4546_v42  ;;  %v1213_v27 = vsel %vm1202_vm13, nan, %v1212_v44  ;;  %v1081_v47 = vor.u32 %v1080_v10, %v1079_v0 }
 0x3b3   : > { %v1084_v19 = vshll.u32 %v1083_v50, 23  ;;  %4335 = vst [vmem:[%s5998_s13 + $0x8] sm:$0xff] %v1213_v27  ;;  %v1099_v14 = vadd.s32 3, %v1095_v2  ;;  %v1221_v48 = vand.u32 8388607, %v1214_v61  ;;  %v7211_v54 = vadd.f32 %v7208_v3, %v941_v25 }
 0x3b4   : > { %v1379_v41 = vadd.s32 536870912, %v1378_v5  ;;  %vm1225_vm0 = vcmp.gt.s32.totalorder %v1224_v33, 0  ;;  %v902_v34 = vsel %vm543_vm1, %v6808_v28, %v748_v20  ;;  %v1088_v1 = vcvt.s32.f32 %v1081_v47 }
 0x3b5   : > { %v1085_v29 = vor.u32 4788187, %v1084_v19  ;;  %v1226_v13 = vsel %vm1225_vm0, %v1224_v33, 0  ;;  %v7217_v23 = vand.u32 3, %v1099_v14  ;;  %v1222_v11 = vor.u32 8388608, %v1221_v48 }
 0x3b6   : > { %v7203_v24 = vshrl.u32 %v1379_v41, 30  ;;  %v1228_v53 = vand.u32 31, %v1226_v13  ;;  %v7225_v25 = vmul.f32 %v7222_v56, %v902_v34  ;;  %v1374_v31 = vadd.s32 %v7168_v36, %v7176_v43 }
 0x3b7   : > { %v1086_v62 = vand.u32 2147483647, %v1085_v29  ;;  %v1529_v32 = vand.u32 2139095040, %v7211_v54  ;;  %v1227_v2 = vshrl.u32 %v1226_v13, 5  ;;  %vm1320_vm3 = vcmp.lt.s32.totalorder %v7024_v16, 0 }
 0x3b8   : > { %v1381_v21 = vshll.u32 %v7203_v24, 30  ;;  %v1229_v49 = vsub.s32 32, %v1228_v53  ;;  %v1231_v42 = vshll.u32 %v5286_v51, %v1228_v53  ;;  %v1234_v9 = vshll.u32 %v5287_v55, %v1228_v53 }
 0x3b9   : > { %v1089_v40 = vmul.f32 %v1088_v1, %v1086_v62  ;;  %v1237_v44 = vshll.u32 %v5288_v57, %v1228_v53  ;;  %v1240_v33 = vshll.u32 %v5289_v59, %v1228_v53  ;;  %v1243_v29 = vshll.u32 %v5290_v12, %v1228_v53 }
 0x3ba   : > { %v7228_v28 = vsub.s32 %v1378_v5, %v1381_v21  ;;  %v1232_v30 = vshrl.u32 %v5287_v55, %v1229_v49  ;;  %v1235_v39 = vshrl.u32 %v5288_v57, %v1229_v49  ;;  %v1238_v10 = vshrl.u32 %v5289_v59, %v1229_v49 }
 0x3bb   : > { %v1090_v0 = vxor.u32 2147483648, %v1089_v40  ;;  %v1241_v36 = vshrl.u32 %v5290_v12, %v1229_v49  ;;  %v1244_v14 = vshrl.u32 %v5291_v22, %v1229_v49  ;;  %v7249_v13 = vshll.u32 %v1222_v11, 8 }
 0x3bc   : > { %v1384_v50 = vsub.s32 0, %v7228_v28  ;;  %v1233_v5 = vor.u32 %v1232_v30, %v1231_v42  ;;  %v1236_v19 = vor.u32 %v1235_v39, %v1234_v9  ;;  %v1239_v20 = vor.u32 %v1238_v10, %v1237_v44 }
 0x3bd   : > { %v1091_v43 = vsel %vm1008_vm5, %v1090_v0, %v1089_v40  ;;  %v1242_v41 = vor.u32 %v1241_v36, %v1240_v33  ;;  %v1530_v34 = vshrl.u32 %v1529_v32, 23  ;;  %v1404_v60 = vsub.s32 4, %v7203_v24 }
 0x3be   : > { %v1094_v27 = vsel %vm7159_vm14, %v6970_v26, %v1091_v43  ;;  %v4551_v47 = vmin.u32 %v1384_v50, %v7228_v28  ;;  %v1230_v62 = vshrl.u32 %v5286_v51, %v1229_v49  ;;  %v1245_v1 = vor.u32 %v1244_v14, %v1243_v29 }
 0x3bf   : > { %4990 = vcosq.f32 %v1094_v27  ;;  %vm1246_vm4 = vcmp.lt.s32.totalorder %v1227_v2, 1  ;;  %vm1248_vm5 = vcmp.lt.s32.totalorder %v1227_v2, 3  ;;  %vm1249_vm8 = vcmp.lt.s32.totalorder %v1227_v2, 4 }
 0x3c0   : > { %4992 = vsinq.f32 %v1094_v27  ;;  %v1386_v48 = vclz %v4551_v47  ;;  %v1254_v53 = vsel %vm1246_vm4, %v1233_v5, %v1236_v19  ;;  %v1251_v40 = vsel %vm1249_vm8, %v1239_v20, 2102212464 }
 0x3c1   : > { %v1255_v30 = vsel %vm1249_vm8, %v1242_v41, 920167782  ;;  %v1258_v0 = vsel %vm1246_vm4, %v1236_v19, %v1239_v20  ;;  %v1259_v42 = vsel %vm1249_vm8, %v1245_v1, 1326507024  ;;  %vm7257_vm6 = vcmp.le.f32.partialorder %v1318_v52, 0.7853982 }
 0x3c2   : > { %v4552_v21 = vadd.s32 4294967294, %v1386_v48  ;;  %vm1247_vm7 = vcmp.lt.s32.totalorder %v1227_v2, 2  ;;  %v1256_v49 = vsel %vm1248_vm5, %v1239_v20, %v1255_v30  ;;  %v1260_v32 = vsel %vm1248_vm5, %v1242_v41, %v1259_v42 }
 0x3c3   : > { %vm1101_vm10 = vcmp.lt.s32.totalorder %v7217_v23, 2  ;;  %v1250_v10 = vsel %vm1246_vm4, %v1230_v62, %v1233_v5  ;;  %v1257_v50 = vsel %vm1247_vm7, %v1254_v53, %v1256_v49  ;;  %v1261_v9 = vsel %vm1247_vm7, %v1258_v0, %v1260_v32 }
 0x3c4   : > { %vm4553_vm9 = vcmp.lt.s32.totalorder %v4552_v21, 0  ;;  %vm1098_vm11 = vweird.f32 %v6970_v26  ;;  %v1252_v36 = vsel %vm1248_vm5, %v1236_v19, %v1251_v40  ;;  %v4558_v43 = vadd.s32 4294967169, %v1530_v34 }
 0x3c5   : > { %v1389_v39 = vsel %vm4553_vm9, 0, %v4552_v21  ;;  %v7270_v33 = vmul.u32.u64.low %v7249_v13, %v1261_v9  ;;  %v7271_v27 = vmul.u32.u64.high %v7249_v13, %v1261_v9, %v7270_v33  ;;  %vm1102_vm14 = vcmp.eq.s32.totalorder %v7217_v23, 0 }
 0x3c6   : > { %v1390_v52 = vsub.s32 32, %v1389_v39  ;;  %v1394_v44 = vsub.s32 4294967266, %v1389_v39  ;;  %v7274_v47 = vmul.u32.u64.low %v7249_v13, %v1257_v50  ;;  %v7275_v20 = vmul.u32.u64.high %v7249_v13, %v1257_v50, %v7274_v47 }
 0x3c7   : > { %v1391_v5 = vshll.u32 %v7228_v28, %v1389_v39  ;;  %v1536_v14 = vadd.s32 1, %v4558_v43  ;;  %vm1105_vm13 = vcmp.eq.s32.totalorder %v7217_v23, 2  ;;  %v1405_v19 = vsel %vm1320_vm3, %v1404_v60, %v7203_v24 }
 0x3c8   : > { %v1392_v41 = vshrl.u32 %v1374_v31, %v1390_v52  ;;  %v1395_v29 = vadd.s32 127, %v1394_v44  ;;  %v1253_v34 = vsel %vm1247_vm7, %v1250_v10, %v1252_v36  ;;  %vm1271_vm2 = vc.u32 %v7271_v27, %v7274_v47 }
 0x3c9   : > { %v4991_v48 = vpop.eup %4990  ;;  %vm1537_vm12 = vcmp.gt.s32.totalorder %v1536_v14, 0  ;;  %v1272_v31 = vadd.s32 1, %v7275_v20  ;;  %v1526_v40 = vand.u32 2147483647, %v7211_v54  ;;  %v1269_v24 = vmul.u32 %v7249_v13, %v1253_v34 }
 0x3ca   : > { %v4993_v62 = vpop.eup %4992  ;;  %v1106_v1 = vxor.u32 2147483648, %v4991_v48  ;;  %v1393_v21 = vor.u32 %v1392_v41, %v1391_v5  ;;  %v1396_v53 = vshll.u32 %v1395_v29, 23  ;;  %v1538_v2 = vsel %vm1537_vm12, %v1536_v14, 0 }
 0x3cb   : > { %v1103_v28 = vxor.u32 2147483648, %v4993_v62  ;;  %v1407_v42 = vsel %vm7257_vm6, 0, %v1405_v19  ;;  %v1273_v49 = vsel %vm1271_vm2, %v1272_v31, %v7275_v20  ;;  %v1540_v32 = vand.u32 31, %v1538_v2 }
 0x3cc   : > { %v1107_v30 = vsel %vm1105_vm13, %v1106_v1, %v4993_v62  ;;  %v1397_v0 = vor.u32 4788187, %v1396_v53  ;;  %v1400_v50 = vcvt.s32.f32 %v1393_v21  ;;  %v1274_v9 = vadd.s32 %v1273_v49, %v1269_v24 }
 0x3cd   : > { %v1104_v60 = vsel %vm1102_vm14, %v4991_v48, %v1103_v28  ;;  %v1533_v13 = vand.u32 8388607, %v1526_v40  ;;  %v1541_v44 = vsub.s32 32, %v1540_v32  ;;  %v7303_v36 = vadd.f32 %v7208_v3, %v7225_v25 }
 0x3ce   : > { %v1108_v39 = vsel %vm1101_vm10, %v1104_v60, %v1107_v30  ;;  %v1398_v10 = vand.u32 2147483647, %v1397_v0  ;;  %v1411_v33 = vadd.s32 3, %v1407_v42  ;;  %v1275_v20 = vadd.s32 536870912, %v1274_v9 }
 0x3cf   : > { %v1109_v52 = vsel %vm1098_vm11, nan, %v1108_v39  ;;  %v1539_v23 = vshrl.u32 %v1538_v2, 5  ;;  %v1543_v5 = vshll.u32 %v5286_v51, %v1540_v32  ;;  %v1544_v41 = vshrl.u32 %v5287_v55, %v1541_v44 }
 0x3d0   : > { %4334 = vst [vmem:[%s5998_s13] sm:$0xff] %v1109_v52  ;;  %v1401_v43 = vmul.f32 %v1400_v50, %v1398_v10  ;;  %v1547_v26 = vshrl.u32 %v5288_v57, %v1541_v44  ;;  %v1550_v29 = vshrl.u32 %v5289_v59, %v1541_v44  ;;  %v1276_v48 = vshrl.u32 %v1275_v20, 30 }
 0x3d1   : > { %v1546_v19 = vshll.u32 %v5287_v55, %v1540_v32  ;;  %v1553_v25 = vshrl.u32 %v5290_v12, %v1541_v44  ;;  %v1549_v34 = vshll.u32 %v5288_v57, %v1540_v32  ;;  %v1552_v62 = vshll.u32 %v5289_v59, %v1540_v32 }
 0x3d2   : > { %v1402_v14 = vxor.u32 2147483648, %v1401_v43  ;;  %v1555_v1 = vshll.u32 %v5290_v12, %v1540_v32  ;;  %v1556_v21 = vshrl.u32 %v5291_v22, %v1541_v44  ;;  %v1277_v28 = vshll.u32 %v1276_v48, 30 }
 0x3d3   : > { %v1545_v31 = vor.u32 %v1544_v41, %v1543_v5  ;;  %v1548_v30 = vor.u32 %v1547_v26, %v1546_v19  ;;  %v1551_v24 = vor.u32 %v1550_v29, %v1549_v34  ;;  %v1554_v2 = vor.u32 %v1553_v25, %v1552_v62 }
 0x3d4   : > { %v1403_v53 = vsel %vm1320_vm3, %v1402_v14, %v1401_v43  ;;  %v1557_v60 = vor.u32 %v1556_v21, %v1555_v1  ;;  %v7321_v42 = vand.u32 3, %v1411_v33  ;;  %v7323_v49 = vsub.s32 %v1274_v9, %v1277_v28 }
 0x3d5   : > { %v1406_v0 = vsel %vm7257_vm6, %v7024_v16, %v1403_v53  ;;  %v1422_v32 = vand.u32 2147483647, %v7303_v36  ;;  %vm1216_vm15 = vcmp.lt.s32.totalorder %v7145_v37, 0  ;;  %v1534_v39 = vor.u32 8388608, %v1533_v13 }
 0x3d6   : > { %4994 = vcosq.f32 %v1406_v0  ;;  %vm1558_vm0 = vcmp.lt.s32.totalorder %v1539_v23, 1  ;;  %v1425_v10 = vand.u32 2139095040, %v7303_v36  ;;  %v1280_v11 = vsub.s32 0, %v7323_v49 }
 0x3d7   : > { %4996 = vsinq.f32 %v1406_v0  ;;  %vm1560_vm3 = vcmp.lt.s32.totalorder %v1539_v23, 3  ;;  %vm1561_vm4 = vcmp.lt.s32.totalorder %v1539_v23, 4  ;;  %v1566_v50 = vsel %vm1558_vm0, %v1545_v31, %v1548_v30 }
 0x3d8   : > { %v1542_v52 = vshrl.u32 %v5286_v51, %v1541_v44  ;;  %v1563_v43 = vsel %vm1561_vm4, %v1551_v24, 2102212464  ;;  %v1567_v9 = vsel %vm1561_vm4, %v1554_v2, 920167782  ;;  %v1571_v33 = vsel %vm1561_vm4, %v1557_v60, 1326507024 }
 0x3d9   : > { %v4547_v20 = vmin.u32 %v1280_v11, %v7323_v49  ;;  %vm1559_vm5 = vcmp.lt.s32.totalorder %v1539_v23, 2  ;;  %v1568_v5 = vsel %vm1560_vm3, %v1551_v24, %v1567_v9  ;;  %v1570_v13 = vsel %vm1558_vm0, %v1548_v30, %v1551_v24 }
 0x3da   : > { %v1569_v41 = vsel %vm1559_vm5, %v1566_v50, %v1568_v5  ;;  %v1572_v26 = vsel %vm1560_vm3, %v1554_v2, %v1571_v33  ;;  %v1574_v29 = vshll.u32 %v1534_v39, 8  ;;  %v1426_v14 = vshrl.u32 %v1425_v10, 23  ;;  %v763_v5 = vpop.permute.xlu1 %762 }
 0x3db   : > { %v1282_v19 = vclz %v4547_v20  ;;  %v1300_v25 = vsub.s32 4, %v1276_v48  ;;  %v1562_v44 = vsel %vm1558_vm0, %v1542_v52, %v1545_v31  ;;  %v1564_v34 = vsel %vm1560_vm3, %v1548_v30, %v1563_v43 }
 0x3dc   : > { %vm1410_vm8 = vweird.f32 %v7024_v16  ;;  %v1573_v62 = vsel %vm1559_vm5, %v1570_v13, %v1572_v26  ;;  %v7340_v1 = vmul.u32.u64.low %v1574_v29, %v1569_v41  ;;  %v7341_v21 = vmul.u32.u64.high %v1574_v29, %v1569_v41, %v7340_v1 }
 0x3dd   : > { %v4554_v53 = vadd.s32 4294967169, %v1426_v14  ;;  %vm1413_vm6 = vcmp.lt.s32.totalorder %v7321_v42, 2  ;;  %v4548_v28 = vadd.s32 4294967294, %v1282_v19  ;;  %vm1414_vm9 = vcmp.eq.s32.totalorder %v7321_v42, 0 }
 0x3de   : > { %v7345_v0 = vmul.u32.u64.low %v1574_v29, %v1573_v62  ;;  %v7346_v24 = vmul.u32.u64.high %v1574_v29, %v1573_v62, %v7345_v0  ;;  %vm1417_vm7 = vcmp.eq.s32.totalorder %v7321_v42, 2  ;;  %v1565_v31 = vsel %vm1559_vm5, %v1562_v44, %v1564_v34  ;;  %v759_v34 = vpop.permute.xlu0 %758 }
 0x3df   : > { %v1432_v30 = vadd.s32 1, %v4554_v53  ;;  %v1270_v60 = vadd.s32 %v7274_v47, %v7271_v27  ;;  %vm4549_vm10 = vcmp.lt.s32.totalorder %v4548_v28, 0  ;;  %v1301_v39 = vsel %vm1216_vm15, %v1300_v25, %v1276_v48 }
 0x3e0   : > { %v4995_v2 = vpop.eup %4994  ;;  %v1429_v10 = vand.u32 8388607, %v1422_v32  ;;  %v1285_v52 = vsel %vm4549_vm10, 0, %v4548_v28  ;;  %v1584_v43 = vadd.s32 1, %v7341_v21  ;;  %v1581_v20 = vmul.u32 %v1574_v29, %v1565_v31 }
 0x3e1   : > { %v4997_v11 = vpop.eup %4996  ;;  %v1418_v50 = vxor.u32 2147483648, %v4995_v2  ;;  %vm1433_vm11 = vcmp.gt.s32.totalorder %v1432_v30, 0  ;;  %v1286_v9 = vsub.s32 32, %v1285_v52  ;;  %v1290_v33 = vsub.s32 4294967266, %v1285_v52 }
 0x3e2   : > { %v1415_v23 = vxor.u32 2147483648, %v4997_v11  ;;  %v1287_v47 = vshll.u32 %v7323_v49, %v1285_v52  ;;  %vm1583_vm14 = vc.u32 %v7346_v24, %v7340_v1  ;;  %v1434_v48 = vsel %vm1433_vm11, %v1432_v30, 0 }
 0x3e3   : > { %v1419_v27 = vsel %vm1417_vm7, %v1418_v50, %v4997_v11  ;;  %v1288_v41 = vshrl.u32 %v1270_v60, %v1286_v9  ;;  %v1291_v26 = vadd.s32 127, %v1290_v33  ;;  %v1585_v14 = vsel %vm1583_vm14, %v1584_v43, %v7341_v21 }
 0x3e4   : > { %v1416_v13 = vsel %vm1414_vm9, %v4995_v2, %v1415_v23  ;;  %v1586_v19 = vadd.s32 %v1585_v14, %v1581_v20  ;;  %v1436_v25 = vand.u32 31, %v1434_v48  ;;  %v905_v49 = vsel %vm543_vm1, %v6707_v63, %v763_v5 }
 0x3e5   : > { %v1420_v29 = vsel %vm1413_vm6, %v1416_v13, %v1419_v27  ;;  %vm7375_vm13 = vcmp.le.f32.partialorder %v1214_v61, 0.7853982  ;;  %v1289_v62 = vor.u32 %v1288_v41, %v1287_v47  ;;  %v1292_v21 = vshll.u32 %v1291_v26, 23 }
 0x3e6   : > { %v1421_v44 = vsel %vm1410_vm8, nan, %v1420_v29  ;;  %v1303_v42 = vsel %vm7375_vm13, 0, %v1301_v39  ;;  %v1587_v53 = vadd.s32 536870912, %v1586_v19  ;;  %v1437_v28 = vsub.s32 32, %v1436_v25 }
 0x3e7   : > { %4337 = vst [vmem:[%s5998_s13 + $0x18] sm:$0xff] %v1421_v44  ;;  %v1293_v0 = vor.u32 4788187, %v1292_v21  ;;  %v1430_v31 = vor.u32 8388608, %v1429_v10  ;;  %v1435_v63 = vshrl.u32 %v1434_v48, 5  ;;  %v943_v16 = vmul.f32 %v7222_v56, %v905_v49 }
 0x3e8   : > { %v1296_v30 = vcvt.s32.f32 %v1289_v62  ;;  %v7383_v2 = vshrl.u32 %v1587_v53, 30  ;;  %v1440_v61 = vshrl.u32 %v5287_v55, %v1437_v28  ;;  %v1443_v60 = vshrl.u32 %v5288_v57, %v1437_v28 }
 0x3e9   : > { %v1294_v11 = vand.u32 2147483647, %v1293_v0  ;;  %v1446_v50 = vshrl.u32 %v5289_v59, %v1437_v28  ;;  %v1448_v52 = vshll.u32 %v5289_v59, %v1436_v25  ;;  %v1449_v39 = vshrl.u32 %v5290_v12, %v1437_v28 }
 0x3ea   : > { %v1589_v43 = vshll.u32 %v7383_v2, 30  ;;  %v1439_v10 = vshll.u32 %v5286_v51, %v1436_v25  ;;  %v1442_v23 = vshll.u32 %v5287_v55, %v1436_v25  ;;  %v1445_v9 = vshll.u32 %v5288_v57, %v1436_v25 }
 0x3eb   : > { %v1297_v33 = vmul.f32 %v1296_v30, %v1294_v11  ;;  %v1450_v20 = vor.u32 %v1449_v39, %v1448_v52  ;;  %v1452_v5 = vshrl.u32 %v5291_v22, %v1437_v28  ;;  %v1307_v26 = vadd.s32 3, %v1303_v42 }
 0x3ec   : > { %v7395_v27 = vsub.s32 %v1586_v19, %v1589_v43  ;;  %v1441_v47 = vor.u32 %v1440_v61, %v1439_v10  ;;  %v1444_v48 = vor.u32 %v1443_v60, %v1442_v23  ;;  %v1447_v13 = vor.u32 %v1446_v50, %v1445_v9 }
 0x3ed   : > { %v1298_v41 = vxor.u32 2147483648, %v1297_v33  ;;  %v1451_v14 = vshll.u32 %v5290_v12, %v1436_v25  ;;  %v7398_v29 = vshll.u32 %v1430_v31, 8  ;;  %vm1454_vm12 = vcmp.lt.s32.totalorder %v1435_v63, 1 }
 0x3ee   : > { %v1592_v49 = vsub.s32 0, %v7395_v27  ;;  %vm1457_vm2 = vcmp.lt.s32.totalorder %v1435_v63, 4  ;;  %v7402_v44 = vadd.f32 %v7208_v3, %v943_v16  ;;  %vm1528_vm0 = vcmp.lt.s32.totalorder %v7211_v54, 0 }
 0x3ef   : > { %v1299_v19 = vsel %vm1216_vm15, %v1298_v41, %v1297_v33  ;;  %v1453_v62 = vor.u32 %v1452_v5, %v1451_v14  ;;  %vm1456_vm3 = vcmp.lt.s32.totalorder %v1435_v63, 3  ;;  %v1463_v21 = vsel %vm1457_vm2, %v1450_v20, 920167782 }
 0x3f0   : > { %v1302_v25 = vsel %vm7375_vm13, %v7145_v37, %v1299_v19  ;;  %v4559_v42 = vmin.u32 %v1592_v49, %v7395_v27  ;;  %v1459_v53 = vsel %vm1457_vm2, %v1447_v13, 2102212464  ;;  %v1462_v0 = vsel %vm1454_vm12, %v1441_v47, %v1444_v48 }
 0x3f1   : > { %4998 = vcosq.f32 %v1302_v25  ;;  %v1612_v31 = vsub.s32 4, %v7383_v2  ;;  %v1438_v16 = vshrl.u32 %v5286_v51, %v1437_v28  ;;  %v1464_v30 = vsel %vm1456_vm3, %v1447_v13, %v1463_v21 }
 0x3f2   : > { %5000 = vsinq.f32 %v1302_v25  ;;  %v1594_v61 = vclz %v4559_v42  ;;  %vm1455_vm15 = vcmp.lt.s32.totalorder %v1435_v63, 2  ;;  %v1466_v60 = vsel %vm1454_vm12, %v1444_v48, %v1447_v13 }
 0x3f3   : > { %v1458_v11 = vsel %vm1454_vm12, %v1438_v16, %v1441_v47  ;;  %v1460_v50 = vsel %vm1456_vm3, %v1444_v48, %v1459_v53  ;;  %v1465_v52 = vsel %vm1455_vm15, %v1462_v0, %v1464_v30  ;;  %v1467_v39 = vsel %vm1457_vm2, %v1453_v62, 1326507024 }
 0x3f4   : > { %v4560_v43 = vadd.s32 4294967294, %v1594_v61  ;;  %v1468_v10 = vsel %vm1456_vm3, %v1450_v20, %v1467_v39  ;;  %v7423_v28 = vmul.u32.u64.low %v7398_v29, %v1465_v52  ;;  %v7424_v23 = vmul.u32.u64.high %v7398_v29, %v1465_v52, %v7423_v28 }
 0x3f5   : > { %v1308_v9 = vand.u32 3, %v1307_v26  ;;  %v1469_v33 = vsel %vm1455_vm15, %v1466_v60, %v1468_v10  ;;  %v1737_v5 = vand.u32 2139095040, %v7402_v44  ;;  %v904_v47 = vsel %vm543_vm1, %v6831_v38, %v759_v34 }
 0x3f6   : > { %vm4561_vm4 = vcmp.lt.s32.totalorder %v4560_v43, 0  ;;  %v1461_v48 = vsel %vm1455_vm15, %v1458_v11, %v1460_v50  ;;  %v7432_v13 = vmul.u32.u64.low %v7398_v29, %v1469_v33  ;;  %v7433_v41 = vmul.u32.u64.high %v7398_v29, %v1469_v33, %v7432_v13 }
 0x3f7   : > { %vm7437_vm5 = vcmp.le.f32.partialorder %v1526_v40, 0.7853982  ;;  %v1582_v20 = vadd.s32 %v7340_v1, %v7346_v24  ;;  %v1597_v26 = vsel %vm4561_vm4, 0, %v4560_v43  ;;  %v1738_v14 = vshrl.u32 %v1737_v5, 23  ;;  %v774_v5 = vpop.permute.xlu1 %773 }
 0x3f8   : > { %vm1306_vm8 = vweird.f32 %v7145_v37  ;;  %v1598_v38 = vsub.s32 32, %v1597_v26  ;;  %v1602_v49 = vsub.s32 4294967266, %v1597_v26  ;;  %v1613_v19 = vsel %vm1528_vm0, %v1612_v31, %v7383_v2 }
 0x3f9   : > { %v1480_v62 = vadd.s32 1, %v7424_v23  ;;  %vm1309_vm6 = vcmp.lt.s32.totalorder %v1308_v9, 2  ;;  %v1477_v40 = vmul.u32 %v7398_v29, %v1461_v48  ;;  %v4566_v21 = vadd.s32 4294967169, %v1738_v14 }
 0x3fa   : > { %v942_v25 = vmul.f32 %v7222_v56, %v904_v47  ;;  %v1599_v1 = vshll.u32 %v7395_v27, %v1597_v26  ;;  %v1600_v24 = vshrl.u32 %v1582_v20, %v1598_v38  ;;  %v1603_v42 = vadd.s32 127, %v1602_v49 }
 0x3fb   : > { %vm1479_vm9 = vc.u32 %v7433_v41, %v7423_v28  ;;  %v4999_v53 = vpop.eup %4998  ;;  %v1615_v0 = vsel %vm7437_vm5, 0, %v1613_v19  ;;  %v1734_v31 = vand.u32 2147483647, %v7402_v44  ;;  %v1744_v16 = vadd.s32 1, %v4566_v21 }
 0x3fc   : > { %v1481_v2 = vsel %vm1479_vm9, %v1480_v62, %v7424_v23  ;;  %v5001_v29 = vpop.eup %5000  ;;  %v1314_v30 = vxor.u32 2147483648, %v4999_v53  ;;  %v1601_v61 = vor.u32 %v1600_v24, %v1599_v1  ;;  %v1604_v60 = vshll.u32 %v1603_v42, 23 }
 0x3fd   : > { %v1482_v34 = vadd.s32 %v1481_v2, %v1477_v40  ;;  %vm1310_vm7 = vcmp.eq.s32.totalorder %v1308_v9, 0  ;;  %v1311_v27 = vxor.u32 2147483648, %v5001_v29  ;;  %vm1313_vm10 = vcmp.eq.s32.totalorder %v1308_v9, 2 }
 0x3fe   : > { %vm1745_vm11 = vcmp.gt.s32.totalorder %v1744_v16, 0  ;;  %v1315_v11 = vsel %vm1313_vm10, %v1314_v30, %v5001_v29  ;;  %v1605_v50 = vor.u32 4788187, %v1604_v60  ;;  %v1619_v52 = vadd.s32 3, %v1615_v0 }
 0x3ff   : > { %v1483_v39 = vadd.s32 536870912, %v1482_v34  ;;  %v1312_v43 = vsel %vm1310_vm7, %v4999_v53, %v1311_v27  ;;  %v1741_v10 = vand.u32 8388607, %v1734_v31  ;;  %v1746_v23 = vsel %vm1745_vm11, %v1744_v16, 0 }
 0x400   : > { %v7460_v33 = vadd.f32 %v7208_v3, %v942_v25  ;;  %v1316_v47 = vsel %vm1309_vm6, %v1312_v43, %v1315_v11  ;;  %v1606_v48 = vand.u32 2147483647, %v1605_v50  ;;  %v1608_v13 = vcvt.s32.f32 %v1601_v61 }
 0x401   : > { %v1484_v20 = vshrl.u32 %v1483_v39, 30  ;;  %v1317_v26 = vsel %vm1306_vm8, nan, %v1316_v47  ;;  %v1748_v14 = vand.u32 31, %v1746_v23  ;;  %v7466_v49 = vand.u32 3, %v1619_v52 }
 0x402   : > { %4336 = vst [vmem:[%s5998_s13 + $0x10] sm:$0xff] %v1317_v26  ;;  %v1609_v38 = vmul.f32 %v1608_v13, %v1606_v48  ;;  %vm1424_vm14 = vcmp.lt.s32.totalorder %v7303_v36, 0  ;;  %v7472_v62 = vsel %vm543_vm1, %v6733_v58, %v774_v5  ;;  %v7476_v9 = vadd.s32 %v7423_v28, %v7433_v41 }
 0x403   : > { %v1485_v19 = vshll.u32 %v1484_v20, 30  ;;  %v1742_v40 = vor.u32 8388608, %v1741_v10  ;;  %v1749_v37 = vsub.s32 32, %v1748_v14  ;;  %v1633_v21 = vand.u32 2139095040, %v7460_v33 }
 0x404   : > { %v1610_v25 = vxor.u32 2147483648, %v1609_v38  ;;  %v1508_v24 = vsub.s32 4, %v1484_v20  ;;  %v7481_v42 = vshrl.u32 %v1746_v23, 5  ;;  %v1751_v53 = vshll.u32 %v5286_v51, %v1748_v14 }
 0x405   : > { %v7479_v1 = vsub.s32 %v1482_v34, %v1485_v19  ;;  %v1752_v0 = vshrl.u32 %v5287_v55, %v1749_v37  ;;  %v1754_v58 = vshll.u32 %v5287_v55, %v1748_v14  ;;  %v1755_v2 = vshrl.u32 %v5288_v57, %v1749_v37 }
 0x406   : > { %v1611_v28 = vsel %vm1528_vm0, %v1610_v25, %v1609_v38  ;;  %v1757_v16 = vshll.u32 %v5288_v57, %v1748_v14  ;;  %v1758_v29 = vshrl.u32 %v5289_v59, %v1749_v37  ;;  %v1760_v60 = vshll.u32 %v5289_v59, %v1748_v14 }
 0x407   : > { %v1488_v41 = vsub.s32 0, %v7479_v1  ;;  %v1614_v30 = vsel %vm7437_vm5, %v7211_v54, %v1611_v28  ;;  %v1753_v61 = vor.u32 %v1752_v0, %v1751_v53  ;;  %v1761_v34 = vshrl.u32 %v5290_v12, %v1749_v37 }
 0x408   : > { %5002 = vcosq.f32 %v1614_v30  ;;  %v1756_v11 = vor.u32 %v1755_v2, %v1754_v58  ;;  %v1759_v50 = vor.u32 %v1758_v29, %v1757_v16  ;;  %v1763_v39 = vshll.u32 %v5290_v12, %v1748_v14 }
 0x409   : > { %v4555_v27 = vmin.u32 %v1488_v41, %v7479_v1  ;;  %5004 = vsinq.f32 %v1614_v30  ;;  %v1762_v52 = vor.u32 %v1761_v34, %v1760_v60  ;;  %v1764_v43 = vshrl.u32 %v5291_v22, %v1749_v37 }
 0x40a   : > { %v7500_v23 = vshll.u32 %v1742_v40, 8  ;;  %v1630_v63 = vand.u32 2147483647, %v7460_v33  ;;  %v1634_v5 = vshrl.u32 %v1633_v21, 23  ;;  %v1509_v47 = vsel %vm1424_vm14, %v1508_v24, %v1484_v20 }
 0x40b   : > { %v1490_v10 = vclz %v4555_v27  ;;  %v1750_v48 = vshrl.u32 %v5286_v51, %v1749_v37  ;;  %v1765_v13 = vor.u32 %v1764_v43, %v1763_v39  ;;  %vm1766_vm13 = vcmp.lt.s32.totalorder %v7481_v42, 1 }
 0x40c   : > { %vm7509_vm12 = vcmp.le.f32.partialorder %v1422_v32, 0.7853982  ;;  %vm1768_vm2 = vcmp.lt.s32.totalorder %v7481_v42, 3  ;;  %vm1769_vm0 = vcmp.lt.s32.totalorder %v7481_v42, 4  ;;  %v1774_v38 = vsel %vm1766_vm13, %v1753_v61, %v1756_v11 }
 0x40d   : > { %v4556_v14 = vadd.s32 4294967294, %v1490_v10  ;;  %vm1622_vm3 = vcmp.eq.s32.totalorder %v7466_v49, 0  ;;  %v1771_v20 = vsel %vm1769_vm0, %v1759_v50, 2102212464  ;;  %v1775_v19 = vsel %vm1769_vm0, %v1762_v52, 920167782 }
 0x40e   : > { %v1778_v40 = vsel %vm1766_vm13, %v1756_v11, %v1759_v50  ;;  %v1779_v37 = vsel %vm1769_vm0, %v1765_v13, 1326507024  ;;  %vm1621_vm15 = vcmp.lt.s32.totalorder %v7466_v49, 2  ;;  %vm1767_vm5 = vcmp.lt.s32.totalorder %v7481_v42, 2 }
 0x40f   : > { %vm4557_vm4 = vcmp.lt.s32.totalorder %v4556_v14, 0  ;;  %v1776_v32 = vsel %vm1768_vm2, %v1759_v50, %v1775_v19  ;;  %v1780_v21 = vsel %vm1768_vm2, %v1762_v52, %v1779_v37  ;;  %v1770_v24 = vsel %vm1766_vm13, %v1750_v48, %v1753_v61 }
 0x410   : > { %v1493_v25 = vsel %vm4557_vm4, 0, %v4556_v14  ;;  %v1777_v53 = vsel %vm1767_vm5, %v1774_v38, %v1776_v32  ;;  %v1781_v0 = vsel %vm1767_vm5, %v1778_v40, %v1780_v21  ;;  %v1772_v28 = vsel %vm1768_vm2, %v1756_v11, %v1771_v20 }
 0x411   : > { %v1494_v58 = vsub.s32 32, %v1493_v25  ;;  %v1498_v2 = vsub.s32 4294967266, %v1493_v25  ;;  %v4562_v41 = vadd.s32 4294967169, %v1634_v5  ;;  %v1495_v34 = vshll.u32 %v7479_v1, %v1493_v25 }
 0x412   : > { %v7535_v16 = vmul.u32.u64.low %v7500_v23, %v1781_v0  ;;  %v7536_v29 = vmul.u32.u64.high %v7500_v23, %v1781_v0, %v7535_v16  ;;  %v7539_v30 = vmul.u32.u64.low %v7500_v23, %v1777_v53  ;;  %v7540_v60 = vmul.u32.u64.high %v7500_v23, %v1777_v53, %v7539_v30  ;;  %v5003_v61 = vpop.eup %5002 }
 0x413   : > { %v1496_v27 = vshrl.u32 %v7476_v9, %v1494_v58  ;;  %v1499_v50 = vadd.s32 127, %v1498_v2  ;;  %v1640_v52 = vadd.s32 1, %v4562_v41  ;;  %v5005_v39 = vpop.eup %5004  ;;  %vm1625_vm8 = vcmp.eq.s32.totalorder %v7466_v49, 2 }
 0x414   : > { %v1626_v11 = vxor.u32 2147483648, %v5003_v61  ;;  %v1773_v43 = vsel %vm1767_vm5, %v1770_v24, %v1772_v28  ;;  %v1637_v10 = vand.u32 8388607, %v1630_v63  ;;  %v1623_v5 = vxor.u32 2147483648, %v5005_v39 }
 0x415   : > { %v1497_v48 = vor.u32 %v1496_v27, %v1495_v34  ;;  %v1500_v13 = vshll.u32 %v1499_v50, 23  ;;  %vm1641_vm6 = vcmp.gt.s32.totalorder %v1640_v52, 0  ;;  %v1511_v9 = vsel %vm7509_vm12, 0, %v1509_v47 }
 0x416   : > { %v1627_v14 = vsel %vm1625_vm8, %v1626_v11, %v5005_v39  ;;  %vm1791_vm9 = vc.u32 %v7536_v29, %v7539_v30  ;;  %v1792_v1 = vadd.s32 1, %v7540_v60  ;;  %v1624_v42 = vsel %vm1622_vm3, %v5003_v61, %v1623_v5 }
 0x417   : > { %v1501_v38 = vor.u32 4788187, %v1500_v13  ;;  %v1789_v20 = vmul.u32 %v7500_v23, %v1773_v43  ;;  %v1642_v19 = vsel %vm1641_vm6, %v1640_v52, 0  ;;  %vm1618_vm7 = vweird.f32 %v7211_v54 }
 0x418   : > { %v1628_v40 = vsel %vm1621_vm15, %v1624_v42, %v1627_v14  ;;  %v1793_v37 = vsel %vm1791_vm9, %v1792_v1, %v7540_v60  ;;  %v1644_v47 = vand.u32 31, %v1642_v19  ;;  %v1504_v25 = vcvt.s32.f32 %v1497_v48 }
 0x419   : > { %v1629_v32 = vsel %vm1618_vm7, nan, %v1628_v40  ;;  %v1502_v21 = vand.u32 2147483647, %v1501_v38  ;;  %v1794_v24 = vadd.s32 %v1793_v37, %v1789_v20  ;;  %v1515_v53 = vadd.s32 3, %v1511_v9 }
 0x41a   : > { %4339 = vst [vmem:[%s5998_s13 + $0x28] sm:$0xff] %v1629_v32  ;;  %v1638_v0 = vor.u32 8388608, %v1637_v10  ;;  %v1645_v58 = vsub.s32 32, %v1644_v47  ;;  %v945_v23 = vmul.f32 %v7222_v56, %v7472_v62  ;;  %v1647_v54 = vshll.u32 %v5286_v51, %v1644_v47 }
 0x41b   : > { %v1505_v2 = vmul.f32 %v1504_v25, %v1502_v21  ;;  %v1795_v28 = vadd.s32 536870912, %v1794_v24  ;;  %v1650_v49 = vshll.u32 %v5287_v55, %v1644_v47  ;;  %v1653_v60 = vshll.u32 %v5288_v57, %v1644_v47 }
 0x41c   : > { %v1648_v41 = vshrl.u32 %v5287_v55, %v1645_v58  ;;  %v1651_v16 = vshrl.u32 %v5288_v57, %v1645_v58  ;;  %v1654_v61 = vshrl.u32 %v5289_v59, %v1645_v58  ;;  %v1657_v50 = vshrl.u32 %v5290_v12, %v1645_v58 }
 0x41d   : > { %v1506_v34 = vxor.u32 2147483648, %v1505_v2  ;;  %v1796_v27 = vshrl.u32 %v1795_v28, 30  ;;  %v1660_v62 = vshrl.u32 %v5291_v22, %v1645_v58  ;;  %v1643_v52 = vshrl.u32 %v1642_v19, 5 }
 0x41e   : > { %v1649_v39 = vor.u32 %v1648_v41, %v1647_v54  ;;  %v1656_v11 = vshll.u32 %v5289_v59, %v1644_v47  ;;  %v1659_v43 = vshll.u32 %v5290_v12, %v1644_v47  ;;  %v1652_v48 = vor.u32 %v1651_v16, %v1650_v49  ;;  %v770_v41 = vpop.permute.xlu0 %769 }
 0x41f   : > { %v1507_v10 = vsel %vm1424_vm14, %v1506_v34, %v1505_v2  ;;  %v1797_v5 = vshll.u32 %v1796_v27, 30  ;;  %v1655_v13 = vor.u32 %v1654_v61, %v1653_v60  ;;  %v7580_v9 = vand.u32 3, %v1515_v53 }
 0x420   : > { %v1510_v14 = vsel %vm7509_vm12, %v7303_v36, %v1507_v10  ;;  %v1658_v1 = vor.u32 %v1657_v50, %v1656_v11  ;;  %v1661_v42 = vor.u32 %v1660_v62, %v1659_v43  ;;  %v7584_v20 = vshll.u32 %v1638_v0, 8 }
 0x421   : > { %5006 = vcosq.f32 %v1510_v14  ;;  %v7582_v38 = vsub.s32 %v1794_v24, %v1797_v5  ;;  %v7587_v19 = vadd.f32 %v7208_v3, %v945_v23  ;;  %v1646_v40 = vshrl.u32 %v5286_v51, %v1645_v58 }
 0x422   : > { %5008 = vsinq.f32 %v1510_v14  ;;  %vm1662_vm10 = vcmp.lt.s32.totalorder %v1643_v52, 1  ;;  %vm1665_vm11 = vcmp.lt.s32.totalorder %v1643_v52, 4  ;;  %v1820_v37 = vsub.s32 4, %v1796_v27 }
 0x423   : > { %v1800_v26 = vsub.s32 0, %v7582_v38  ;;  %v1667_v47 = vsel %vm1665_vm11, %v1655_v13, 2102212464  ;;  %v1670_v32 = vsel %vm1662_vm10, %v1649_v39, %v1652_v48  ;;  %vm1664_vm14 = vcmp.lt.s32.totalorder %v1643_v52, 3 }
 0x424   : > { %v1671_v21 = vsel %vm1665_vm11, %v1658_v1, 920167782  ;;  %v1674_v25 = vsel %vm1662_vm10, %v1652_v48, %v1655_v13  ;;  %v1675_v24 = vsel %vm1665_vm11, %v1661_v42, 1326507024  ;;  %vm1663_vm13 = vcmp.lt.s32.totalorder %v1643_v52, 2 }
 0x425   : > { %v4567_v53 = vmin.u32 %v1800_v26, %v7582_v38  ;;  %v1672_v0 = vsel %vm1664_vm14, %v1655_v13, %v1671_v21  ;;  %v1676_v3 = vsel %vm1664_vm14, %v1658_v1, %v1675_v24  ;;  %v1666_v23 = vsel %vm1662_vm10, %v1646_v40, %v1649_v39 }
 0x426   : > { %v1668_v2 = vsel %vm1664_vm14, %v1652_v48, %v1667_v47  ;;  %v1673_v28 = vsel %vm1663_vm13, %v1670_v32, %v1672_v0  ;;  %v1677_v58 = vsel %vm1663_vm13, %v1674_v25, %v1676_v3  ;;  %vm7594_vm12 = vcmp.le.f32.partialorder %v1734_v31, 0.7853982 }
 0x427   : > { %vm1736_vm2 = vcmp.lt.s32.totalorder %v7402_v44, 0  ;;  %v1802_v49 = vclz %v4567_v53  ;;  %v7600_v16 = vmul.u32.u64.low %v7584_v20, %v1677_v58  ;;  %v7601_v60 = vmul.u32.u64.high %v7584_v20, %v1677_v58, %v7600_v16 }
 0x428   : > { %v7604_v61 = vmul.u32.u64.low %v7584_v20, %v1673_v28  ;;  %v7605_v34 = vmul.u32.u64.high %v7584_v20, %v1673_v28, %v7604_v61  ;;  %v1821_v31 = vsel %vm1736_vm2, %v1820_v37, %v1796_v27  ;;  %v1669_v62 = vsel %vm1663_vm13, %v1666_v23, %v1668_v2 }
 0x429   : > { %v4568_v50 = vadd.s32 4294967294, %v1802_v49  ;;  %v1945_v52 = vand.u32 2139095040, %v7587_v19  ;;  %vm1517_vm0 = vcmp.lt.s32.totalorder %v7580_v9, 2  ;;  %vm1518_vm3 = vcmp.eq.s32.totalorder %v7580_v9, 0 }
 0x42a   : > { %vm1521_vm15 = vcmp.eq.s32.totalorder %v7580_v9, 2  ;;  %v906_v39 = vsel %vm543_vm1, %v6846_v45, %v770_v41  ;;  %v1790_v43 = vadd.s32 %v7539_v30, %v7536_v29  ;;  %v1942_v27 = vand.u32 2147483647, %v7587_v19  ;;  %v785_v41 = vpop.permute.xlu1 %784 }
 0x42b   : > { %v5007_v11 = vpop.eup %5006  ;;  %vm4569_vm4 = vcmp.lt.s32.totalorder %v4568_v50, 0  ;;  %v1946_v10 = vshrl.u32 %v1945_v52, 23  ;;  %v1823_v14 = vsel %vm7594_vm12, 0, %v1821_v31  ;;  %v1685_v1 = vmul.u32 %v7584_v20, %v1669_v62 }
 0x42c   : > { %v5009_v5 = vpop.eup %5008  ;;  %v1522_v48 = vxor.u32 2147483648, %v5007_v11  ;;  %v1805_v13 = vsel %vm4569_vm4, 0, %v4568_v50  ;;  %vm1687_vm5 = vc.u32 %v7601_v60, %v7604_v61  ;;  %v1688_v29 = vadd.s32 1, %v7605_v34 }
 0x42d   : > { %v1519_v42 = vxor.u32 2147483648, %v5009_v5  ;;  %v1806_v40 = vsub.s32 32, %v1805_v13  ;;  %v1810_v26 = vsub.s32 4294967266, %v1805_v13  ;;  %v4574_v30 = vadd.s32 4294967169, %v1946_v10 }
 0x42e   : > { %v1523_v45 = vsel %vm1521_vm15, %v1522_v48, %v5009_v5  ;;  %v944_v37 = vmul.f32 %v7222_v56, %v906_v39  ;;  %v1807_v20 = vshll.u32 %v7582_v38, %v1805_v13  ;;  %vm1514_vm8 = vweird.f32 %v7303_v36  ;;  %v7642_v36 = vld [vmem:[%s8548_s5] ss:$0 sm:$0xff] }
 0x42f   : > { %v1520_v47 = vsel %vm1518_vm3, %v5007_v11, %v1519_v42  ;;  %v1808_v32 = vshrl.u32 %v1790_v43, %v1806_v40  ;;  %v1811_v21 = vadd.s32 127, %v1810_v26  ;;  %v1689_v24 = vsel %vm1687_vm5, %v1688_v29, %v7605_v34 }
 0x430   : > { %v1524_v25 = vsel %vm1517_vm0, %v1520_v47, %v1523_v45  ;;  %v1952_v53 = vadd.s32 1, %v4574_v30  ;;  %v1690_v2 = vadd.s32 %v1689_v24, %v1685_v1  ;;  %v1827_v56 = vadd.s32 3, %v1823_v14 }
 0x431   : > { %v1525_v0 = vsel %vm1514_vm8, nan, %v1524_v25  ;;  %v1809_v3 = vor.u32 %v1808_v32, %v1807_v20  ;;  %v1812_v23 = vshll.u32 %v1811_v21, 23  ;;  %v1949_v28 = vand.u32 8388607, %v1942_v27 }
 0x432   : > { %4338 = vst [vmem:[%s5998_s13 + $0x20] sm:$0xff] %v1525_v0  ;;  %vm1953_vm6 = vcmp.gt.s32.totalorder %v1952_v53, 0  ;;  %v1691_v58 = vadd.s32 536870912, %v1690_v2  ;;  %v7645_v9 = vadd.f32 %v7642_v36, %v944_v37  ;;  %vm1632_vm9 = vcmp.lt.s32.totalorder %v7460_v33, 0 }
 0x433   : > { %v1813_v38 = vor.u32 4788187, %v1812_v23  ;;  %v1954_v49 = vsel %vm1953_vm6, %v1952_v53, 0  ;;  %v1816_v50 = vcvt.s32.f32 %v1809_v3  ;;  %v7648_v62 = vand.u32 3, %v1827_v56 }
 0x434   : > { %v1956_v16 = vand.u32 31, %v1954_v49  ;;  %v1692_v31 = vshrl.u32 %v1691_v58, 30  ;;  %v1950_v52 = vor.u32 8388608, %v1949_v28  ;;  %v7653_v11 = vsel %vm543_vm1, %v6768_v15, %v785_v41 }
 0x435   : > { %v1814_v34 = vand.u32 2147483647, %v1813_v38  ;;  %v1841_v48 = vand.u32 2139095040, %v7645_v9  ;;  %v1955_v30 = vshrl.u32 %v1954_v49, 5  ;;  %vm7674_vm7 = vcmp.le.f32.partialorder %v1630_v63, 0.7853982 }
 0x436   : > { %v1957_v39 = vsub.s32 32, %v1956_v16  ;;  %v1693_v10 = vshll.u32 %v1692_v31, 30  ;;  %v1959_v5 = vshll.u32 %v5286_v51, %v1956_v16  ;;  %v1962_v14 = vshll.u32 %v5287_v55, %v1956_v16 }
 0x437   : > { %v1817_v43 = vmul.f32 %v1816_v50, %v1814_v34  ;;  %v1965_v15 = vshll.u32 %v5288_v57, %v1956_v16  ;;  %v1716_v29 = vsub.s32 4, %v1692_v31  ;;  %v1968_v47 = vshll.u32 %v5289_v59, %v1956_v16 }
 0x438   : > { %v1960_v13 = vshrl.u32 %v5287_v55, %v1957_v39  ;;  %v1963_v1 = vshrl.u32 %v5288_v57, %v1957_v39  ;;  %v1966_v42 = vshrl.u32 %v5289_v59, %v1957_v39  ;;  %v7661_v26 = vsub.s32 %v1690_v2, %v1693_v10 }
 0x439   : > { %v1818_v40 = vxor.u32 2147483648, %v1817_v43  ;;  %v1969_v45 = vshrl.u32 %v5290_v12, %v1957_v39  ;;  %v1971_v3 = vshll.u32 %v5290_v12, %v1956_v16  ;;  %v1972_v23 = vshrl.u32 %v5291_v22, %v1957_v39 }
 0x43a   : > { %v1961_v37 = vor.u32 %v1960_v13, %v1959_v5  ;;  %v1696_v32 = vsub.s32 0, %v7661_v26  ;;  %v1964_v21 = vor.u32 %v1963_v1, %v1962_v14  ;;  %v1967_v25 = vor.u32 %v1966_v42, %v1965_v15 }
 0x43b   : > { %v1819_v20 = vsel %vm1736_vm2, %v1818_v40, %v1817_v43  ;;  %v1970_v0 = vor.u32 %v1969_v45, %v1968_v47  ;;  %v7681_v56 = vshll.u32 %v1950_v52, 8  ;;  %v1842_v28 = vshrl.u32 %v1841_v48, 23 }
 0x43c   : > { %v1822_v24 = vsel %vm7594_vm12, %v7402_v44, %v1819_v20  ;;  %v4563_v2 = vmin.u32 %v1696_v32, %v7661_v26  ;;  %v1717_v54 = vsel %vm1632_vm9, %v1716_v29, %v1692_v31  ;;  %v1958_v63 = vshrl.u32 %v5286_v51, %v1957_v39 }
 0x43d   : > { %5010 = vcosq.f32 %v1822_v24  ;;  %v1973_v38 = vor.u32 %v1972_v23, %v1971_v3  ;;  %vm1974_vm10 = vcmp.lt.s32.totalorder %v1955_v30, 1  ;;  %vm1975_vm11 = vcmp.lt.s32.totalorder %v1955_v30, 2 }
 0x43e   : > { %5012 = vsinq.f32 %v1822_v24  ;;  %v1698_v58 = vclz %v4563_v2  ;;  %vm1977_vm14 = vcmp.lt.s32.totalorder %v1955_v30, 4  ;;  %vm1976_vm13 = vcmp.lt.s32.totalorder %v1955_v30, 3 }
 0x43f   : > { %v1979_v49 = vsel %vm1977_vm14, %v1967_v25, 2102212464  ;;  %v1982_v41 = vsel %vm1974_vm10, %v1961_v37, %v1964_v21  ;;  %v1983_v16 = vsel %vm1977_vm14, %v1970_v0, 920167782  ;;  %vm1833_vm12 = vcmp.eq.s32.totalorder %v7648_v62, 2 }
 0x440   : > { %v4564_v34 = vadd.s32 4294967294, %v1698_v58  ;;  %v1978_v50 = vsel %vm1974_vm10, %v1958_v63, %v1961_v37  ;;  %v1984_v52 = vsel %vm1976_vm13, %v1967_v25, %v1983_v16  ;;  %v1986_v43 = vsel %vm1974_vm10, %v1964_v21, %v1967_v25 }
 0x441   : > { %vm1830_vm2 = vcmp.eq.s32.totalorder %v7648_v62, 0  ;;  %v1980_v31 = vsel %vm1976_vm13, %v1964_v21, %v1979_v49  ;;  %v1985_v39 = vsel %vm1975_vm11, %v1982_v41, %v1984_v52  ;;  %v1987_v10 = vsel %vm1977_vm14, %v1973_v38, 1326507024 }
 0x442   : > { %v4570_v5 = vadd.s32 4294967169, %v1842_v28  ;;  %vm4565_vm0 = vcmp.lt.s32.totalorder %v4564_v34, 0  ;;  %v1988_v48 = vsel %vm1976_vm13, %v1970_v0, %v1987_v10  ;;  %vm1826_vm3 = vweird.f32 %v7402_v44 }
 0x443   : > { %v7690_v13 = vmul.u32.u64.low %v7681_v56, %v1985_v39  ;;  %v7691_v14 = vmul.u32.u64.high %v7681_v56, %v1985_v39, %v7690_v13  ;;  %v1686_v1 = vadd.s32 %v7604_v61, %v7601_v60  ;;  %v1701_v42 = vsel %vm4565_vm0, 0, %v4564_v34 }
 0x444   : > { %v1989_v40 = vsel %vm1975_vm11, %v1986_v43, %v1988_v48  ;;  %v1838_v15 = vand.u32 2147483647, %v7645_v9  ;;  %v1702_v45 = vsub.s32 32, %v1701_v42  ;;  %v1706_v29 = vsub.s32 4294967266, %v1701_v42 }
 0x445   : > { %v1719_v37 = vsel %vm7674_vm7, 0, %v1717_v54  ;;  %v1848_v47 = vadd.s32 1, %v4570_v5  ;;  %v1703_v20 = vshll.u32 %v7661_v26, %v1701_v42  ;;  %v1981_v32 = vsel %vm1975_vm11, %v1978_v50, %v1980_v31  ;;  %v7713_v26 = vld [vmem:[%s8547_s4] ss:$0 sm:$0xff] }
 0x446   : > { %v7704_v21 = vmul.u32.u64.low %v7681_v56, %v1989_v40  ;;  %v7705_v25 = vmul.u32.u64.high %v7681_v56, %v1989_v40, %v7704_v21  ;;  %v1704_v61 = vshrl.u32 %v1686_v1, %v1702_v45  ;;  %v1707_v24 = vadd.s32 127, %v1706_v29 }
 0x447   : > { %v5011_v60 = vpop.eup %5010  ;;  %v2000_v0 = vadd.s32 1, %v7691_v14  ;;  %vm1849_vm15 = vcmp.gt.s32.totalorder %v1848_v47, 0  ;;  %v1845_v2 = vand.u32 8388607, %v1838_v15  ;;  %v947_v30 = vmul.f32 %v7713_v26, %v7653_v11 }
 0x448   : > { %v5013_v3 = vpop.eup %5012  ;;  %v1834_v23 = vxor.u32 2147483648, %v5011_v60  ;;  %v1850_v28 = vsel %vm1849_vm15, %v1848_v47, 0  ;;  %v1705_v63 = vor.u32 %v1704_v61, %v1703_v20  ;;  %v1708_v38 = vshll.u32 %v1707_v24, 23 }
 0x449   : > { %v1831_v54 = vxor.u32 2147483648, %v5013_v3  ;;  %v1723_v58 = vadd.s32 3, %v1719_v37  ;;  %v1997_v41 = vmul.u32 %v7681_v56, %v1981_v32  ;;  %vm1999_vm4 = vc.u32 %v7705_v25, %v7690_v13 }
 0x44a   : > { %v1835_v49 = vsel %vm1833_vm12, %v1834_v23, %v5013_v3  ;;  %v1852_v16 = vand.u32 31, %v1850_v28  ;;  %vm1829_vm5 = vcmp.lt.s32.totalorder %v7648_v62, 2  ;;  %v1709_v11 = vor.u32 4788187, %v1708_v38 }
 0x44b   : > { %v1832_v34 = vsel %vm1830_vm2, %v5011_v60, %v1831_v54  ;;  %v2001_v50 = vsel %vm1999_vm4, %v2000_v0, %v7691_v14  ;;  %v7727_v39 = vadd.f32 %v7642_v36, %v947_v30  ;;  %v1712_v5 = vcvt.s32.f32 %v1705_v63 }
 0x44c   : > { %v1836_v52 = vsel %vm1829_vm5, %v1832_v34, %v1835_v49  ;;  %v2002_v43 = vadd.s32 %v2001_v50, %v1997_v41  ;;  %v1853_v31 = vsub.s32 32, %v1852_v16  ;;  %v1710_v10 = vand.u32 2147483647, %v1709_v11 }
 0x44d   : > { %v1837_v56 = vsel %vm1826_vm3, nan, %v1836_v52  ;;  %v7731_v48 = vand.u32 3, %v1723_v58  ;;  %v1846_v62 = vor.u32 8388608, %v1845_v2  ;;  %v1851_v45 = vshrl.u32 %v1850_v28, 5 }
 0x44e   : > { %4341 = vst [vmem:[%s5998_s13 + $0x38] sm:$0xff] %v1837_v56  ;;  %v2003_v1 = vadd.s32 536870912, %v2002_v43  ;;  %v1856_v42 = vshrl.u32 %v5287_v55, %v1853_v31  ;;  %v1859_v14 = vshrl.u32 %v5288_v57, %v1853_v31  ;;  %v1713_v40 = vmul.f32 %v1712_v5, %v1710_v10 }
 0x44f   : > { %v1862_v29 = vshrl.u32 %v5289_v59, %v1853_v31  ;;  %v1865_v37 = vshrl.u32 %v5290_v12, %v1853_v31  ;;  %v1855_v44 = vshll.u32 %v5286_v51, %v1852_v16  ;;  %v1858_v20 = vshll.u32 %v5287_v55, %v1852_v16 }
 0x450   : > { %v2004_v47 = vshrl.u32 %v2003_v1, 30  ;;  %v1861_v32 = vshll.u32 %v5288_v57, %v1852_v16  ;;  %v1714_v21 = vxor.u32 2147483648, %v1713_v40  ;;  %vm1944_vm8 = vcmp.lt.s32.totalorder %v7587_v19, 0 }
 0x451   : > { %v1864_v60 = vshll.u32 %v5289_v59, %v1852_v16  ;;  %v1867_v61 = vshll.u32 %v5290_v12, %v1852_v16  ;;  %v1868_v24 = vshrl.u32 %v5291_v22, %v1853_v31  ;;  %v1857_v3 = vor.u32 %v1856_v42, %v1855_v44 }
 0x452   : > { %v2005_v0 = vshll.u32 %v2004_v47, 30  ;;  %v1860_v23 = vor.u32 %v1859_v14, %v1858_v20  ;;  %v1863_v2 = vor.u32 %v1862_v29, %v1861_v32  ;;  %v1715_v28 = vsel %vm1632_vm9, %v1714_v21, %v1713_v40  ;;  %v781_v29 = vpop.permute.xlu0 %780 }
 0x453   : > { %v1866_v30 = vor.u32 %v1865_v37, %v1864_v60  ;;  %v1869_v54 = vor.u32 %v1868_v24, %v1867_v61  ;;  %v7747_v63 = vshll.u32 %v1846_v62, 8  ;;  %v1718_v38 = vsel %vm7674_vm7, %v7460_v33, %v1715_v28 }
 0x454   : > { %v7752_v58 = vsub.s32 %v2002_v43, %v2005_v0  ;;  %v2028_v49 = vsub.s32 4, %v2004_v47  ;;  %v1854_v41 = vshrl.u32 %v5286_v51, %v1853_v31  ;;  %5014 = vcosq.f32 %v1718_v38 }
 0x455   : > { %vm1870_vm6 = vcmp.lt.s32.totalorder %v1851_v45, 1  ;;  %vm1871_vm10 = vcmp.lt.s32.totalorder %v1851_v45, 2  ;;  %vm1873_vm11 = vcmp.lt.s32.totalorder %v1851_v45, 4  ;;  %5016 = vsinq.f32 %v1718_v38 }
 0x456   : > { %v2008_v16 = vsub.s32 0, %v7752_v58  ;;  %v1875_v34 = vsel %vm1873_vm11, %v1863_v2, 2102212464  ;;  %v1878_v11 = vsel %vm1870_vm6, %v1857_v3, %v1860_v23  ;;  %vm1872_vm9 = vcmp.lt.s32.totalorder %v1851_v45, 3 }
 0x457   : > { %v1879_v50 = vsel %vm1873_vm11, %v1866_v30, 920167782  ;;  %v1882_v52 = vsel %vm1870_vm6, %v1860_v23, %v1863_v2  ;;  %v1883_v56 = vsel %vm1873_vm11, %v1869_v54, 1326507024  ;;  %v1874_v43 = vsel %vm1870_vm6, %v1854_v41, %v1857_v3 }
 0x458   : > { %v4575_v53 = vmin.u32 %v2008_v16, %v7752_v58  ;;  %v1880_v10 = vsel %vm1872_vm9, %v1863_v2, %v1879_v50  ;;  %v1884_v5 = vsel %vm1872_vm9, %v1866_v30, %v1883_v56  ;;  %v1876_v1 = vsel %vm1872_vm9, %v1860_v23, %v1875_v34 }
 0x459   : > { %v1881_v31 = vsel %vm1871_vm10, %v1878_v11, %v1880_v10  ;;  %v1885_v62 = vsel %vm1871_vm10, %v1882_v52, %v1884_v5  ;;  %v2153_v42 = vand.u32 2139095040, %v7727_v39  ;;  %v2029_v40 = vsel %vm1944_vm8, %v2028_v49, %v2004_v47 }
 0x45a   : > { %v2010_v14 = vclz %v4575_v53  ;;  %v7763_v37 = vmul.u32.u64.low %v7747_v63, %v1885_v62  ;;  %v7764_v44 = vmul.u32.u64.high %v7747_v63, %v1885_v62, %v7763_v37  ;;  %vm1722_vm7 = vweird.f32 %v7460_v33 }
 0x45b   : > { %v7767_v20 = vmul.u32.u64.low %v7747_v63, %v1881_v31  ;;  %v7768_v32 = vmul.u32.u64.high %v7747_v63, %v1881_v31, %v7767_v20  ;;  %v1877_v60 = vsel %vm1871_vm10, %v1874_v43, %v1876_v1  ;;  %v2150_v61 = vand.u32 2147483647, %v7727_v39 }
 0x45c   : > { %v4576_v21 = vadd.s32 4294967294, %v2010_v14  ;;  %v2154_v24 = vshrl.u32 %v2153_v42, 23  ;;  %vm1726_vm14 = vcmp.eq.s32.totalorder %v7731_v48, 0  ;;  %vm1729_vm13 = vcmp.eq.s32.totalorder %v7731_v48, 2 }
 0x45d   : > { %vm7777_vm12 = vcmp.le.f32.partialorder %v1942_v27, 0.7853982  ;;  %v908_v0 = vsel %vm543_vm1, %v6861_v46, %v781_v29  ;;  %v1998_v45 = vadd.s32 %v7690_v13, %v7705_v25  ;;  %v1893_v30 = vmul.u32 %v7747_v63, %v1877_v60  ;;  %v796_v25 = vpop.permute.xlu1 %795 }
 0x45e   : > { %vm4577_vm2 = vcmp.lt.s32.totalorder %v4576_v21, 0  ;;  %v2031_v3 = vsel %vm7777_vm12, 0, %v2029_v40  ;;  %v4582_v23 = vadd.s32 4294967169, %v2154_v24  ;;  %v5015_v2 = vpop.eup %5014  ;;  %vm1895_vm0 = vc.u32 %v7764_v44, %v7767_v20 }
 0x45f   : > { %v2013_v28 = vsel %vm4577_vm2, 0, %v4576_v21  ;;  %v1896_v27 = vadd.s32 1, %v7768_v32  ;;  %v5017_v54 = vpop.eup %5016  ;;  %v1730_v38 = vxor.u32 2147483648, %v5015_v2  ;;  %v2157_v13 = vand.u32 8388607, %v2150_v61 }
 0x460   : > { %v2014_v49 = vsub.s32 32, %v2013_v28  ;;  %v2018_v46 = vsub.s32 4294967266, %v2013_v28  ;;  %v1727_v41 = vxor.u32 2147483648, %v5017_v54  ;;  %v2015_v16 = vshll.u32 %v7752_v58, %v2013_v28 }
 0x461   : > { %v1897_v34 = vsel %vm1895_vm0, %v1896_v27, %v7768_v32  ;;  %v2160_v11 = vadd.s32 1, %v4582_v23  ;;  %v1731_v63 = vsel %vm1729_vm13, %v1730_v38, %v5017_v54  ;;  %vm1725_vm3 = vcmp.lt.s32.totalorder %v7731_v48, 2 }
 0x462   : > { %v2016_v50 = vshrl.u32 %v1998_v45, %v2014_v49  ;;  %v2019_v52 = vadd.s32 127, %v2018_v46  ;;  %v1898_v56 = vadd.s32 %v1897_v34, %v1893_v30  ;;  %v1728_v53 = vsel %vm1726_vm14, %v5015_v2, %v1727_v41 }
 0x463   : > { %vm2161_vm15 = vcmp.gt.s32.totalorder %v2160_v11, 0  ;;  %v911_v58 = vsel %vm543_vm1, %v6802_v18, %v796_v25  ;;  %v1732_v43 = vsel %vm1725_vm3, %v1728_v53, %v1731_v63  ;;  %v2035_v62 = vadd.s32 3, %v2031_v3 }
 0x464   : > { %v2017_v10 = vor.u32 %v2016_v50, %v2015_v16  ;;  %v2020_v5 = vshll.u32 %v2019_v52, 23  ;;  %v1899_v1 = vadd.s32 536870912, %v1898_v56  ;;  %v1733_v31 = vsel %vm1722_vm7, nan, %v1732_v43 }
 0x465   : > { %v2158_v42 = vor.u32 8388608, %v2157_v13  ;;  %v2162_v14 = vsel %vm2161_vm15, %v2160_v11, 0  ;;  %4340 = vst [vmem:[%s5998_s13 + $0x30] sm:$0xff] %v1733_v31  ;;  %v946_v48 = vmul.f32 %v7713_v26, %v908_v0  ;;  %v949_v37 = vmul.f32 %v7713_v26, %v911_v58 }
 0x466   : > { %v2021_v40 = vor.u32 4788187, %v2020_v5  ;;  %v1900_v29 = vshrl.u32 %v1899_v1, 30  ;;  %v2164_v32 = vand.u32 31, %v2162_v14  ;;  %v2024_v18 = vcvt.s32.f32 %v2017_v10 }
 0x467   : > { %v7808_v24 = vand.u32 3, %v2035_v62  ;;  %v1894_v45 = vadd.s32 %v7767_v20, %v7764_v44  ;;  %v7811_v23 = vshll.u32 %v2158_v42, 8  ;;  %v7816_v28 = vadd.f32 %v7642_v36, %v946_v48 }
 0x468   : > { %v2022_v21 = vand.u32 2147483647, %v2021_v40  ;;  %v1901_v60 = vshll.u32 %v1900_v29, 30  ;;  %v2165_v33 = vsub.s32 32, %v2164_v32  ;;  %v7819_v0 = vadd.f32 %v7642_v36, %v949_v37 }
 0x469   : > { %v2163_v30 = vshrl.u32 %v2162_v14, 5  ;;  %v2167_v27 = vshll.u32 %v5286_v51, %v2164_v32  ;;  %vm1840_vm4 = vcmp.lt.s32.totalorder %v7645_v9, 0  ;;  %v2170_v49 = vshll.u32 %v5287_v55, %v2164_v32 }
 0x46a   : > { %v2025_v3 = vmul.f32 %v2024_v18, %v2022_v21  ;;  %v7813_v2 = vsub.s32 %v1898_v56, %v1901_v60  ;;  %v2168_v54 = vshrl.u32 %v5287_v55, %v2165_v33  ;;  %v2171_v38 = vshrl.u32 %v5288_v57, %v2165_v33 }
 0x46b   : > { %v2174_v46 = vshrl.u32 %v5289_v59, %v2165_v33  ;;  %v2173_v25 = vshll.u32 %v5288_v57, %v2164_v32  ;;  %v2176_v41 = vshll.u32 %v5289_v59, %v2164_v32  ;;  %v2177_v16 = vshrl.u32 %v5290_v12, %v2165_v33 }
 0x46c   : > { %v2026_v44 = vxor.u32 2147483648, %v2025_v3  ;;  %v1904_v20 = vsub.s32 0, %v7813_v2  ;;  %v2169_v13 = vor.u32 %v2168_v54, %v2167_v27  ;;  %v2172_v63 = vor.u32 %v2171_v38, %v2170_v49 }
 0x46d   : > { %v2179_v50 = vshll.u32 %v5290_v12, %v2164_v32  ;;  %v2175_v56 = vor.u32 %v2174_v46, %v2173_v25  ;;  %v2178_v53 = vor.u32 %v2177_v16, %v2176_v41  ;;  %v2180_v58 = vshrl.u32 %v5291_v22, %v2165_v33 }
 0x46e   : > { %v2027_v34 = vsel %vm1944_vm8, %v2026_v44, %v2025_v3  ;;  %v4571_v11 = vmin.u32 %v1904_v20, %v7813_v2  ;;  %v1924_v10 = vsub.s32 4, %v1900_v29  ;;  %v2049_v5 = vand.u32 2139095040, %v7816_v28 }
 0x46f   : > { %v2030_v52 = vsel %vm7777_vm12, %v7587_v19, %v2027_v34  ;;  %vm7842_vm5 = vcmp.le.f32.partialorder %v1838_v15, 0.7853982  ;;  %v2166_v31 = vshrl.u32 %v5286_v51, %v2165_v33  ;;  %v2181_v47 = vor.u32 %v2180_v58, %v2179_v50 }
 0x470   : > { %5018 = vcosq.f32 %v2030_v52  ;;  %v1906_v43 = vclz %v4571_v11  ;;  %vm2182_vm8 = vcmp.lt.s32.totalorder %v2163_v30, 1  ;;  %vm2184_vm6 = vcmp.lt.s32.totalorder %v2163_v30, 3 }
 0x471   : > { %5020 = vsinq.f32 %v2030_v52  ;;  %vm2185_vm10 = vcmp.lt.s32.totalorder %v2163_v30, 4  ;;  %v2190_v42 = vsel %vm2182_vm8, %v2169_v13, %v2172_v63  ;;  %v2194_v48 = vsel %vm2182_vm8, %v2172_v63, %v2175_v56 }
 0x472   : > { %v4572_v62 = vadd.s32 4294967294, %v1906_v43  ;;  %v2187_v14 = vsel %vm2185_vm10, %v2175_v56, 2102212464  ;;  %v2191_v40 = vsel %vm2185_vm10, %v2178_v53, 920167782  ;;  %vm2183_vm9 = vcmp.lt.s32.totalorder %v2163_v30, 2 }
 0x473   : > { %v2195_v37 = vsel %vm2185_vm10, %v2181_v47, 1326507024  ;;  %v2192_v15 = vsel %vm2184_vm6, %v2175_v56, %v2191_v40  ;;  %v1925_v18 = vsel %vm1840_vm4, %v1924_v10, %v1900_v29  ;;  %vm2037_vm7 = vcmp.lt.s32.totalorder %v7808_v24, 2 }
 0x474   : > { %vm4573_vm11 = vcmp.lt.s32.totalorder %v4572_v62, 0  ;;  %v2196_v32 = vsel %vm2184_vm6, %v2178_v53, %v2195_v37  ;;  %v2193_v60 = vsel %vm2183_vm9, %v2190_v42, %v2192_v15  ;;  %v2186_v54 = vsel %vm2182_vm8, %v2166_v31, %v2169_v13 }
 0x475   : > { %v1909_v21 = vsel %vm4573_vm11, 0, %v4572_v62  ;;  %v2197_v33 = vsel %vm2183_vm9, %v2194_v48, %v2196_v32  ;;  %v2188_v38 = vsel %vm2184_vm6, %v2172_v63, %v2187_v14  ;;  %vm2034_vm14 = vweird.f32 %v7587_v19 }
 0x476   : > { %v1910_v3 = vsub.s32 32, %v1909_v21  ;;  %v1914_v27 = vsub.s32 4294967266, %v1909_v21  ;;  %v7860_v44 = vmul.u32.u64.low %v7811_v23, %v2197_v33  ;;  %v7861_v20 = vmul.u32.u64.high %v7811_v23, %v2197_v33, %v7860_v44 }
 0x477   : > { %v7864_v29 = vmul.u32.u64.low %v7811_v23, %v2193_v60  ;;  %v7865_v49 = vmul.u32.u64.high %v7811_v23, %v2193_v60, %v7864_v29  ;;  %v1911_v46 = vshll.u32 %v7813_v2, %v1909_v21  ;;  %v2050_v16 = vshrl.u32 %v2049_v5, 23 }
 0x478   : > { %v1912_v25 = vshrl.u32 %v1894_v45, %v1910_v3  ;;  %v1915_v41 = vadd.s32 127, %v1914_v27  ;;  %vm2038_vm13 = vcmp.eq.s32.totalorder %v7808_v24, 0  ;;  %vm2041_vm12 = vcmp.eq.s32.totalorder %v7808_v24, 2 }
 0x479   : > { %v2189_v13 = vsel %vm2183_vm9, %v2186_v54, %v2188_v38  ;;  %v2046_v34 = vand.u32 2147483647, %v7816_v28  ;;  %v1927_v52 = vsel %vm7842_vm5, 0, %v1925_v18  ;;  %v4578_v56 = vadd.s32 4294967169, %v2050_v16 }
 0x47a   : > { %v5019_v11 = vpop.eup %5018  ;;  %v1913_v63 = vor.u32 %v1912_v25, %v1911_v46  ;;  %v1916_v50 = vshll.u32 %v1915_v41, 23  ;;  %vm2207_vm2 = vc.u32 %v7861_v20, %v7864_v29  ;;  %v2208_v45 = vadd.s32 1, %v7865_v49 }
 0x47b   : > { %v5021_v53 = vpop.eup %5020  ;;  %v2042_v2 = vxor.u32 2147483648, %v5019_v11  ;;  %v2361_v58 = vand.u32 2139095040, %v7819_v0  ;;  %v2205_v10 = vmul.u32 %v7811_v23, %v2189_v13  ;;  %v2056_v5 = vadd.s32 1, %v4578_v56 }
 0x47c   : > { %v2039_v30 = vxor.u32 2147483648, %v5021_v53  ;;  %v1917_v43 = vor.u32 4788187, %v1916_v50  ;;  %v1920_v47 = vcvt.s32.f32 %v1913_v63  ;;  %v1931_v62 = vadd.s32 3, %v1927_v52 }
 0x47d   : > { %v2043_v31 = vsel %vm2041_vm12, %v2042_v2, %v5021_v53  ;;  %v2209_v42 = vsel %vm2207_vm2, %v2208_v45, %v7865_v49  ;;  %vm2057_vm0 = vcmp.gt.s32.totalorder %v2056_v5, 0  ;;  %v2053_v23 = vand.u32 8388607, %v2046_v34 }
 0x47e   : > { %v2040_v14 = vsel %vm2038_vm13, %v5019_v11, %v2039_v30  ;;  %v1918_v40 = vand.u32 2147483647, %v1917_v43  ;;  %v2210_v48 = vadd.s32 %v2209_v42, %v2205_v10  ;;  %v2058_v15 = vsel %vm2057_vm0, %v2056_v5, 0 }
 0x47f   : > { %v2044_v37 = vsel %vm2037_vm7, %v2040_v14, %v2043_v31  ;;  %v2362_v32 = vshrl.u32 %v2361_v58, 23  ;;  %v2060_v33 = vand.u32 31, %v2058_v15  ;;  %v7892_v27 = vand.u32 3, %v1931_v62 }
 0x480   : > { %v2045_v21 = vsel %vm2034_vm14, nan, %v2044_v37  ;;  %v1921_v18 = vmul.f32 %v1920_v47, %v1918_v40  ;;  %v2211_v60 = vadd.s32 536870912, %v2210_v48  ;;  %v2054_v38 = vor.u32 8388608, %v2053_v23 }
 0x481   : > { %4343 = vst [vmem:[%s5998_s13 + $0x48] sm:$0xff] %v2045_v21  ;;  %v2061_v44 = vsub.s32 32, %v2060_v33  ;;  %v2358_v24 = vand.u32 2147483647, %v7819_v0  ;;  %v4590_v49 = vadd.s32 4294967169, %v2362_v32  ;;  %v7897_v41 = vshrl.u32 %v2058_v15, 5 }
 0x482   : > { %v1922_v3 = vxor.u32 2147483648, %v1921_v18  ;;  %v2212_v54 = vshrl.u32 %v2211_v60, 30  ;;  %v2063_v19 = vshll.u32 %v5286_v51, %v2060_v33  ;;  %vm2152_vm3 = vcmp.lt.s32.totalorder %v7727_v39, 0 }
 0x483   : > { %v2064_v13 = vshrl.u32 %v5287_v55, %v2061_v44  ;;  %v2066_v11 = vshll.u32 %v5287_v55, %v2060_v33  ;;  %v2067_v63 = vshrl.u32 %v5288_v57, %v2061_v44  ;;  %v2069_v52 = vshll.u32 %v5288_v57, %v2060_v33 }
 0x484   : > { %v1923_v46 = vsel %vm1840_vm4, %v1922_v3, %v1921_v18  ;;  %v2213_v25 = vshll.u32 %v2212_v54, 30  ;;  %v2070_v56 = vshrl.u32 %v5289_v59, %v2061_v44  ;;  %v2072_v1 = vshll.u32 %v5289_v59, %v2060_v33 }
 0x485   : > { %v1926_v16 = vsel %vm7842_vm5, %v7645_v9, %v1923_v46  ;;  %v2065_v53 = vor.u32 %v2064_v13, %v2063_v19  ;;  %v7912_v2 = vshll.u32 %v2054_v38, 8  ;;  %v2068_v58 = vor.u32 %v2067_v63, %v2066_v11 }
 0x486   : > { %5022 = vcosq.f32 %v1926_v16  ;;  %v7907_v50 = vsub.s32 %v2210_v48, %v2213_v25  ;;  %v2071_v30 = vor.u32 %v2070_v56, %v2069_v52  ;;  %v2073_v43 = vshrl.u32 %v5290_v12, %v2061_v44 }
 0x487   : > { %5024 = vsinq.f32 %v1926_v16  ;;  %v2206_v10 = vadd.s32 %v7864_v29, %v7861_v20  ;;  %v2075_v5 = vshll.u32 %v5290_v12, %v2060_v33  ;;  %v2076_v31 = vshrl.u32 %v5291_v22, %v2061_v44 }
 0x488   : > { %v2216_v45 = vsub.s32 0, %v7907_v50  ;;  %v2368_v47 = vadd.s32 1, %v4590_v49  ;;  %vm1937_vm15 = vcmp.eq.s32.totalorder %v7892_v27, 2  ;;  %vm7923_vm4 = vcmp.le.f32.partialorder %v2150_v61, 0.7853982 }
 0x489   : > { %v2236_v14 = vsub.s32 4, %v2212_v54  ;;  %v2074_v40 = vor.u32 %v2073_v43, %v2072_v1  ;;  %vm2078_vm5 = vcmp.lt.s32.totalorder %v7897_v41, 1  ;;  %vm1934_vm8 = vcmp.eq.s32.totalorder %v7892_v27, 0 }
 0x48a   : > { %v4583_v42 = vmin.u32 %v2216_v45, %v7907_v50  ;;  %v2062_v20 = vshrl.u32 %v5286_v51, %v2061_v44  ;;  %v2077_v29 = vor.u32 %v2076_v31, %v2075_v5  ;;  %vm2079_vm6 = vcmp.lt.s32.totalorder %v7897_v41, 2 }
 0x48b   : > { %vm2081_vm10 = vcmp.lt.s32.totalorder %v7897_v41, 4  ;;  %vm1933_vm11 = vcmp.lt.s32.totalorder %v7892_v27, 2  ;;  %v2086_v37 = vsel %vm2078_vm5, %v2065_v53, %v2068_v58  ;;  %v2090_v23 = vsel %vm2078_vm5, %v2068_v58, %v2071_v30 }
 0x48c   : > { %v2218_v61 = vclz %v4583_v42  ;;  %v2083_v48 = vsel %vm2081_vm10, %v2071_v30, 2102212464  ;;  %vm1930_vm9 = vweird.f32 %v7645_v9  ;;  %vm2080_vm7 = vcmp.lt.s32.totalorder %v7897_v41, 3 }
 0x48d   : > { %v2087_v15 = vsel %vm2081_vm10, %v2074_v40, 920167782  ;;  %v2091_v32 = vsel %vm2081_vm10, %v2077_v29, 1326507024  ;;  %vm2369_vm14 = vcmp.gt.s32.totalorder %v2368_v47, 0  ;;  %v7942_v18 = vsel %vm2152_vm3, %v2236_v14, %v2212_v54 }
 0x48e   : > { %v4584_v21 = vadd.s32 4294967294, %v2218_v61  ;;  %v2088_v60 = vsel %vm2080_vm7, %v2071_v30, %v2087_v15  ;;  %v2092_v33 = vsel %vm2080_vm7, %v2074_v40, %v2091_v32  ;;  %v2082_v3 = vsel %vm2078_vm5, %v2062_v20, %v2065_v53 }
 0x48f   : > { %v2084_v38 = vsel %vm2080_vm7, %v2068_v58, %v2083_v48  ;;  %v2089_v44 = vsel %vm2079_vm6, %v2086_v37, %v2088_v60  ;;  %v2093_v49 = vsel %vm2079_vm6, %v2090_v23, %v2092_v33  ;;  %v2370_v54 = vsel %vm2369_vm14, %v2368_v47, 0 }
 0x490   : > { %v5023_v46 = vpop.eup %5022  ;;  %vm4585_vm13 = vcmp.lt.s32.totalorder %v4584_v21, 0  ;;  %v7951_v25 = vmul.u32.u64.low %v7912_v2, %v2093_v49  ;;  %v7952_v19 = vmul.u32.u64.high %v7912_v2, %v2093_v49, %v7951_v25  ;;  %v7961_v45 = vand.u32 8388607, %v2358_v24 }
 0x491   : > { %v5025_v16 = vpop.eup %5024  ;;  %v1938_v13 = vxor.u32 2147483648, %v5023_v46  ;;  %v2221_v11 = vsel %vm4585_vm13, 0, %v4584_v21  ;;  %v7955_v63 = vmul.u32.u64.low %v7912_v2, %v2089_v44  ;;  %v7956_v52 = vmul.u32.u64.high %v7912_v2, %v2089_v44, %v7955_v63 }
 0x492   : > { %v1935_v56 = vxor.u32 2147483648, %v5025_v16  ;;  %v2222_v53 = vsub.s32 32, %v2221_v11  ;;  %v2226_v1 = vsub.s32 4294967266, %v2221_v11  ;;  %v2239_v30 = vsel %vm7923_vm4, 0, %v7942_v18 }
 0x493   : > { %v1939_v58 = vsel %vm1937_vm15, %v1938_v13, %v5025_v16  ;;  %v2085_v43 = vsel %vm2079_vm6, %v2082_v3, %v2084_v38  ;;  %v2372_v5 = vand.u32 31, %v2370_v54  ;;  %v2223_v47 = vshll.u32 %v7907_v50, %v2221_v11  ;;  %v792_v3 = vpop.permute.xlu0 %791 }
 0x494   : > { %v1936_v31 = vsel %vm1934_vm8, %v5023_v46, %v1935_v56  ;;  %v2224_v42 = vshrl.u32 %v2206_v10, %v2222_v53  ;;  %v2227_v14 = vadd.s32 127, %v2226_v1  ;;  %vm2103_vm12 = vc.u32 %v7952_v19, %v7955_v63 }
 0x495   : > { %v1940_v40 = vsel %vm1933_vm11, %v1936_v31, %v1939_v58  ;;  %v2104_v20 = vadd.s32 1, %v7956_v52  ;;  %v2373_v29 = vsub.s32 32, %v2372_v5  ;;  %v2101_v37 = vmul.u32 %v7912_v2, %v2085_v43 }
 0x496   : > { %v1941_v41 = vsel %vm1930_vm9, nan, %v1940_v40  ;;  %v2225_v61 = vor.u32 %v2224_v42, %v2223_v47  ;;  %v2228_v48 = vshll.u32 %v2227_v14, 23  ;;  %v2371_v10 = vshrl.u32 %v2370_v54, 5 }
 0x497   : > { %4342 = vst [vmem:[%s5998_s13 + $0x40] sm:$0xff] %v1941_v41  ;;  %v2105_v50 = vsel %vm2103_vm12, %v2104_v20, %v7956_v52  ;;  %v2375_v27 = vshll.u32 %v5286_v51, %v2372_v5  ;;  %v2376_v23 = vshrl.u32 %v5287_v55, %v2373_v29  ;;  %v2378_v21 = vshll.u32 %v5287_v55, %v2372_v5 }
 0x498   : > { %v2229_v15 = vor.u32 4788187, %v2228_v48  ;;  %v2106_v32 = vadd.s32 %v2105_v50, %v2101_v37  ;;  %v2379_v18 = vshrl.u32 %v5288_v57, %v2373_v29  ;;  %v2232_v9 = vcvt.s32.f32 %v2225_v61 }
 0x499   : > { %v2377_v60 = vor.u32 %v2376_v23, %v2375_v27  ;;  %v2381_v33 = vshll.u32 %v5288_v57, %v2372_v5  ;;  %v2382_v2 = vshrl.u32 %v5289_v59, %v2373_v29  ;;  %v2384_v49 = vshll.u32 %v5289_v59, %v2372_v5 }
 0x49a   : > { %v2230_v38 = vand.u32 2147483647, %v2229_v15  ;;  %v2107_v44 = vadd.s32 536870912, %v2106_v32  ;;  %v2385_v46 = vshrl.u32 %v5290_v12, %v2373_v29  ;;  %v2380_v25 = vor.u32 %v2379_v18, %v2378_v21  ;;  %v807_v18 = vpop.permute.xlu1 %806 }
 0x49b   : > { %v2383_v54 = vor.u32 %v2382_v2, %v2381_v33  ;;  %v2387_v16 = vshll.u32 %v5290_v12, %v2372_v5  ;;  %v2388_v13 = vshrl.u32 %v5291_v22, %v2373_v29  ;;  %v910_v53 = vsel %vm543_vm1, %v6888_v17, %v792_v3 }
 0x49c   : > { %v2233_v11 = vmul.f32 %v2232_v9, %v2230_v38  ;;  %v2108_v52 = vshrl.u32 %v2107_v44, 30  ;;  %v2386_v56 = vor.u32 %v2385_v46, %v2384_v49  ;;  %v2243_v1 = vadd.s32 3, %v2239_v30 }
 0x49d   : > { %v2366_v58 = vor.u32 8388608, %v7961_v45  ;;  %v2389_v43 = vor.u32 %v2388_v13, %v2387_v16  ;;  %vm2390_vm2 = vcmp.lt.s32.totalorder %v2371_v10, 1  ;;  %vm2392_vm0 = vcmp.lt.s32.totalorder %v2371_v10, 3 }
 0x49e   : > { %v2234_v31 = vxor.u32 2147483648, %v2233_v11  ;;  %v2109_v47 = vshll.u32 %v2108_v52, 30  ;;  %vm2393_vm15 = vcmp.lt.s32.totalorder %v2371_v10, 4  ;;  %v2398_v5 = vsel %vm2390_vm2, %v2377_v60, %v2380_v25 }
 0x49f   : > { %v2399_v42 = vsel %vm2393_vm15, %v2386_v56, 920167782  ;;  %v2402_v14 = vsel %vm2390_vm2, %v2380_v25, %v2383_v54  ;;  %v2403_v40 = vsel %vm2393_vm15, %v2389_v43, 1326507024  ;;  %vm2391_vm5 = vcmp.lt.s32.totalorder %v2371_v10, 2 }
 0x4a0   : > { %v2235_v20 = vsel %vm2152_vm3, %v2234_v31, %v2233_v11  ;;  %v8001_v41 = vsub.s32 %v2106_v32, %v2109_v47  ;;  %v2400_v17 = vsel %vm2392_vm0, %v2383_v54, %v2399_v42  ;;  %v2374_v30 = vshrl.u32 %v5286_v51, %v2373_v29 }
 0x4a1   : > { %v2238_v45 = vsel %vm7923_vm4, %v7727_v39, %v2235_v20  ;;  %v2395_v61 = vsel %vm2393_vm15, %v2383_v54, 2102212464  ;;  %v2404_v48 = vsel %vm2392_vm0, %v2386_v56, %v2403_v40  ;;  %v2401_v50 = vsel %vm2391_vm5, %v2398_v5, %v2400_v17 }
 0x4a2   : > { %5026 = vcosq.f32 %v2238_v45  ;;  %v2112_v37 = vsub.s32 0, %v8001_v41  ;;  %v2405_v27 = vsel %vm2391_vm5, %v2402_v14, %v2404_v48  ;;  %v2406_v23 = vshll.u32 %v2366_v58, 8 }
 0x4a3   : > { %5028 = vsinq.f32 %v2238_v45  ;;  %v948_v15 = vmul.f32 %v7713_v26, %v910_v53  ;;  %v2244_v32 = vand.u32 3, %v2243_v1  ;;  %v2394_v21 = vsel %vm2390_vm2, %v2374_v30, %v2377_v60 }
 0x4a4   : > { %v4579_v62 = vmin.u32 %v2112_v37, %v8001_v41  ;;  %v2396_v29 = vsel %vm2392_vm0, %v2380_v25, %v2395_v61  ;;  %v8016_v9 = vmul.u32.u64.low %v2406_v23, %v2405_v27  ;;  %v8017_v33 = vmul.u32.u64.high %v2406_v23, %v2405_v27, %v8016_v9 }
 0x4a5   : > { %v8019_v2 = vmul.u32.u64.low %v2406_v23, %v2401_v50  ;;  %v8020_v3 = vmul.u32.u64.high %v2406_v23, %v2401_v50, %v8019_v2  ;;  %v2132_v44 = vsub.s32 4, %v2108_v52  ;;  %v2397_v49 = vsel %vm2391_vm5, %v2394_v21, %v2396_v29 }
 0x4a6   : > { %v2114_v38 = vclz %v4579_v62  ;;  %v8025_v46 = vadd.f32 %v7642_v36, %v948_v15  ;;  %v913_v60 = vsel %vm543_vm1, %v6813_v4, %v807_v18  ;;  %vm2245_vm3 = vcmp.lt.s32.totalorder %v2244_v32, 2 }
 0x4a7   : > { %vm8032_vm4 = vcmp.le.f32.partialorder %v2046_v34, 0.7853982  ;;  %vm2048_vm8 = vcmp.lt.s32.totalorder %v7816_v28, 0  ;;  %vm2246_vm6 = vcmp.eq.s32.totalorder %v2244_v32, 0  ;;  %vm2249_vm10 = vcmp.eq.s32.totalorder %v2244_v32, 2 }
 0x4a8   : > { %v4580_v54 = vadd.s32 4294967294, %v2114_v38  ;;  %vm2415_vm11 = vc.u32 %v8017_v33, %v8019_v2  ;;  %v2416_v36 = vadd.s32 1, %v8020_v3  ;;  %v2133_v4 = vsel %vm2048_vm8, %v2132_v44, %v2108_v52  ;;  %v803_v38 = vpop.permute.xlu0 %802 }
 0x4a9   : > { %v2413_v10 = vmul.u32 %v2406_v23, %v2397_v49  ;;  %v2257_v34 = vand.u32 2139095040, %v8025_v46  ;;  %v2254_v11 = vand.u32 2147483647, %v8025_v46  ;;  %v951_v56 = vmul.f32 %v7713_v26, %v913_v60 }
 0x4aa   : > { %vm4581_vm9 = vcmp.lt.s32.totalorder %v4580_v54, 0  ;;  %v2417_v13 = vsel %vm2415_vm11, %v2416_v36, %v8020_v3  ;;  %v2102_v1 = vadd.s32 %v7955_v63, %v7952_v19  ;;  %v2135_v42 = vsel %vm8032_vm4, 0, %v2133_v4  ;;  %v8057_v63 = vld [vmem:[%s8548_s5] ss:$0 sm:$0xff] }
 0x4ab   : > { %v2117_v16 = vsel %vm4581_vm9, 0, %v4580_v54  ;;  %v2418_v31 = vadd.s32 %v2417_v13, %v2413_v10  ;;  %v2258_v14 = vshrl.u32 %v2257_v34, 23  ;;  %v2261_v19 = vand.u32 8388607, %v2254_v11 }
 0x4ac   : > { %v5027_v53 = vpop.eup %5026  ;;  %v2118_v58 = vsub.s32 32, %v2117_v16  ;;  %v2122_v43 = vsub.s32 4294967266, %v2117_v16  ;;  %v2119_v52 = vshll.u32 %v8001_v41, %v2117_v16  ;;  %v8060_v41 = vadd.f32 %v8057_v63, %v951_v56 }
 0x4ad   : > { %v5029_v47 = vpop.eup %5028  ;;  %v2250_v5 = vxor.u32 2147483648, %v5027_v53  ;;  %v2419_v45 = vadd.s32 536870912, %v2418_v31  ;;  %v4586_v30 = vadd.s32 4294967169, %v2258_v14  ;;  %vm2242_vm7 = vweird.f32 %v7727_v39 }
 0x4ae   : > { %v2247_v40 = vxor.u32 2147483648, %v5029_v47  ;;  %v2120_v20 = vshrl.u32 %v2102_v1, %v2118_v58  ;;  %v2123_v17 = vadd.s32 127, %v2122_v43  ;;  %v2139_v21 = vadd.s32 3, %v2135_v42 }
 0x4af   : > { %v2251_v26 = vsel %vm2249_vm10, %v2250_v5, %v5029_v47  ;;  %v8063_v50 = vshrl.u32 %v2419_v45, 30  ;;  %v2264_v23 = vadd.s32 1, %v4586_v30  ;;  %v2262_v18 = vor.u32 8388608, %v2261_v19 }
 0x4b0   : > { %v2248_v61 = vsel %vm2246_vm6, %v5027_v53, %v2247_v40  ;;  %v2121_v48 = vor.u32 %v2120_v20, %v2119_v52  ;;  %v2124_v37 = vshll.u32 %v2123_v17, 23  ;;  %v2566_v9 = vand.u32 2147483647, %v8060_v41 }
 0x4b1   : > { %v2252_v27 = vsel %vm2245_vm3, %v2248_v61, %v2251_v26  ;;  %v2421_v29 = vshll.u32 %v8063_v50, 30  ;;  %vm2265_vm14 = vcmp.gt.s32.totalorder %v2264_v23, 0  ;;  %v2569_v3 = vand.u32 2139095040, %v8060_v41 }
 0x4b2   : > { %v2253_v15 = vsel %vm2242_vm7, nan, %v2252_v27  ;;  %v2125_v62 = vor.u32 4788187, %v2124_v37  ;;  %v2128_v49 = vcvt.s32.f32 %v2121_v48  ;;  %v2266_v39 = vsel %vm2265_vm14, %v2264_v23, 0 }
 0x4b3   : > { %4345 = vst [vmem:[%s5998_s13 + $0x58] sm:$0xff] %v2253_v15  ;;  %v8071_v60 = vsub.s32 %v2418_v31, %v2421_v29  ;;  %v2268_v32 = vand.u32 31, %v2266_v39  ;;  %v8073_v36 = vand.u32 3, %v2139_v21  ;;  %v8079_v10 = vsel %vm543_vm1, %v6906_v35, %v803_v38 }
 0x4b4   : > { %v2126_v44 = vand.u32 2147483647, %v2125_v62  ;;  %v2414_v34 = vadd.s32 %v8019_v2, %v8017_v33  ;;  %v2444_v16 = vsub.s32 4, %v8063_v50  ;;  %v8084_v56 = vshll.u32 %v2262_v18, 8 }
 0x4b5   : > { %v2424_v4 = vsub.s32 0, %v8071_v60  ;;  %v2269_v13 = vsub.s32 32, %v2268_v32  ;;  %v2570_v58 = vshrl.u32 %v2569_v3, 23  ;;  %v8089_v43 = vand.u32 8388607, %v2566_v9 }
 0x4b6   : > { %v2129_v54 = vmul.f32 %v2128_v49, %v2126_v44  ;;  %v8091_v31 = vshrl.u32 %v2266_v39, 5  ;;  %v2271_v35 = vshll.u32 %v5286_v51, %v2268_v32  ;;  %v2274_v40 = vshll.u32 %v5287_v55, %v2268_v32 }
 0x4b7   : > { %v4591_v1 = vmin.u32 %v2424_v4, %v8071_v60  ;;  %v2272_v47 = vshrl.u32 %v5287_v55, %v2269_v13  ;;  %v2275_v33 = vshrl.u32 %v5288_v57, %v2269_v13  ;;  %v2278_v52 = vshrl.u32 %v5289_v59, %v2269_v13 }
 0x4b8   : > { %v2130_v53 = vxor.u32 2147483648, %v2129_v54  ;;  %v2281_v42 = vshrl.u32 %v5290_v12, %v2269_v13  ;;  %v2277_v20 = vshll.u32 %v5288_v57, %v2268_v32  ;;  %v2280_v17 = vshll.u32 %v5289_v59, %v2268_v32 }
 0x4b9   : > { %v2426_v5 = vclz %v4591_v1  ;;  %v2273_v26 = vor.u32 %v2272_v47, %v2271_v35  ;;  %v4598_v30 = vadd.s32 4294967169, %v2570_v58  ;;  %vm2360_vm13 = vcmp.lt.s32.totalorder %v7819_v0, 0 }
 0x4ba   : > { %v2131_v2 = vsel %vm2048_vm8, %v2130_v53, %v2129_v54  ;;  %v2276_v19 = vor.u32 %v2275_v33, %v2274_v40  ;;  %v2279_v61 = vor.u32 %v2278_v52, %v2277_v20  ;;  %v2282_v48 = vor.u32 %v2281_v42, %v2280_v17 }
 0x4bb   : > { %v2134_v14 = vsel %vm8032_vm4, %v7816_v28, %v2131_v2  ;;  %v4592_v45 = vadd.s32 4294967294, %v2426_v5  ;;  %v2270_v25 = vshrl.u32 %v5286_v51, %v2269_v13  ;;  %v2283_v37 = vshll.u32 %v5290_v12, %v2268_v32 }
 0x4bc   : > { %5030 = vcosq.f32 %v2134_v14  ;;  %v2284_v27 = vshrl.u32 %v5291_v22, %v2269_v13  ;;  %vm2286_vm2 = vcmp.lt.s32.totalorder %v8091_v31, 1  ;;  %vm2287_vm0 = vcmp.lt.s32.totalorder %v8091_v31, 2 }
 0x4bd   : > { %5032 = vsinq.f32 %v2134_v14  ;;  %vm4593_vm12 = vcmp.lt.s32.totalorder %v4592_v45, 0  ;;  %vm2288_vm15 = vcmp.lt.s32.totalorder %v8091_v31, 3  ;;  %vm2145_vm5 = vcmp.eq.s32.totalorder %v8073_v36, 2 }
 0x4be   : > { %v2429_v23 = vsel %vm4593_vm12, 0, %v4592_v45  ;;  %vm8116_vm3 = vcmp.le.f32.partialorder %v2358_v24, 0.7853982  ;;  %v2285_v29 = vor.u32 %v2284_v27, %v2283_v37  ;;  %vm2289_vm4 = vcmp.lt.s32.totalorder %v8091_v31, 4 }
 0x4bf   : > { %v2430_v62 = vsub.s32 32, %v2429_v23  ;;  %v2434_v21 = vsub.s32 4294967266, %v2429_v23  ;;  %vm2142_vm8 = vcmp.eq.s32.totalorder %v8073_v36, 0  ;;  %v2431_v18 = vshll.u32 %v8071_v60, %v2429_v23 }
 0x4c0   : > { %v2291_v3 = vsel %vm2289_vm4, %v2279_v61, 2102212464  ;;  %v2294_v38 = vsel %vm2286_vm2, %v2273_v26, %v2276_v19  ;;  %v2295_v44 = vsel %vm2289_vm4, %v2282_v48, 920167782  ;;  %vm2141_vm6 = vcmp.lt.s32.totalorder %v8073_v36, 2 }
 0x4c1   : > { %v2432_v24 = vshrl.u32 %v2414_v34, %v2430_v62  ;;  %v2435_v49 = vadd.s32 127, %v2434_v21  ;;  %v2296_v39 = vsel %vm2288_vm15, %v2279_v61, %v2295_v44  ;;  %v2298_v32 = vsel %vm2286_vm2, %v2276_v19, %v2279_v61 }
 0x4c2   : > { %vm2138_vm10 = vweird.f32 %v7816_v28  ;;  %v2290_v60 = vsel %vm2286_vm2, %v2270_v25, %v2273_v26  ;;  %v2297_v54 = vsel %vm2287_vm0, %v2294_v38, %v2296_v39  ;;  %v2299_v4 = vsel %vm2289_vm4, %v2285_v29, 1326507024  ;;  %v8160_v26 = vld [vmem:[%s8547_s4] ss:$0 sm:$0xff] }
 0x4c3   : > { %v2576_v13 = vadd.s32 1, %v4598_v30  ;;  %v2433_v53 = vor.u32 %v2432_v24, %v2431_v18  ;;  %v2436_v1 = vshll.u32 %v2435_v49, 23  ;;  %v2292_v34 = vsel %vm2288_vm15, %v2276_v19, %v2291_v3 }
 0x4c4   : > { %v2300_v58 = vsel %vm2288_vm15, %v2282_v48, %v2299_v4  ;;  %v8142_v47 = vmul.u32.u64.low %v8084_v56, %v2297_v54  ;;  %v8143_v33 = vmul.u32.u64.high %v8084_v56, %v2297_v54, %v8142_v47  ;;  %v2445_v52 = vsel %vm2360_vm13, %v2444_v16, %v8063_v50 }
 0x4c5   : > { %v2301_v35 = vsel %vm2287_vm0, %v2298_v32, %v2300_v58  ;;  %vm2577_vm11 = vcmp.gt.s32.totalorder %v2576_v13, 0  ;;  %v2437_v5 = vor.u32 4788187, %v2436_v1  ;;  %v2293_v17 = vsel %vm2287_vm0, %v2290_v60, %v2292_v34  ;;  %v895_v1 = vpop.permute.xlu1 %894 }
 0x4c6   : > { %v5031_v2 = vpop.eup %5030  ;;  %v8152_v42 = vmul.u32.u64.low %v8084_v56, %v2301_v35  ;;  %v8153_v14 = vmul.u32.u64.high %v8084_v56, %v2301_v35, %v8152_v42  ;;  %v2578_v45 = vsel %vm2577_vm11, %v2576_v13, 0  ;;  %v950_v30 = vmul.f32 %v8160_v26, %v8079_v10 }
 0x4c7   : > { %v5033_v40 = vpop.eup %5032  ;;  %v2146_v20 = vxor.u32 2147483648, %v5031_v2  ;;  %v2438_v50 = vand.u32 2147483647, %v2437_v5  ;;  %v2440_v16 = vcvt.s32.f32 %v2433_v53  ;;  %v2580_v61 = vand.u32 31, %v2578_v45 }
 0x4c8   : > { %v2143_v19 = vxor.u32 2147483648, %v5033_v40  ;;  %v2447_v31 = vsel %vm8116_vm3, 0, %v2445_v52  ;;  %v2312_v25 = vadd.s32 1, %v8143_v33  ;;  %v2574_v37 = vor.u32 8388608, %v8089_v43 }
 0x4c9   : > { %v2147_v48 = vsel %vm2145_vm5, %v2146_v20, %v5033_v40  ;;  %v2441_v23 = vmul.f32 %v2440_v16, %v2438_v50  ;;  %v2309_v10 = vmul.u32 %v8084_v56, %v2293_v17  ;;  %vm2311_vm9 = vc.u32 %v8153_v14, %v8142_v47 }
 0x4ca   : > { %v2144_v27 = vsel %vm2142_vm8, %v5031_v2, %v2143_v19  ;;  %v2313_v21 = vsel %vm2311_vm9, %v2312_v25, %v8143_v33  ;;  %v8178_v29 = vshrl.u32 %v2578_v45, 5  ;;  %v2581_v18 = vsub.s32 32, %v2580_v61 }
 0x4cb   : > { %v2148_v62 = vsel %vm2141_vm6, %v2144_v27, %v2147_v48  ;;  %v2442_v3 = vxor.u32 2147483648, %v2441_v23  ;;  %v2314_v38 = vadd.s32 %v2313_v21, %v2309_v10  ;;  %v2583_v44 = vshll.u32 %v5286_v51, %v2580_v61 }
 0x4cc   : > { %v2149_v43 = vsel %vm2138_vm10, nan, %v2148_v62  ;;  %v2584_v56 = vshrl.u32 %v5287_v55, %v2581_v18  ;;  %v2586_v24 = vshll.u32 %v5287_v55, %v2580_v61  ;;  %v2587_v36 = vshrl.u32 %v5288_v57, %v2581_v18 }
 0x4cd   : > { %4344 = vst [vmem:[%s5998_s13 + $0x50] sm:$0xff] %v2149_v43  ;;  %v2589_v49 = vshll.u32 %v5288_v57, %v2580_v61  ;;  %v2443_v39 = vsel %vm2360_vm13, %v2442_v3, %v2441_v23  ;;  %v2315_v32 = vadd.s32 536870912, %v2314_v38  ;;  %v2590_v28 = vshrl.u32 %v5289_v59, %v2581_v18 }
 0x4ce   : > { %v2592_v60 = vshll.u32 %v5289_v59, %v2580_v61  ;;  %v2446_v54 = vsel %vm8116_vm3, %v7819_v0, %v2443_v39  ;;  %v2585_v4 = vor.u32 %v2584_v56, %v2583_v44  ;;  %v2588_v13 = vor.u32 %v2587_v36, %v2586_v24 }
 0x4cf   : > { %v2593_v53 = vshrl.u32 %v5290_v12, %v2581_v18  ;;  %5034 = vcosq.f32 %v2446_v54  ;;  %v2451_v34 = vadd.s32 3, %v2447_v31  ;;  %v2316_v58 = vshrl.u32 %v2315_v32, 30 }
 0x4d0   : > { %v2591_v35 = vor.u32 %v2590_v28, %v2589_v49  ;;  %5036 = vsinq.f32 %v2446_v54  ;;  %v2595_v2 = vshll.u32 %v5290_v12, %v2580_v61  ;;  %v2596_v5 = vshrl.u32 %v5291_v22, %v2581_v18 }
 0x4d1   : > { %v2594_v33 = vor.u32 %v2593_v53, %v2592_v60  ;;  %v2317_v52 = vshll.u32 %v2316_v58, 30  ;;  %vm2598_vm7 = vcmp.lt.s32.totalorder %v8178_v29, 1  ;;  %v8202_v15 = vsel %vm543_vm1, %v5695_v7, %v895_v1 }
 0x4d2   : > { %vm2256_vm14 = vcmp.lt.s32.totalorder %v8025_v46, 0  ;;  %v2597_v42 = vor.u32 %v2596_v5, %v2595_v2  ;;  %vm2601_vm13 = vcmp.lt.s32.totalorder %v8178_v29, 4  ;;  %v2606_v40 = vsel %vm2598_vm7, %v2585_v4, %v2588_v13 }
 0x4d3   : > { %v2452_v20 = vand.u32 3, %v2451_v34  ;;  %v8208_v17 = vsub.s32 %v2314_v38, %v2317_v52  ;;  %vm2600_vm12 = vcmp.lt.s32.totalorder %v8178_v29, 3  ;;  %v2607_v45 = vsel %vm2601_vm13, %v2594_v33, 920167782 }
 0x4d4   : > { %vm2599_vm2 = vcmp.lt.s32.totalorder %v8178_v29, 2  ;;  %v2608_v7 = vsel %vm2600_vm12, %v2591_v35, %v2607_v45  ;;  %v2614_v19 = vshll.u32 %v2574_v37, 8  ;;  %v8217_v50 = vadd.f32 %v8057_v63, %v950_v30 }
 0x4d5   : > { %v2320_v16 = vsub.s32 0, %v8208_v17  ;;  %v2340_v61 = vsub.s32 4, %v2316_v58  ;;  %v2609_v48 = vsel %vm2599_vm2, %v2606_v40, %v2608_v7  ;;  %v2610_v31 = vsel %vm2598_vm7, %v2588_v13, %v2591_v35 }
 0x4d6   : > { %vm2450_vm0 = vweird.f32 %v7819_v0  ;;  %v2603_v25 = vsel %vm2601_vm13, %v2591_v35, 2102212464  ;;  %v2611_v37 = vsel %vm2601_vm13, %v2597_v42, 1326507024  ;;  %vm8235_vm15 = vcmp.le.f32.partialorder %v2254_v11, 0.7853982 }
 0x4d7   : > { %v8229_v27 = vmul.u32.u64.low %v2614_v19, %v2609_v48  ;;  %v8230_v30 = vmul.u32.u64.high %v2614_v19, %v2609_v48, %v8229_v27  ;;  %v4587_v10 = vmin.u32 %v2320_v16, %v8208_v17  ;;  %v2582_v62 = vshrl.u32 %v5286_v51, %v2581_v18 }
 0x4d8   : > { %v2612_v21 = vsel %vm2600_vm12, %v2594_v33, %v2611_v37  ;;  %vm2453_vm5 = vcmp.lt.s32.totalorder %v2452_v20, 2  ;;  %vm2454_vm3 = vcmp.eq.s32.totalorder %v2452_v20, 0  ;;  %v2465_v3 = vand.u32 2139095040, %v8217_v50 }
 0x4d9   : > { %v2613_v43 = vsel %vm2599_vm2, %v2610_v31, %v2612_v21  ;;  %v5035_v38 = vpop.eup %5034  ;;  %v2322_v44 = vclz %v4587_v10  ;;  %v2602_v11 = vsel %vm2598_vm7, %v2582_v62, %v2585_v4  ;;  %v2604_v56 = vsel %vm2600_vm12, %v2588_v13, %v2603_v25 }
 0x4da   : > { %v2462_v18 = vand.u32 2147483647, %v8217_v50  ;;  %v5037_v24 = vpop.eup %5036  ;;  %v2458_v36 = vxor.u32 2147483648, %v5035_v38  ;;  %v2341_v49 = vsel %vm2256_vm14, %v2340_v61, %v2316_v58  ;;  %vm2457_vm4 = vcmp.eq.s32.totalorder %v2452_v20, 2 }
 0x4db   : > { %v8253_v39 = vmul.u32.u64.low %v2614_v19, %v2613_v43  ;;  %v8254_v32 = vmul.u32.u64.high %v2614_v19, %v2613_v43, %v8253_v39  ;;  %v2455_v28 = vxor.u32 2147483648, %v5037_v24  ;;  %v4588_v60 = vadd.s32 4294967294, %v2322_v44 }
 0x4dc   : > { %v2466_v54 = vshrl.u32 %v2465_v3, 23  ;;  %v2459_v53 = vsel %vm2457_vm4, %v2458_v36, %v5037_v24  ;;  %v2310_v4 = vadd.s32 %v8142_v47, %v8153_v14  ;;  %v2605_v13 = vsel %vm2599_vm2, %v2602_v11, %v2604_v56 }
 0x4dd   : > { %v2624_v1 = vadd.s32 1, %v8230_v30  ;;  %v2456_v34 = vsel %vm2454_vm3, %v5035_v38, %v2455_v28  ;;  %vm4589_vm8 = vcmp.lt.s32.totalorder %v4588_v60, 0  ;;  %v2343_v58 = vsel %vm8235_vm15, 0, %v2341_v49 }
 0x4de   : > { %v4594_v35 = vadd.s32 4294967169, %v2466_v54  ;;  %v2460_v33 = vsel %vm2453_vm5, %v2456_v34, %v2459_v53  ;;  %v2325_v2 = vsel %vm4589_vm8, 0, %v4588_v60  ;;  %vm2623_vm6 = vc.u32 %v8254_v32, %v8229_v27 }
 0x4df   : > { %v2469_v47 = vand.u32 8388607, %v2462_v18  ;;  %v2461_v14 = vsel %vm2450_vm0, nan, %v2460_v33  ;;  %v2326_v29 = vsub.s32 32, %v2325_v2  ;;  %v2330_v5 = vsub.s32 4294967266, %v2325_v2 }
 0x4e0   : > { %v2621_v52 = vmul.u32 %v2614_v19, %v2605_v13  ;;  %4347 = vst [vmem:[%s5998_s13 + $0x68] sm:$0xff] %v2461_v14  ;;  %v2625_v42 = vsel %vm2623_vm6, %v2624_v1, %v8230_v30  ;;  %v2472_v40 = vadd.s32 1, %v4594_v35  ;;  %v967_v20 = vmul.f32 %v8160_v26, %v8202_v15  ;;  %v891_v19 = vpop.permute.xlu0 %890 }
 0x4e1   : > { %v2327_v45 = vshll.u32 %v8208_v17, %v2325_v2  ;;  %v2328_v7 = vshrl.u32 %v2310_v4, %v2326_v29  ;;  %v2331_v16 = vadd.s32 127, %v2330_v5  ;;  %v2347_v48 = vadd.s32 3, %v2343_v58 }
 0x4e2   : > { %v2626_v61 = vadd.s32 %v2625_v42, %v2621_v52  ;;  %v2470_v31 = vor.u32 8388608, %v2469_v47  ;;  %vm2473_vm10 = vcmp.gt.s32.totalorder %v2472_v40, 0  ;;  %v8277_v30 = vadd.f32 %v8057_v63, %v967_v20 }
 0x4e3   : > { %v2329_v0 = vor.u32 %v2328_v7, %v2327_v45  ;;  %v2332_v25 = vshll.u32 %v2331_v16, 23  ;;  %v2474_v10 = vsel %vm2473_vm10, %v2472_v40, 0  ;;  %v8281_v15 = vand.u32 3, %v2347_v48 }
 0x4e4   : > { %v2627_v37 = vadd.s32 536870912, %v2626_v61  ;;  %v2476_v62 = vand.u32 31, %v2474_v10  ;;  %v8286_v3 = vsel %vm543_vm1, %v5697_v8, %v891_v19  ;;  %v8289_v56 = vshll.u32 %v2470_v31, 8 }
 0x4e5   : > { %v2333_v21 = vor.u32 4788187, %v2332_v25  ;;  %v2336_v44 = vcvt.s32.f32 %v2329_v0  ;;  %v4233_v39 = vand.u32 2139095040, %v8277_v30  ;;  %v2622_v54 = vadd.s32 %v8229_v27, %v8254_v32 }
 0x4e6   : > { %v8279_v43 = vshrl.u32 %v2627_v37, 30  ;;  %v2477_v17 = vsub.s32 32, %v2476_v62  ;;  %v2479_v6 = vshll.u32 %v5286_v51, %v2476_v62  ;;  %v2475_v53 = vshrl.u32 %v2474_v10, 5 }
 0x4e7   : > { %v2334_v38 = vand.u32 2147483647, %v2333_v21  ;;  %v2482_v4 = vshll.u32 %v5287_v55, %v2476_v62  ;;  %v2485_v13 = vshll.u32 %v5288_v57, %v2476_v62  ;;  %v2488_v35 = vshll.u32 %v5289_v59, %v2476_v62 }
 0x4e8   : > { %v2629_v11 = vshll.u32 %v8279_v43, 30  ;;  %v2480_v24 = vshrl.u32 %v5287_v55, %v2477_v17  ;;  %v2483_v36 = vshrl.u32 %v5288_v57, %v2477_v17  ;;  %v2486_v49 = vshrl.u32 %v5289_v59, %v2477_v17 }
 0x4e9   : > { %v2337_v28 = vmul.f32 %v2336_v44, %v2334_v38  ;;  %v2489_v8 = vshrl.u32 %v5290_v12, %v2477_v17  ;;  %v2491_v47 = vshll.u32 %v5290_v12, %v2476_v62  ;;  %v2492_v14 = vshrl.u32 %v5291_v22, %v2477_v17 }
 0x4ea   : > { %v8295_v60 = vsub.s32 %v2626_v61, %v2629_v11  ;;  %v2481_v58 = vor.u32 %v2480_v24, %v2479_v6  ;;  %v2484_v33 = vor.u32 %v2483_v36, %v2482_v4  ;;  %v2487_v2 = vor.u32 %v2486_v49, %v2485_v13 }
 0x4eb   : > { %v2338_v1 = vxor.u32 2147483648, %v2337_v28  ;;  %v2490_v29 = vor.u32 %v2489_v8, %v2488_v35  ;;  %v4234_v5 = vshrl.u32 %v4233_v39, 23  ;;  %v2652_v42 = vsub.s32 4, %v8279_v43 }
 0x4ec   : > { %v2632_v34 = vsub.s32 0, %v8295_v60  ;;  %v2478_v40 = vshrl.u32 %v5286_v51, %v2477_v17  ;;  %v2493_v20 = vor.u32 %v2492_v14, %v2491_v47  ;;  %vm2568_vm1 = vcmp.lt.s32.totalorder %v8060_v41, 0 }
 0x4ed   : > { %v2339_v27 = vsel %vm2256_vm14, %v2338_v1, %v2337_v28  ;;  %vm2494_vm11 = vcmp.lt.s32.totalorder %v2475_v53, 1  ;;  %vm2497_vm9 = vcmp.lt.s32.totalorder %v2475_v53, 4  ;;  %vm2495_vm7 = vcmp.lt.s32.totalorder %v2475_v53, 2 }
 0x4ee   : > { %v4599_v32 = vmin.u32 %v2632_v34, %v8295_v60  ;;  %v2342_v52 = vsel %vm8235_vm15, %v8025_v46, %v2339_v27  ;;  %v2499_v7 = vsel %vm2497_vm9, %v2487_v2, 2102212464  ;;  %v2502_v16 = vsel %vm2494_vm11, %v2481_v58, %v2484_v33 }
 0x4ef   : > { %5038 = vcosq.f32 %v2342_v52  ;;  %vm2496_vm14 = vcmp.lt.s32.totalorder %v2475_v53, 3  ;;  %v2503_v48 = vsel %vm2497_vm9, %v2490_v29, 920167782  ;;  %v2506_v23 = vsel %vm2494_vm11, %v2484_v33, %v2487_v2 }
 0x4f0   : > { %v2634_v45 = vclz %v4599_v32  ;;  %5040 = vsinq.f32 %v2342_v52  ;;  %vm8318_vm13 = vcmp.le.f32.partialorder %v2566_v9, 0.7853982  ;;  %v2498_v0 = vsel %vm2494_vm11, %v2478_v40, %v2481_v58 }
 0x4f1   : > { %v2504_v25 = vsel %vm2496_vm14, %v2487_v2, %v2503_v48  ;;  %v2507_v37 = vsel %vm2497_vm9, %v2493_v20, 1326507024  ;;  %v4662_v10 = vadd.s32 4294967169, %v4234_v5  ;;  %v2500_v19 = vsel %vm2496_vm14, %v2484_v33, %v2499_v7 }
 0x4f2   : > { %v4600_v61 = vadd.s32 4294967294, %v2634_v45  ;;  %v2505_v62 = vsel %vm2495_vm7, %v2502_v16, %v2504_v25  ;;  %v2508_v21 = vsel %vm2496_vm14, %v2490_v29, %v2507_v37  ;;  %vm2349_vm2 = vcmp.lt.s32.totalorder %v8281_v15, 2 }
 0x4f3   : > { %v2509_v38 = vsel %vm2495_vm7, %v2506_v23, %v2508_v21  ;;  %v8325_v44 = vmul.u32.u64.low %v8289_v56, %v2505_v62  ;;  %v8326_v11 = vmul.u32.u64.high %v8289_v56, %v2505_v62, %v8325_v44  ;;  %v4230_v36 = vand.u32 2147483647, %v8277_v30 }
 0x4f4   : > { %vm4601_vm12 = vcmp.lt.s32.totalorder %v4600_v61, 0  ;;  %v4240_v49 = vadd.s32 1, %v4662_v10  ;;  %vm2346_vm0 = vweird.f32 %v8025_v46  ;;  %v2501_v39 = vsel %vm2495_vm7, %v2498_v0, %v2500_v19 }
 0x4f5   : > { %v2637_v17 = vsel %vm4601_vm12, 0, %v4600_v61  ;;  %v8334_v28 = vmul.u32.u64.low %v8289_v56, %v2509_v38  ;;  %v8335_v6 = vmul.u32.u64.high %v8289_v56, %v2509_v38, %v8334_v28  ;;  %v966_v8 = vmul.f32 %v8160_v26, %v8286_v3 }
 0x4f6   : > { %v2638_v9 = vsub.s32 32, %v2637_v17  ;;  %v2642_v24 = vsub.s32 4294967266, %v2637_v17  ;;  %v2639_v4 = vshll.u32 %v8295_v60, %v2637_v17  ;;  %vm4241_vm15 = vcmp.gt.s32.totalorder %v4240_v49, 0 }
 0x4f7   : > { %vm2353_vm5 = vcmp.eq.s32.totalorder %v8281_v15, 2  ;;  %v2653_v34 = vsel %vm2568_vm1, %v2652_v42, %v8279_v43  ;;  %v2520_v53 = vadd.s32 1, %v8326_v11  ;;  %v4242_v58 = vsel %vm4241_vm15, %v4240_v49, 0 }
 0x4f8   : > { %v2640_v13 = vshrl.u32 %v2622_v54, %v2638_v9  ;;  %v2643_v1 = vadd.s32 127, %v2642_v24  ;;  %v4237_v26 = vand.u32 8388607, %v4230_v36  ;;  %v4244_v3 = vand.u32 31, %v4242_v58 }
 0x4f9   : > { %v5039_v35 = vpop.eup %5038  ;;  %v2517_v47 = vmul.u32 %v8289_v56, %v2501_v39  ;;  %vm2519_vm3 = vc.u32 %v8335_v6, %v8325_v44  ;;  %v8351_v14 = vadd.f32 %v8057_v63, %v966_v8  ;;  %v2655_v32 = vsel %vm8318_vm13, 0, %v2653_v34 }
 0x4fa   : > { %v2641_v33 = vor.u32 %v2640_v13, %v2639_v4  ;;  %v2644_v2 = vshll.u32 %v2643_v1, 23  ;;  %v5041_v60 = vpop.eup %5040  ;;  %v2354_v54 = vxor.u32 2147483648, %v5039_v35  ;;  %v2521_v29 = vsel %vm2519_vm3, %v2520_v53, %v8326_v11 }
 0x4fb   : > { %v2351_v43 = vxor.u32 2147483648, %v5041_v60  ;;  %vm2350_vm4 = vcmp.eq.s32.totalorder %v8281_v15, 0  ;;  %v2522_v56 = vadd.s32 %v2521_v29, %v2517_v47  ;;  %v4245_v52 = vsub.s32 32, %v4244_v3 }
 0x4fc   : > { %v2645_v27 = vor.u32 4788187, %v2644_v2  ;;  %v2355_v5 = vsel %vm2353_vm5, %v2354_v54, %v5041_v60  ;;  %v2648_v20 = vcvt.s32.f32 %v2641_v33  ;;  %v4238_v63 = vor.u32 8388608, %v4237_v26 }
 0x4fd   : > { %v2352_v42 = vsel %vm2350_vm4, %v5039_v35, %v2351_v43  ;;  %v2659_v7 = vadd.s32 3, %v2655_v32  ;;  %v2523_v16 = vadd.s32 536870912, %v2522_v56  ;;  %v4248_v61 = vshrl.u32 %v5287_v55, %v4245_v52 }
 0x4fe   : > { %v2646_v40 = vand.u32 2147483647, %v2645_v27  ;;  %v2356_v45 = vsel %vm2349_vm2, %v2352_v42, %v2355_v5  ;;  %v4251_v0 = vshrl.u32 %v5288_v57, %v4245_v52  ;;  %v4129_v25 = vand.u32 2139095040, %v8351_v14 }
 0x4ff   : > { %v2357_v48 = vsel %vm2346_vm0, nan, %v2356_v45  ;;  %v8367_v37 = vshrl.u32 %v2523_v16, 30  ;;  %v4247_v10 = vshll.u32 %v5286_v51, %v4244_v3  ;;  %v4254_v15 = vshrl.u32 %v5289_v59, %v4245_v52 }
 0x500   : > { %v2649_v23 = vmul.f32 %v2648_v20, %v2646_v40  ;;  %4346 = vst [vmem:[%s5998_s13 + $0x60] sm:$0xff] %v2357_v48  ;;  %v4257_v19 = vshrl.u32 %v5290_v12, %v4245_v52  ;;  %v4243_v21 = vshrl.u32 %v4242_v58, 5  ;;  %v4250_v17 = vshll.u32 %v5287_v55, %v4244_v3 }
 0x501   : > { %v4256_v46 = vshll.u32 %v5289_v59, %v4244_v3  ;;  %v2525_v38 = vshll.u32 %v8367_v37, 30  ;;  %v4249_v11 = vor.u32 %v4248_v61, %v4247_v10  ;;  %v4253_v9 = vshll.u32 %v5288_v57, %v4244_v3 }
 0x502   : > { %v2650_v62 = vxor.u32 2147483648, %v2649_v23  ;;  %v4260_v24 = vshrl.u32 %v5291_v22, %v4245_v52  ;;  %v4252_v39 = vor.u32 %v4251_v0, %v4250_v17  ;;  %v4259_v8 = vshll.u32 %v5290_v12, %v4244_v3 }
 0x503   : > { %v4258_v28 = vor.u32 %v4257_v19, %v4256_v46  ;;  %v8383_v13 = vand.u32 3, %v2659_v7  ;;  %v8385_v1 = vsub.s32 %v2522_v56, %v2525_v38  ;;  %v4255_v34 = vor.u32 %v4254_v15, %v4253_v9 }
 0x504   : > { %v2651_v49 = vsel %vm2568_vm1, %v2650_v62, %v2649_v23  ;;  %v4261_v53 = vor.u32 %v4260_v24, %v4259_v8  ;;  %v4278_v58 = vshll.u32 %v4238_v63, 8  ;;  %v4130_v35 = vshrl.u32 %v4129_v25, 23 }
 0x505   : > { %v2654_v4 = vsel %vm8318_vm13, %v8060_v41, %v2651_v49  ;;  %v2528_v33 = vsub.s32 0, %v8385_v1  ;;  %vm4262_vm8 = vcmp.lt.s32.totalorder %v4243_v21, 1  ;;  %vm4265_vm6 = vcmp.lt.s32.totalorder %v4243_v21, 4 }
 0x506   : > { %5042 = vcosq.f32 %v2654_v4  ;;  %v4246_v2 = vshrl.u32 %v5286_v51, %v4245_v52  ;;  %vm4264_vm10 = vcmp.lt.s32.totalorder %v4243_v21, 3  ;;  %v4270_v26 = vsel %vm4262_vm8, %v4249_v11, %v4252_v39 }
 0x507   : > { %5044 = vsinq.f32 %v2654_v4  ;;  %v4271_v31 = vsel %vm4265_vm6, %v4258_v28, 920167782  ;;  %v4595_v3 = vmin.u32 %v2528_v33, %v8385_v1  ;;  %vm4263_vm1 = vcmp.lt.s32.totalorder %v4243_v21, 2 }
 0x508   : > { %v4267_v60 = vsel %vm4265_vm6, %v4255_v34, 2102212464  ;;  %v4272_v54 = vsel %vm4264_vm10, %v4255_v34, %v4271_v31  ;;  %v4274_v43 = vsel %vm4262_vm8, %v4252_v39, %v4255_v34  ;;  %v4275_v27 = vsel %vm4265_vm6, %v4261_v53, 1326507024 }
 0x509   : > { %v4273_v47 = vsel %vm4263_vm1, %v4270_v26, %v4272_v54  ;;  %v4658_v32 = vadd.s32 4294967169, %v4130_v35  ;;  %v2530_v29 = vclz %v4595_v3  ;;  %v4266_v5 = vsel %vm4262_vm8, %v4246_v2, %v4249_v11 }
 0x50a   : > { %v4268_v56 = vsel %vm4264_vm10, %v4252_v39, %v4267_v60  ;;  %v4276_v42 = vsel %vm4264_vm10, %v4258_v28, %v4275_v27  ;;  %v8391_v40 = vmul.u32.u64.low %v4278_v58, %v4273_v47  ;;  %v8392_v20 = vmul.u32.u64.high %v4278_v58, %v4273_v47, %v8391_v40 }
 0x50b   : > { %v4596_v52 = vadd.s32 4294967294, %v2530_v29  ;;  %v4277_v63 = vsel %vm4263_vm1, %v4274_v43, %v4276_v42  ;;  %v4136_v45 = vadd.s32 1, %v4658_v32  ;;  %vm2658_vm11 = vweird.f32 %v8060_v41 }
 0x50c   : > { %vm2662_vm9 = vcmp.eq.s32.totalorder %v8383_v13, 0  ;;  %v8398_v7 = vmul.u32.u64.low %v4278_v58, %v4277_v63  ;;  %v8399_v16 = vmul.u32.u64.high %v4278_v58, %v4277_v63, %v8398_v7  ;;  %vm2665_vm7 = vcmp.eq.s32.totalorder %v8383_v13, 2 }
 0x50d   : > { %vm4597_vm14 = vcmp.lt.s32.totalorder %v4596_v52, 0  ;;  %v4269_v61 = vsel %vm4263_vm1, %v4266_v5, %v4268_v56  ;;  %vm4137_vm13 = vcmp.gt.s32.totalorder %v4136_v45, 0  ;;  %v2518_v23 = vadd.s32 %v8325_v44, %v8335_v6 }
 0x50e   : > { %v2533_v0 = vsel %vm4597_vm14, 0, %v4596_v52  ;;  %v4288_v25 = vadd.s32 1, %v8392_v20  ;;  %v4126_v10 = vand.u32 2147483647, %v8351_v14  ;;  %vm2464_vm12 = vcmp.lt.s32.totalorder %v8217_v50, 0 }
 0x50f   : > { %v2534_v62 = vsub.s32 32, %v2533_v0  ;;  %v2538_v17 = vsub.s32 4294967266, %v2533_v0  ;;  %v4138_v46 = vsel %vm4137_vm13, %v4136_v45, 0  ;;  %v2535_v21 = vshll.u32 %v8385_v1, %v2533_v0 }
 0x510   : > { %v5043_v48 = vpop.eup %5042  ;;  %v4285_v11 = vmul.u32 %v4278_v58, %v4269_v61  ;;  %vm4287_vm2 = vc.u32 %v8399_v16, %v8391_v40  ;;  %vm2661_vm0 = vcmp.lt.s32.totalorder %v8383_v13, 2  ;;  %v4140_v28 = vand.u32 31, %v4138_v46 }
 0x511   : > { %v5045_v15 = vpop.eup %5044  ;;  %v2666_v19 = vxor.u32 2147483648, %v5043_v48  ;;  %v2536_v6 = vshrl.u32 %v2518_v23, %v2534_v62  ;;  %v2539_v9 = vadd.s32 127, %v2538_v17  ;;  %v4289_v24 = vsel %vm4287_vm2, %v4288_v25, %v8392_v20 }
 0x512   : > { %v2663_v38 = vxor.u32 2147483648, %v5045_v15  ;;  %v4290_v39 = vadd.s32 %v4289_v24, %v4285_v11  ;;  %vm8419_vm15 = vcmp.le.f32.partialorder %v2462_v18, 0.7853982  ;;  %v2548_v58 = vsub.s32 4, %v8367_v37 }
 0x513   : > { %v2667_v44 = vsel %vm2665_vm7, %v2666_v19, %v5045_v15  ;;  %v2537_v1 = vor.u32 %v2536_v6, %v2535_v21  ;;  %v2540_v34 = vshll.u32 %v2539_v9, 23  ;;  %v4141_v33 = vsub.s32 32, %v4140_v28 }
 0x514   : > { %v2664_v49 = vsel %vm2662_vm9, %v5043_v48, %v2663_v38  ;;  %v4291_v35 = vadd.s32 536870912, %v4290_v39  ;;  %v4133_v26 = vand.u32 8388607, %v4126_v10  ;;  %v4143_v18 = vshll.u32 %v5286_v51, %v4140_v28 }
 0x515   : > { %v2668_v8 = vsel %vm2661_vm0, %v2664_v49, %v2667_v44  ;;  %v2541_v13 = vor.u32 4788187, %v2540_v34  ;;  %v2544_v2 = vcvt.s32.f32 %v2537_v1  ;;  %v4144_v3 = vshrl.u32 %v5287_v55, %v4141_v33 }
 0x516   : > { %v2669_v53 = vsel %vm2658_vm11, nan, %v2668_v8  ;;  %v8430_v31 = vshrl.u32 %v4291_v35, 30  ;;  %v4146_v60 = vshll.u32 %v5287_v55, %v4140_v28  ;;  %v4147_v41 = vshrl.u32 %v5288_v57, %v4141_v33 }
 0x517   : > { %4349 = vst [vmem:[%s5998_s13 + $0x78] sm:$0xff] %v2669_v53  ;;  %v2542_v54 = vand.u32 2147483647, %v2541_v13  ;;  %v4150_v47 = vshrl.u32 %v5289_v59, %v4141_v33  ;;  %v4152_v43 = vshll.u32 %v5289_v59, %v4140_v28  ;;  %v4153_v27 = vshrl.u32 %v5290_v12, %v4141_v33 }
 0x518   : > { %v2549_v32 = vsel %vm2464_vm12, %v2548_v58, %v8367_v37  ;;  %v4293_v29 = vshll.u32 %v8430_v31, 30  ;;  %v4139_v5 = vshrl.u32 %v4138_v46, 5  ;;  %v4149_v56 = vshll.u32 %v5288_v57, %v4140_v28 }
 0x519   : > { %v2545_v42 = vmul.f32 %v2544_v2, %v2542_v54  ;;  %v4145_v55 = vor.u32 %v4144_v3, %v4143_v18  ;;  %v4148_v20 = vor.u32 %v4147_v41, %v4146_v60  ;;  %v4154_v52 = vor.u32 %v4153_v27, %v4152_v43 }
 0x51a   : > { %v4294_v63 = vsub.s32 %v4290_v39, %v4293_v29  ;;  %v4151_v45 = vor.u32 %v4150_v47, %v4149_v56  ;;  %v4155_v7 = vshll.u32 %v5290_v12, %v4140_v28  ;;  %v4156_v59 = vshrl.u32 %v5291_v22, %v4141_v33 }
 0x51b   : > { %v2546_v61 = vxor.u32 2147483648, %v2545_v42  ;;  %v2551_v48 = vsel %vm8419_vm15, 0, %v2549_v32  ;;  %v4134_v37 = vor.u32 8388608, %v4133_v26  ;;  %vm4158_vm5 = vcmp.lt.s32.totalorder %v4139_v5, 1 }
 0x51c   : > { %v4296_v23 = vsub.s32 0, %v4294_v63  ;;  %v4157_v0 = vor.u32 %v4156_v59, %v4155_v7  ;;  %vm4161_vm3 = vcmp.lt.s32.totalorder %v4139_v5, 4  ;;  %v4142_v25 = vshrl.u32 %v5286_v51, %v4141_v33 }
 0x51d   : > { %v2547_v57 = vsel %vm2464_vm12, %v2546_v61, %v2545_v42  ;;  %vm4160_vm4 = vcmp.lt.s32.totalorder %v4139_v5, 3  ;;  %v4167_v15 = vsel %vm4161_vm3, %v4154_v52, 920167782  ;;  %v4163_v19 = vsel %vm4161_vm3, %v4151_v45, 2102212464 }
 0x51e   : > { %v2550_v12 = vsel %vm8419_vm15, %v8217_v50, %v2547_v57  ;;  %v4663_v22 = vmin.u32 %v4296_v23, %v4294_v63  ;;  %v4166_v62 = vsel %vm4158_vm5, %v4145_v55, %v4148_v20  ;;  %v4168_v17 = vsel %vm4160_vm4, %v4151_v45, %v4167_v15 }
 0x51f   : > { %5046 = vcosq.f32 %v2550_v12  ;;  %v4170_v46 = vsel %vm4158_vm5, %v4148_v20, %v4151_v45  ;;  %v4171_v38 = vsel %vm4161_vm3, %v4157_v0, 1326507024  ;;  %vm4159_vm8 = vcmp.lt.s32.totalorder %v4139_v5, 2 }
 0x520   : > { %5048 = vsinq.f32 %v2550_v12  ;;  %v4298_v21 = vclz %v4663_v22  ;;  %v4174_v51 = vshll.u32 %v4134_v37, 8  ;;  %v4162_v11 = vsel %vm4158_vm5, %v4142_v25, %v4145_v55 }
 0x521   : > { %v4164_v44 = vsel %vm4160_vm4, %v4148_v20, %v4163_v19  ;;  %v4169_v6 = vsel %vm4159_vm8, %v4166_v62, %v4168_v17  ;;  %v4172_v9 = vsel %vm4160_vm4, %v4154_v52, %v4171_v38  ;;  %v2555_v8 = vadd.s32 3, %v2551_v48 }
 0x522   : > { %v4664_v24 = vadd.s32 4294967294, %v4298_v21  ;;  %v4173_v49 = vsel %vm4159_vm8, %v4170_v46, %v4172_v9  ;;  %v8459_v39 = vmul.u32.u64.low %v4174_v51, %v4169_v6  ;;  %v8460_v28 = vmul.u32.u64.high %v4174_v51, %v4169_v6, %v8459_v39 }
 0x523   : > { %v8462_v4 = vmul.u32.u64.low %v4174_v51, %v4173_v49  ;;  %v8463_v1 = vmul.u32.u64.high %v4174_v51, %v4173_v49, %v8462_v4  ;;  %v4165_v34 = vsel %vm4159_vm8, %v4162_v11, %v4164_v44  ;;  %v4286_v58 = vadd.s32 %v8391_v40, %v8399_v16 }
 0x524   : > { %vm4665_vm6 = vcmp.lt.s32.totalorder %v4664_v24, 0  ;;  %v4184_v13 = vadd.s32 1, %v8460_v28  ;;  %v2556_v2 = vand.u32 3, %v2555_v8  ;;  %v4181_v26 = vmul.u32 %v4174_v51, %v4165_v34 }
 0x525   : > { %v4301_v53 = vsel %vm4665_vm6, 0, %v4664_v24  ;;  %vm4183_vm10 = vc.u32 %v8463_v1, %v8459_v39  ;;  %vm2554_vm7 = vweird.f32 %v8217_v50  ;;  %v4316_v61 = vsub.s32 4, %v8430_v31 }
 0x526   : > { %v4302_v35 = vsub.s32 32, %v4301_v53  ;;  %v4306_v33 = vsub.s32 4294967266, %v4301_v53  ;;  %v4303_v18 = vshll.u32 %v4294_v63, %v4301_v53  ;;  %v4185_v41 = vsel %vm4183_vm10, %v4184_v13, %v8460_v28 }
 0x527   : > { %v4186_v47 = vadd.s32 %v4185_v41, %v4181_v26  ;;  %vm2561_vm1 = vcmp.eq.s32.totalorder %v2556_v2, 2  ;;  %vm2558_vm11 = vcmp.eq.s32.totalorder %v2556_v2, 0  ;;  %vm2557_vm9 = vcmp.lt.s32.totalorder %v2556_v2, 2 }
 0x528   : > { %v4304_v3 = vshrl.u32 %v4286_v58, %v4302_v35  ;;  %v4307_v60 = vadd.s32 127, %v4306_v33  ;;  %vm4232_vm14 = vcmp.lt.s32.totalorder %v8277_v30, 0  ;;  %vm4231_vm13 = vcmp.le.f32.partialorder %v4230_v36, 0.7853982 }
 0x529   : > { %v5047_v54 = vpop.eup %5046  ;;  %v4187_v16 = vadd.s32 536870912, %v4186_v47  ;;  %v4317_v50 = vsel %vm4232_vm14, %v4316_v61, %v8430_v31  ;;  %v4182_v17 = vadd.s32 %v8459_v39, %v8463_v1  ;;  %vm4322_vm5 = vweird.f32 %v8277_v30 }
 0x52a   : > { %v5049_v43 = vpop.eup %5048  ;;  %v2562_v27 = vxor.u32 2147483648, %v5047_v54  ;;  %v4305_v32 = vor.u32 %v4304_v3, %v4303_v18  ;;  %v4308_v29 = vshll.u32 %v4307_v60, 23  ;;  %v4319_v15 = vsel %vm4231_vm13, 0, %v4317_v50 }
 0x52b   : > { %v2559_v40 = vxor.u32 2147483648, %v5049_v43  ;;  %v4188_v55 = vshrl.u32 %v4187_v16, 30  ;;  %v4323_v19 = vadd.s32 3, %v4319_v15  ;;  %vm4128_vm3 = vcmp.lt.s32.totalorder %v8351_v14, 0 }
 0x52c   : > { %v2563_v5 = vsel %vm2561_vm1, %v2562_v27, %v5049_v43  ;;  %v4309_v56 = vor.u32 4788187, %v4308_v29  ;;  %v4312_v63 = vcvt.s32.f32 %v4305_v32  ;;  %vm4127_vm4 = vcmp.le.f32.partialorder %v4126_v10, 0.7853982 }
 0x52d   : > { %v2560_v42 = vsel %vm2558_vm11, %v5047_v54, %v2559_v40  ;;  %v4189_v7 = vshll.u32 %v4188_v55, 30  ;;  %v4324_v21 = vand.u32 3, %v4323_v19  ;;  %v4212_v35 = vsub.s32 4, %v4188_v55 }
 0x52e   : > { %v2564_v20 = vsel %vm2557_vm9, %v2560_v42, %v2563_v5  ;;  %v4310_v52 = vand.u32 2147483647, %v4309_v56  ;;  %vm4218_vm1 = vweird.f32 %v8351_v14 }
 0x52f   : > { %v2565_v45 = vsel %vm2554_vm7, nan, %v2564_v20  ;;  %v4190_v48 = vsub.s32 %v4186_v47, %v4189_v7  ;;  %vm4329_vm2 = vcmp.eq.s32.totalorder %v4324_v21, 2  ;;  %vm4326_vm0 = vcmp.eq.s32.totalorder %v4324_v21, 0 }
 0x530   : > { %4348 = vst [vmem:[%s5998_s13 + $0x70] sm:$0xff] %v2565_v45  ;;  %v4313_v59 = vmul.f32 %v4312_v63, %v4310_v52  ;;  %vm4325_vm15 = vcmp.lt.s32.totalorder %v4324_v21, 2  ;;  %v4213_v2 = vsel %vm4128_vm3, %v4212_v35, %v4188_v55 }
 0x531   : > { %v4192_v23 = vsub.s32 0, %v4190_v48 }
 0x532   : > { %v4314_v37 = vxor.u32 2147483648, %v4313_v59 }
 0x533   : > { %v4659_v25 = vmin.u32 %v4192_v23, %v4190_v48 }
 0x534   : > { %v4315_v0 = vsel %vm4232_vm14, %v4314_v37, %v4313_v59 }
 0x535   : > { %v4318_v57 = vsel %vm4231_vm13, %v8277_v30, %v4315_v0  ;;  %v4194_v12 = vclz %v4659_v25  ;;  %v4215_v30 = vsel %vm4127_vm4, 0, %v4213_v2 }
 0x536   : > { %5050 = vcosq.f32 %v4318_v57  ;;  %v4219_v18 = vadd.s32 3, %v4215_v30 }
 0x537   : > { %5052 = vsinq.f32 %v4318_v57  ;;  %v4660_v22 = vadd.s32 4294967294, %v4194_v12 }
 0x538   : > { %v4220_v3 = vand.u32 3, %v4219_v18 }
 0x539   : > { %vm4661_vm12 = vcmp.lt.s32.totalorder %v4660_v22, 0 }
 0x53a   : > { %v4197_v62 = vsel %vm4661_vm12, 0, %v4660_v22  ;;  %vm4225_vm8 = vcmp.eq.s32.totalorder %v4220_v3, 2  ;;  %vm4222_vm6 = vcmp.eq.s32.totalorder %v4220_v3, 0  ;;  %vm4221_vm10 = vcmp.lt.s32.totalorder %v4220_v3, 2 }
 0x53b   : > { %v4198_v46 = vsub.s32 32, %v4197_v62  ;;  %v4202_v38 = vsub.s32 4294967266, %v4197_v62  ;;  %v4199_v36 = vshll.u32 %v4190_v48, %v4197_v62 }
 0x53d   : > { %v4200_v51 = vshrl.u32 %v4182_v17, %v4198_v46  ;;  %v4203_v11 = vadd.s32 127, %v4202_v38 }
 0x53f   : > { %v4201_v9 = vor.u32 %v4200_v51, %v4199_v36  ;;  %v4204_v24 = vshll.u32 %v4203_v11, 23 }
 0x540   : > { %v5051_v31 = vpop.eup %5050 }
 0x541   : > { %v5053_v44 = vpop.eup %5052  ;;  %v4330_v6 = vxor.u32 2147483648, %v5051_v31  ;;  %v4205_v8 = vor.u32 4788187, %v4204_v24  ;;  %v4208_v34 = vcvt.s32.f32 %v4201_v9 }
 0x542   : > { %v4327_v49 = vxor.u32 2147483648, %v5053_v44 }
 0x543   : > { %v4331_v28 = vsel %vm4329_vm2, %v4330_v6, %v5053_v44  ;;  %v4206_v1 = vand.u32 2147483647, %v4205_v8 }
 0x544   : > { %v4328_v4 = vsel %vm4326_vm0, %v5051_v31, %v4327_v49 }
 0x545   : > { %v4332_v39 = vsel %vm4325_vm15, %v4328_v4, %v4331_v28  ;;  %v4209_v58 = vmul.f32 %v4208_v34, %v4206_v1 }
 0x546   : > { %v4333_v53 = vsel %vm4322_vm5, nan, %v4332_v39 }
 0x547   : > { %4365 = vst [vmem:[%s5998_s13 + $0xf8] sm:$0xff] %v4333_v53  ;;  %v4210_v33 = vxor.u32 2147483648, %v4209_v58 }
 0x549   : > { %v4211_v13 = vsel %vm4128_vm3, %v4210_v33, %v4209_v58 }
 0x54a   : > { %v4214_v26 = vsel %vm4127_vm4, %v8351_v14, %v4211_v13 }
 0x54b   : > { %5054 = vcosq.f32 %v4214_v26 }
 0x54c   : > { %5056 = vsinq.f32 %v4214_v26 }
 0x555   : > { %v5055_v60 = vpop.eup %5054 }
 0x556   : > { %v5057_v41 = vpop.eup %5056  ;;  %v4226_v54 = vxor.u32 2147483648, %v5055_v60 }
 0x557   : > { %v4223_v47 = vxor.u32 2147483648, %v5057_v41 }
 0x558   : > { %v4227_v10 = vsel %vm4225_vm8, %v4226_v54, %v5057_v41 }
 0x559   : > { %v4224_v43 = vsel %vm4222_vm6, %v5055_v60, %v4223_v47 }
 0x55a   : > { %v4228_v27 = vsel %vm4221_vm10, %v4224_v43, %v4227_v10 }
 0x55b   : > { %v4229_v32 = vsel %vm4218_vm1, nan, %v4228_v27 }
 0x55c   : > { %4364 = vst [vmem:[%s5998_s13 + $0xf0] sm:$0xff] %v4229_v32 }
 0x55d   : > { %5197 = shalt.err (!%p5194_p7)
}
 0x55e   : > { %s5198_s13 = scalar_lea.hbm %s8490_s12, 4096  ;;  %s5202_s20 = scalar_lea.hbm %s8549_s6, 8192 }
 0x55f   : > { %p5199_p12 = scmp.ne.s32.totalorder %s8490_s12, %s5198_s13  ;;  %p5203_p11 = scmp.lt.u32.totalorder %s8490_s12, %s8549_s6 }
 0x560   : > { %p5204_p13 = scmp.lt.u32.totalorder %s5202_s20, %s5198_s13  ;;  %p5206_p2 = scmp.lt.u32.totalorder %s5198_s13, %s8490_s12 }
 0x561   : > { %p5200_p1 = pnand %p5199_p12, %p8644_p6 }
 0x562   : > { %p5205_p0 = por %p5204_p13, %p5203_p11 }
 0x563   : > { %p5201_p8 = pneg %p5200_p1 }
 0x564   : > { %p5207_p10 = por %p5206_p2, %p5205_p0 }
 0x566   : > { %p5208_p3 = pnand %p5207_p10, %p5201_p8 }
 0x568   : > { %5211 = shalt.err (!%p5208_p3)
}
 0x569   : > { %s5293_s29 = smov 128   ;;  %s5294_s2 = smov 8  }
 0x56a   : > { %4844 = dma.vmem_to_hbm [thread:$0]  (%p8644_p6), %s8492_s17, 4096, %s8490_s12, %s4367_s24, %s5293_s29, %s5293_s29, %s5294_s2  }
 0x56b PF: > { %s4398_s10 = sand.u32 1, %s5258_s21   ;;  %p8645_p4 = scmp.ne.s32.totalorder %s8566_s30, 0 }
 0x56c   : > { %p8646_p9 = scmp.ge.s32.totalorder %s5278_s26, 2  ;;  %s4399_s19 = scalar_lea.sflag [#allocation4], %s4398_s10 }
 0x56e   : > { %p4861_p5 = pnand %p8646_p9, %p8645_p4 }
 0x570   : > { %5253 = dma.done.wait (!%p4861_p5), %s4399_s19, 4096  }
 0x571   : > { %5255 = vsyncadd (!%p4861_p5), %s4399_s19, 4294963200  ;;  %s26_s26 = sadd.s32 1, %s5278_s26   ;;  %s8647_s8 = sld [smem:[#allocation16_spill]] }
 0x572   : > { %p23_p7 = scmp.ge.s32.totalorder %s26_s26, 4   ;;  %s8648_s23 = sld [smem:[#allocation19_spill]] }
 0x573   : > { %s8649_s24 = sld [smem:[#allocation17_spill]]  ;;  %s8650_s25 = sld [smem:[#allocation18_spill]] }
 0x574   : > { %s8651_s21 = smov %s5262_s22  ;;  %25 = sbr.rel (!%p23_p7) target bundleno = 13 (0xd), region = 111 }
 0x577   : > { %s8652_s22 = smov %s8647_s8 }
 0x57b   :  { %4404 = vsyncpa [#allocation3], 1 }
 0x57c   :  { %4406 = vsyncpa [#allocation3 + $0x1], 1 }
 0x57d   :  { %4407 = vsyncpa [#allocation6], 1 }
 0x57e   :  { %4409 = vsyncpa [#allocation6 + $0x1], 1 }
 0x57f   :  { %4410 = vsyncpa [#allocation9], 1 }
 0x580   :  { %4411 = vsyncpa [#allocation4], 1 }
 0x581   :  { %4413 = vsyncpa [#allocation4 + $0x1], 1 }

</bundles_post_ra>
